<compile_context>
chip_gen: v5e
topology: v5e:2x2
jax: 0.10.0
libtpu: 0.0.40
codegen_flags: <defaults>
</compile_context>

<pallas_src>
import math
from functools import partial

import jax
import jax.numpy as jnp
from jax import lax
from jax.experimental import pallas as pl
from jax.experimental.pallas import tpu as pltpu

# MXU operand dtype for all MLP / gather / scatter matmuls (f32 accumulation).
MXU_DTYPE = jnp.bfloat16
EPS_BETA = 1e-6


# ---------------------------------------------------------------------------
# small in-kernel helpers (feature-major layout: act is (features, graph_axis))
# ---------------------------------------------------------------------------
def _vmem_spec(shape):
    # Full-array block (no grid), resident in VMEM.
    return pl.BlockSpec(shape, lambda: (0,) * len(shape))


def _relu(v):
    return jnp.maximum(v, 0.0)


def _mdot(w_bf16, act):
    # Weight already bf16 (pre-cast at prep time); only the activation is cast.
    return jnp.dot(w_bf16, act.astype(MXU_DTYPE), preferred_element_type=jnp.float32)


def _encode_t(v_t, w_refs):
    # bias-free MLP, ReLU after every layer (module-level ReLU folded in)
    for w_ref in w_refs:
        v_t = _relu(_mdot(w_ref[...], v_t))
    return v_t


def _in_layer_t(h_t, e_t, G_tgt, G_src, S_tgt, p, l, alpha, mask_row):
    """One interaction-network layer + ResIN convex residual, feature-major.

    h_t: (h_dim, N), e_t: (e_dim, E).  `l` is a static Python layer index into
    the stacked (2L, ...) weight/bias arrays.  mask_row is None (EC tower) or a
    (1, E) 0/1 float row (HC tower, emulating edge_subgraph for the sum aggr).
    """
    h_b = h_t.astype(MXU_DTYPE)
    # gather target/source node features per edge (bf16 one-hot, exact 0/1)
    x_i = jnp.dot(h_b, G_tgt, preferred_element_type=jnp.float32)          # (h, E)
    x_j = jnp.dot(h_b, G_src, preferred_element_type=jnp.float32)          # (h, E)
    # relational model: W0^T @ concat == partial matmuls (no in-kernel concat)
    m = _relu(_mdot(p["rel_w0a"][l], x_i) + _mdot(p["rel_w0b"][l], x_j)
              + _mdot(p["rel_w0c"][l], e_t) + p["rel_b0"][l])
    m = _relu(_mdot(p["rel_w1"][l], m) + p["rel_b1"][l])
    e_tilde = _mdot(p["rel_w2"][l], m) + p["rel_b2"][l]                    # (e, E)
    # masked scatter-add aggregation onto target nodes
    msg = e_tilde if mask_row is None else e_tilde * mask_row
    aggr = jnp.dot(msg.astype(MXU_DTYPE), S_tgt,
                   preferred_element_type=jnp.float32)                     # (e, N)
    # object model: W0^T @ concat(h, aggr) == partial matmuls
    c = _relu(_mdot(p["obj_w0x"][l], h_b) + _mdot(p["obj_w0a"][l], aggr)
              + p["obj_b0"][l])
    c = _relu(_mdot(p["obj_w1"][l], c) + p["obj_b1"][l])
    x_tilde = _mdot(p["obj_w2"][l], c) + p["obj_b2"][l]                    # (h, N)
    # ResIN convex residual connections
    h_new = alpha * h_t + (1.0 - alpha) * _relu(x_tilde)
    e_new = alpha * e_t + (1.0 - alpha) * _relu(e_tilde)
    return h_new, e_new


# ---------------------------------------------------------------------------
# the single fused forward kernel
# ---------------------------------------------------------------------------
def graph_tcn_fused(params, x, edge_index, edge_attr, *,
                    ec_threshold, alpha_ec, alpha_hc):
    n_nodes = x.shape[0]
    n_edges = edge_attr.shape[0]
    node_indim = x.shape[1]
    edge_indim = edge_attr.shape[1]

    src, tgt = edge_index[0], edge_index[1]
    tgt_row = tgt.reshape(1, n_edges).astype(jnp.int32)
    src_row = src.reshape(1, n_edges).astype(jnp.int32)
    tgt_col = tgt.reshape(n_edges, 1).astype(jnp.int32)
    x_t = x.T                      # (node_indim, N) feature-major
    ea_t = edge_attr.T             # (edge_indim, E) feature-major

    leaves, treedef = jax.tree_util.tree_flatten(params)
    n_leaves = len(leaves)

    two_L = params["rel_w1"].shape[0]
    n_layers = two_L // 2
    hidden = params["rel_w1"].shape[1]
    h_dim = params["obj_w2"].shape[1]
    e_dim = params["rel_w2"].shape[1]
    h_outdim = params["bc_w2"].shape[0] - 1
    # threshold on W == threshold on logits (sigmoid is monotone)
    logit_thr = float(math.log(ec_threshold / (1.0 - ec_threshold)))

    def kernel(*refs):
        tgt_row_ref, src_row_ref, tgt_col_ref, x_t_ref, ea_t_ref = refs[:5]
        p = jax.tree_util.tree_unflatten(treedef, refs[5:5 + n_leaves])
        w_out, b_out, h_out = refs[5 + n_leaves:]

        # gather / scatter one-hots: built ONCE (bf16, 0/1 exact), reused by all
        # 2L interaction-network layers of both towers.
        node_ids_ne = lax.broadcasted_iota(jnp.int32, (n_nodes, n_edges), 0)
        G_tgt = (node_ids_ne == tgt_row_ref[...]).astype(jnp.float32).astype(MXU_DTYPE)
        G_src = (node_ids_ne == src_row_ref[...]).astype(jnp.float32).astype(MXU_DTYPE)
        node_ids_en = lax.broadcasted_iota(jnp.int32, (n_edges, n_nodes), 1)
        S_tgt = (node_ids_en == tgt_col_ref[...]).astype(jnp.float32).astype(MXU_DTYPE)

        # ================= edge-classifier tower =================
        h = _encode_t(x_t_ref[...], p["ec_node_enc"])      # (h_dim, N)
        e = _encode_t(ea_t_ref[...], p["ec_edge_enc"])      # (e_dim, E)
        # W-head first layer accumulated per edge-embedding block (no concat)
        acc_w = _mdot(p["whead_w0"][0], e)
        for l in range(n_layers):
            h, e = _in_layer_t(h, e, G_tgt, G_src, S_tgt, p, l, alpha_ec, None)
            acc_w = acc_w + _mdot(p["whead_w0"][l + 1], e)
        z = _relu(acc_w + p["whead_b0"][...])
        z = _relu(_mdot(p["whead_w1"][...], z) + p["whead_b1"][...])
        wv = _mdot(p["whead_w2"][...], z) + p["whead_b2"][...]        # (1, E) logits
        w_out[...] = 1.0 / (1.0 + jnp.exp(-wv))                       # exact sigmoid
        # EC edge mask computed in-kernel (no HBM round-trip / relaunch)
        mask_row = (wv > logit_thr).astype(jnp.float32)               # (1, E)

        # ================= track-condenser tower =================
        h = _encode_t(x_t_ref[...], p["hc_node_enc"])      # relu(ResFCNN(x))
        e = _encode_t(ea_t_ref[...], p["hc_edge_enc"])     # relu(MLP(edge_attr))
        for l in range(n_layers):
            h, e = _in_layer_t(h, e, G_tgt, G_src, S_tgt, p,
                               n_layers + l, alpha_hc, mask_row)

        # fused beta + cluster head (block-diagonal weights, latent_norm folded)
        z = _relu(_mdot(p["bc_w0"][...], h) + p["bc_b0"][...])        # (2*hidden, N)
        z = _relu(_mdot(p["bc_w1"][...], z) + p["bc_b1"][...])
        out = _mdot(p["bc_w2"][...], z) + p["bc_b2"][...]             # (1+h_outdim, N)
        beta = 1.0 / (1.0 + jnp.exp(-out[0:1, :]))                    # exact sigmoid
        b_out[...] = EPS_BETA + (1.0 - 2.0 * EPS_BETA) * beta
        h_out[...] = out[1:, :]

    args = (tgt_row, src_row, tgt_col, x_t, ea_t) + tuple(leaves)
    out_shapes = (
        jax.ShapeDtypeStruct((1, n_edges), jnp.float32),          # W   (lane-dense)
        jax.ShapeDtypeStruct((1, n_nodes), jnp.float32),          # B   (lane-dense)
        jax.ShapeDtypeStruct((h_outdim, n_nodes), jnp.float32),   # H^T (lane-dense)
    )

    # --- rough cost estimate (advisory, helps XLA schedule surrounding ops) ---
    def _mm(m, k, n):
        return 2 * m * k * n

    flops = 0
    flops += _mm(hidden, node_indim, n_nodes) + _mm(h_dim, hidden, n_nodes)        # EC node enc
    flops += (_mm(hidden, node_indim, n_nodes) + _mm(hidden, hidden, n_nodes)
              + _mm(h_dim, hidden, n_nodes))                                       # HC node enc
    flops += 2 * (_mm(hidden, edge_indim, n_edges) + _mm(e_dim, hidden, n_edges))  # edge encs
    per_layer = (2 * _mm(h_dim, n_nodes, n_edges) + _mm(e_dim, n_edges, n_nodes)
                 + _mm(hidden, 2 * h_dim + e_dim, n_edges)
                 + _mm(hidden, hidden, n_edges) + _mm(e_dim, hidden, n_edges)
                 + _mm(hidden, h_dim + e_dim, n_nodes)
                 + _mm(hidden, hidden, n_nodes) + _mm(h_dim, hidden, n_nodes))
    flops += two_L * per_layer
    flops += (_mm(hidden, e_dim * (n_layers + 1), n_edges)
              + _mm(hidden, hidden, n_edges) + _mm(1, hidden, n_edges))            # W head
    flops += (_mm(2 * hidden, h_dim, n_nodes) + _mm(2 * hidden, 2 * hidden, n_nodes)
              + _mm(1 + h_outdim, 2 * hidden, n_nodes))                            # beta/cluster
    bytes_accessed = sum(int(a.size) * a.dtype.itemsize for a in args)
    bytes_accessed += sum(math.prod(s.shape) * 4 for s in out_shapes)

    return pl.pallas_call(
        kernel,
        out_shape=out_shapes,
        in_specs=[_vmem_spec(a.shape) for a in args],
        out_specs=tuple(_vmem_spec(s.shape) for s in out_shapes),
        compiler_params=pltpu.CompilerParams(vmem_limit_bytes=32 * 1024 * 1024),
        cost_estimate=pl.CostEstimate(flops=int(flops),
                                      transcendentals=int(n_edges + n_nodes),
                                      bytes_accessed=int(bytes_accessed)),
    )(*args)


# ---------------------------------------------------------------------------
# GraphTCN forward (ModularGraphTCN with ECForGraphTCN + ResIN)
# ---------------------------------------------------------------------------
def graph_tcn_forward(params, x, edge_index, edge_attr, *,
                      ec_threshold=0.5, alpha_ec=0.5, alpha_hc=0.5):
    n_nodes = x.shape[0]
    w_row, b_row, h_t = graph_tcn_fused(
        params, x, edge_index, edge_attr,
        ec_threshold=ec_threshold, alpha_ec=alpha_ec, alpha_hc=alpha_hc)

    edge_weights_unmasked = w_row.reshape(-1)                 # W output
    edge_mask = edge_weights_unmasked > ec_threshold          # ec_edge_mask
    hit_mask = jnp.ones((n_nodes,), dtype=bool)               # mask_orphan_nodes=False
    return {
        "W": edge_weights_unmasked,
        "H": h_t.T,                                           # back to (N, h_outdim)
        "B": b_row.reshape(-1),
        "ec_hit_mask": hit_mask,
        "ec_edge_mask": edge_mask,
    }


# ---------------------------------------------------------------------------
# Deterministic parameter construction (matches torch.nn.Linear init ranges)
# ---------------------------------------------------------------------------
def _linear_w(key, fan_in, fan_out):
    bound = 1.0 / math.sqrt(fan_in)
    return jax.random.uniform(key, (fan_in, fan_out), jnp.float32, -bound, bound)


def _linear_b(key, fan_in, fan_out):
    bound = 1.0 / math.sqrt(fan_in)
    return jax.random.uniform(key, (1, fan_out), jnp.float32, -bound, bound)


def mlp_params(key, dims, bias=True):
    n = len(dims) - 1
    keys = jax.random.split(key, 2 * n)
    ws = [_linear_w(keys[2 * i], dims[i], dims[i + 1]) for i in range(n)]
    bs = [_linear_b(keys[2 * i + 1], dims[i], dims[i + 1]) for i in range(n)] if bias else None
    return (ws, bs)


def _in_layer_params(key, h_dim, e_dim, hidden_dim):
    k1, k2 = jax.random.split(key)
    return {
        "rel": mlp_params(k1, [2 * h_dim + e_dim, hidden_dim, hidden_dim, e_dim], bias=True),
        "obj": mlp_params(k2, [h_dim + e_dim, hidden_dim, hidden_dim, h_dim], bias=True),
    }


def init_graph_tcn_params(key, node_indim, edge_indim, *, h_dim=5, e_dim=4,
                          h_outdim=2, hidden_dim=40, L_ec=3, L_hc=3):
    keys = iter(jax.random.split(key, 32))
    p = {}
    # --- edge classifier (ECForGraphTCN) ---
    p["ec_node_enc"] = mlp_params(next(keys), [node_indim, hidden_dim, h_dim], bias=False)
    p["ec_edge_enc"] = mlp_params(next(keys), [edge_indim, hidden_dim, e_dim], bias=False)
    p["ec_resin"] = [_in_layer_params(next(keys), h_dim, e_dim, hidden_dim) for _ in range(L_ec)]
    p["ec_w"] = mlp_params(next(keys), [e_dim * (L_ec + 1), hidden_dim, hidden_dim, 1], bias=True)
    # --- track condenser (ModularGraphTCN) ---
    p["hc_node_enc"] = mlp_params(next(keys), [node_indim, hidden_dim, hidden_dim, h_dim], bias=False)
    p["hc_edge_enc"] = mlp_params(next(keys), [edge_indim, hidden_dim, e_dim], bias=False)
    p["hc_resin"] = [_in_layer_params(next(keys), h_dim, e_dim, hidden_dim) for _ in range(L_hc)]
    p["p_beta"] = mlp_params(next(keys), [h_dim, hidden_dim, hidden_dim, 1], bias=True)
    p["p_cluster"] = mlp_params(next(keys), [h_dim, hidden_dim, hidden_dim, h_outdim], bias=True)
    p["latent_norm"] = jnp.array([1.0], jnp.float32)
    return p


def prepare_params(raw, *, h_dim=5, e_dim=4):
    """Repack torch-style params into the fused feature-major kernel layout.

    * all weights pre-transposed (out = W^T @ act) and pre-cast to bf16
    * concat-facing first-layer weights split row-wise (partial matmuls in-kernel)
    * per-layer IN weights/biases of BOTH towers stacked along a (2L, ...) axis
    * beta/cluster heads fused into one block-diagonal MLP, latent_norm folded in
    * biases stay f32 as (width, 1) columns
    """
    wt = lambda a: jnp.asarray(a, jnp.float32).T.astype(MXU_DTYPE)
    col = lambda b: jnp.asarray(b, jnp.float32).reshape(-1, 1)

    p = {}
    p["ec_node_enc"] = tuple(wt(w) for w in raw["ec_node_enc"][0])
    p["ec_edge_enc"] = tuple(wt(w) for w in raw["ec_edge_enc"][0])
    p["hc_node_enc"] = tuple(wt(w) for w in raw["hc_node_enc"][0])
    p["hc_edge_enc"] = tuple(wt(w) for w in raw["hc_edge_enc"][0])

    acc = {k: [] for k in ("rel_w0a", "rel_w0b", "rel_w0c", "rel_w1", "rel_w2",
                           "rel_b0", "rel_b1", "rel_b2",
                           "obj_w0x", "obj_w0a", "obj_w1", "obj_w2",
                           "obj_b0", "obj_b1", "obj_b2")}
    for lp in list(raw["ec_resin"]) + list(raw["hc_resin"]):
        rws, rbs = lp["rel"]
        ows, obs = lp["obj"]
        acc["rel_w0a"].append(wt(rws[0][:h_dim]))
        acc["rel_w0b"].append(wt(rws[0][h_dim:2 * h_dim]))
        acc["rel_w0c"].append(wt(rws[0][2 * h_dim:]))
        acc["rel_w1"].append(wt(rws[1]))
        acc["rel_w2"].append(wt(rws[2]))
        acc["rel_b0"].append(col(rbs[0]))
        acc["rel_b1"].append(col(rbs[1]))
        acc["rel_b2"].append(col(rbs[2]))
        acc["obj_w0x"].append(wt(ows[0][:h_dim]))
        acc["obj_w0a"].append(wt(ows[0][h_dim:]))
        acc["obj_w1"].append(wt(ows[1]))
        acc["obj_w2"].append(wt(ows[2]))
        acc["obj_b0"].append(col(obs[0]))
        acc["obj_b1"].append(col(obs[1]))
        acc["obj_b2"].append(col(obs[2]))
    for k, v in acc.items():
        p[k] = jnp.stack(v, axis=0)

    # W head: first layer split into per-edge-embedding chunks (order: encoded e,
    # then e after each ResIN layer), rest transposed.
    wws, wbs = raw["ec_w"]
    n_chunks = wws[0].shape[0] // e_dim
    p["whead_w0"] = jnp.stack(
        [wt(wws[0][i * e_dim:(i + 1) * e_dim]) for i in range(n_chunks)], axis=0)
    p["whead_w1"], p["whead_w2"] = wt(wws[1]), wt(wws[2])
    p["whead_b0"], p["whead_b1"], p["whead_b2"] = col(wbs[0]), col(wbs[1]), col(wbs[2])

    # fused beta + cluster head (block-diagonal); latent_norm folded into cluster
    (bw, bb), (cw, cb) = raw["p_beta"], raw["p_cluster"]
    ln = jnp.asarray(raw["latent_norm"], jnp.float32).reshape(())
    hid = bw[1].shape[0]
    h_outdim = cw[2].shape[1]
    w0 = jnp.concatenate([bw[0], cw[0]], axis=1)                        # (h_dim, 2*hid)
    w1 = jnp.zeros((2 * hid, 2 * hid), jnp.float32)
    w1 = w1.at[:hid, :hid].set(bw[1]).at[hid:, hid:].set(cw[1])
    w2 = jnp.zeros((2 * hid, 1 + h_outdim), jnp.float32)
    w2 = w2.at[:hid, 0:1].set(bw[2]).at[hid:, 1:].set(cw[2] * ln)
    p["bc_w0"], p["bc_w1"], p["bc_w2"] = wt(w0), wt(w1), wt(w2)
    p["bc_b0"] = col(jnp.concatenate([bb[0].reshape(-1), cb[0].reshape(-1)]))
    p["bc_b1"] = col(jnp.concatenate([bb[1].reshape(-1), cb[1].reshape(-1)]))
    p["bc_b2"] = col(jnp.concatenate([bb[2].reshape(-1), cb[2].reshape(-1) * ln]))
    return p


# ---------------------------------------------------------------------------
if __name__ == "__main__":
    node_indim, edge_indim = 7, 4
    h_dim, e_dim, h_outdim, hidden_dim = 5, 4, 2, 40
    n_nodes, n_edges = 32, 64

    key = jax.random.PRNGKey(0)
    k_x, k_e, k_src, k_tgt, k_params = jax.random.split(key, 5)
    x = jax.random.normal(k_x, (n_nodes, node_indim), jnp.float32)
    edge_attr = jax.random.normal(k_e, (n_edges, edge_indim), jnp.float32)
    src = jax.random.randint(k_src, (n_edges,), 0, n_nodes, dtype=jnp.int32)
    tgt = jax.random.randint(k_tgt, (n_edges,), 0, n_nodes, dtype=jnp.int32)
    edge_index = jnp.stack([src, tgt], axis=0)

    raw_params = init_graph_tcn_params(k_params, node_indim, edge_indim,
                                       h_dim=h_dim, e_dim=e_dim, h_outdim=h_outdim,
                                       hidden_dim=hidden_dim, L_ec=3, L_hc=3)
    params = prepare_params(raw_params, h_dim=h_dim, e_dim=e_dim)

    fwd = jax.jit(partial(graph_tcn_forward, ec_threshold=0.5,
                          alpha_ec=0.5, alpha_hc=0.5))
    out = fwd(params, x, edge_index, edge_attr)
    jax.block_until_ready(out)

    assert out["H"].shape == (n_nodes, h_outdim)
    assert out["B"].shape == (n_nodes,)
    assert out["W"].shape == (n_edges,)
    assert out["ec_edge_mask"].shape == (n_edges,)
    assert out["ec_hit_mask"].shape == (n_nodes,)
    assert bool(jnp.all(out["B"] > 0.0)) and bool(jnp.all(out["B"] < 1.0))
    assert not bool(jnp.isnan(out["H"]).any())
    assert not bool(jnp.isnan(out["B"]).any())
    assert not bool(jnp.isnan(out["W"]).any())
    print("KERNEL_OK")
</pallas_src>

<mosaic_0001>
module attributes {stable_mosaic.version = 11 : i64} {
  func.func @kernel(%arg0: memref<1x64xi32, #tpu.memory_space<vmem>>, %arg1: memref<1x64xi32, #tpu.memory_space<vmem>>, %arg2: memref<64x1xi32, #tpu.memory_space<vmem>>, %arg3: memref<7x32xf32, #tpu.memory_space<vmem>>, %arg4: memref<4x64xf32, #tpu.memory_space<vmem>>, %arg5: memref<80x1xf32, #tpu.memory_space<vmem>>, %arg6: memref<80x1xf32, #tpu.memory_space<vmem>>, %arg7: memref<3x1xf32, #tpu.memory_space<vmem>>, %arg8: memref<80x5xbf16, #tpu.memory_space<vmem>>, %arg9: memref<80x80xbf16, #tpu.memory_space<vmem>>, %arg10: memref<3x80xbf16, #tpu.memory_space<vmem>>, %arg11: memref<40x4xbf16, #tpu.memory_space<vmem>>, %arg12: memref<4x40xbf16, #tpu.memory_space<vmem>>, %arg13: memref<40x7xbf16, #tpu.memory_space<vmem>>, %arg14: memref<5x40xbf16, #tpu.memory_space<vmem>>, %arg15: memref<40x4xbf16, #tpu.memory_space<vmem>>, %arg16: memref<4x40xbf16, #tpu.memory_space<vmem>>, %arg17: memref<40x7xbf16, #tpu.memory_space<vmem>>, %arg18: memref<40x40xbf16, #tpu.memory_space<vmem>>, %arg19: memref<5x40xbf16, #tpu.memory_space<vmem>>, %arg20: memref<6x40x1xf32, #tpu.memory_space<vmem>>, %arg21: memref<6x40x1xf32, #tpu.memory_space<vmem>>, %arg22: memref<6x5x1xf32, #tpu.memory_space<vmem>>, %arg23: memref<6x40x4xbf16, #tpu.memory_space<vmem>>, %arg24: memref<6x40x5xbf16, #tpu.memory_space<vmem>>, %arg25: memref<6x40x40xbf16, #tpu.memory_space<vmem>>, %arg26: memref<6x5x40xbf16, #tpu.memory_space<vmem>>, %arg27: memref<6x40x1xf32, #tpu.memory_space<vmem>>, %arg28: memref<6x40x1xf32, #tpu.memory_space<vmem>>, %arg29: memref<6x4x1xf32, #tpu.memory_space<vmem>>, %arg30: memref<6x40x5xbf16, #tpu.memory_space<vmem>>, %arg31: memref<6x40x5xbf16, #tpu.memory_space<vmem>>, %arg32: memref<6x40x4xbf16, #tpu.memory_space<vmem>>, %arg33: memref<6x40x40xbf16, #tpu.memory_space<vmem>>, %arg34: memref<6x4x40xbf16, #tpu.memory_space<vmem>>, %arg35: memref<40x1xf32, #tpu.memory_space<vmem>>, %arg36: memref<40x1xf32, #tpu.memory_space<vmem>>, %arg37: memref<1x1xf32, #tpu.memory_space<vmem>>, %arg38: memref<4x40x4xbf16, #tpu.memory_space<vmem>>, %arg39: memref<40x40xbf16, #tpu.memory_space<vmem>>, %arg40: memref<1x40xbf16, #tpu.memory_space<vmem>>, %arg41: memref<1x64xf32, #tpu.memory_space<vmem>>, %arg42: memref<1x32xf32, #tpu.memory_space<vmem>>, %arg43: memref<2x32xf32, #tpu.memory_space<vmem>>) attributes {dimension_semantics = [], scalar_prefetch = 0 : i64, scratch_operands = 0 : i64, tpu.core_type = #tpu.core_type<tc>} {
    %0 = tpu.iota {dimensions = array<i32: 0>} : vector<32x64xi32>
    %c0 = arith.constant 0 : index
    %c0_0 = arith.constant 0 : index
    %1 = vector.load %arg0[%c0, %c0_0] : memref<1x64xi32, #tpu.memory_space<vmem>>, vector<1x64xi32>
    %2 = vector.broadcast %1 : vector<1x64xi32> to vector<32x64xi32>
    %3 = arith.cmpi eq, %0, %2 : vector<32x64xi32>
    %4 = arith.extui %3 : vector<32x64xi1> to vector<32x64xi32>
    %5 = arith.sitofp %4 : vector<32x64xi32> to vector<32x64xf32>
    %6 = arith.truncf %5 : vector<32x64xf32> to vector<32x64xbf16>
    %c0_1 = arith.constant 0 : index
    %c0_2 = arith.constant 0 : index
    %7 = vector.load %arg1[%c0_1, %c0_2] : memref<1x64xi32, #tpu.memory_space<vmem>>, vector<1x64xi32>
    %8 = vector.broadcast %7 : vector<1x64xi32> to vector<32x64xi32>
    %9 = arith.cmpi eq, %0, %8 : vector<32x64xi32>
    %10 = arith.extui %9 : vector<32x64xi1> to vector<32x64xi32>
    %11 = arith.sitofp %10 : vector<32x64xi32> to vector<32x64xf32>
    %12 = arith.truncf %11 : vector<32x64xf32> to vector<32x64xbf16>
    %13 = tpu.iota {dimensions = array<i32: 1>} : vector<64x32xi32>
    %c0_3 = arith.constant 0 : index
    %c0_4 = arith.constant 0 : index
    %14 = vector.load %arg2[%c0_3, %c0_4] : memref<64x1xi32, #tpu.memory_space<vmem>>, vector<64x1xi32>
    %15 = vector.broadcast %14 : vector<64x1xi32> to vector<64x32xi32>
    %16 = arith.cmpi eq, %13, %15 : vector<64x32xi32>
    %17 = arith.extui %16 : vector<64x32xi1> to vector<64x32xi32>
    %18 = arith.sitofp %17 : vector<64x32xi32> to vector<64x32xf32>
    %19 = arith.truncf %18 : vector<64x32xf32> to vector<64x32xbf16>
    %c0_5 = arith.constant 0 : index
    %c0_6 = arith.constant 0 : index
    %20 = vector.load %arg3[%c0_5, %c0_6] : memref<7x32xf32, #tpu.memory_space<vmem>>, vector<7x32xf32>
    %c0_7 = arith.constant 0 : index
    %c0_8 = arith.constant 0 : index
    %21 = vector.load %arg13[%c0_7, %c0_8] : memref<40x7xbf16, #tpu.memory_space<vmem>>, vector<40x7xbf16>
    %22 = arith.truncf %20 : vector<7x32xf32> to vector<7x32xbf16>
    %cst = arith.constant dense<0.000000e+00> : vector<40x32xf32>
    %23 = tpu.matmul %21, %22, %cst {dimension_numbers = #tpu.dot_dimension_numbers<[1], [0], [0], [1], [0, 0, 1, 1], [], []>} : vector<40x7xbf16>, vector<7x32xbf16>, vector<40x32xf32> -> vector<40x32xf32>
    %cst_9 = arith.constant 0.000000e+00 : f32
    %24 = vector.broadcast %cst_9 : f32 to vector<40x32xf32>
    %25 = arith.maximumf %23, %24 : vector<40x32xf32>
    %c0_10 = arith.constant 0 : index
    %c0_11 = arith.constant 0 : index
    %26 = vector.load %arg14[%c0_10, %c0_11] : memref<5x40xbf16, #tpu.memory_space<vmem>>, vector<5x40xbf16>
    %27 = arith.truncf %25 : vector<40x32xf32> to vector<40x32xbf16>
    %cst_12 = arith.constant dense<0.000000e+00> : vector<5x32xf32>
    %28 = tpu.matmul %26, %27, %cst_12 {dimension_numbers = #tpu.dot_dimension_numbers<[1], [0], [0], [1], [0, 0, 1, 1], [], []>} : vector<5x40xbf16>, vector<40x32xbf16>, vector<5x32xf32> -> vector<5x32xf32>
    %cst_13 = arith.constant 0.000000e+00 : f32
    %29 = vector.broadcast %cst_13 : f32 to vector<5x32xf32>
    %30 = arith.maximumf %28, %29 : vector<5x32xf32>
    %c0_14 = arith.constant 0 : index
    %c0_15 = arith.constant 0 : index
    %31 = vector.load %arg4[%c0_14, %c0_15] : memref<4x64xf32, #tpu.memory_space<vmem>>, vector<4x64xf32>
    %c0_16 = arith.constant 0 : index
    %c0_17 = arith.constant 0 : index
    %32 = vector.load %arg11[%c0_16, %c0_17] : memref<40x4xbf16, #tpu.memory_space<vmem>>, vector<40x4xbf16>
    %33 = arith.truncf %31 : vector<4x64xf32> to vector<4x64xbf16>
    %cst_18 = arith.constant dense<0.000000e+00> : vector<40x64xf32>
    %34 = tpu.matmul %32, %33, %cst_18 {dimension_numbers = #tpu.dot_dimension_numbers<[1], [0], [0], [1], [0, 0, 1, 1], [], []>} : vector<40x4xbf16>, vector<4x64xbf16>, vector<40x64xf32> -> vector<40x64xf32>
    %cst_19 = arith.constant 0.000000e+00 : f32
    %35 = vector.broadcast %cst_19 : f32 to vector<40x64xf32>
    %36 = arith.maximumf %34, %35 : vector<40x64xf32>
    %c0_20 = arith.constant 0 : index
    %c0_21 = arith.constant 0 : index
    %37 = vector.load %arg12[%c0_20, %c0_21] : memref<4x40xbf16, #tpu.memory_space<vmem>>, vector<4x40xbf16>
    %38 = arith.truncf %36 : vector<40x64xf32> to vector<40x64xbf16>
    %cst_22 = arith.constant dense<0.000000e+00> : vector<4x64xf32>
    %39 = tpu.matmul %37, %38, %cst_22 {dimension_numbers = #tpu.dot_dimension_numbers<[1], [0], [0], [1], [0, 0, 1, 1], [], []>} : vector<4x40xbf16>, vector<40x64xbf16>, vector<4x64xf32> -> vector<4x64xf32>
    %cst_23 = arith.constant 0.000000e+00 : f32
    %40 = vector.broadcast %cst_23 : f32 to vector<4x64xf32>
    %41 = arith.maximumf %39, %40 : vector<4x64xf32>
    %c0_24 = arith.constant 0 : index
    %c0_25 = arith.constant 0 : index
    %c0_26 = arith.constant 0 : index
    %42 = vector.load %arg38[%c0_24, %c0_25, %c0_26] : memref<4x40x4xbf16, #tpu.memory_space<vmem>>, vector<1x40x4xbf16>
    %43 = vector.shape_cast %42 : vector<1x40x4xbf16> to vector<40x4xbf16>
    %44 = arith.truncf %41 : vector<4x64xf32> to vector<4x64xbf16>
    %cst_27 = arith.constant dense<0.000000e+00> : vector<40x64xf32>
    %45 = tpu.matmul %43, %44, %cst_27 {dimension_numbers = #tpu.dot_dimension_numbers<[1], [0], [0], [1], [0, 0, 1, 1], [], []>} : vector<40x4xbf16>, vector<4x64xbf16>, vector<40x64xf32> -> vector<40x64xf32>
    %46 = arith.truncf %30 : vector<5x32xf32> to vector<5x32xbf16>
    %cst_28 = arith.constant dense<0.000000e+00> : vector<5x64xf32>
    %47 = tpu.matmul %46, %6, %cst_28 {dimension_numbers = #tpu.dot_dimension_numbers<[1], [0], [0], [1], [0, 0, 1, 1], [], []>} : vector<5x32xbf16>, vector<32x64xbf16>, vector<5x64xf32> -> vector<5x64xf32>
    %cst_29 = arith.constant dense<0.000000e+00> : vector<5x64xf32>
    %48 = tpu.matmul %46, %12, %cst_29 {dimension_numbers = #tpu.dot_dimension_numbers<[1], [0], [0], [1], [0, 0, 1, 1], [], []>} : vector<5x32xbf16>, vector<32x64xbf16>, vector<5x64xf32> -> vector<5x64xf32>
    %c0_30 = arith.constant 0 : index
    %c0_31 = arith.constant 0 : index
    %c0_32 = arith.constant 0 : index
    %49 = vector.load %arg30[%c0_30, %c0_31, %c0_32] : memref<6x40x5xbf16, #tpu.memory_space<vmem>>, vector<1x40x5xbf16>
    %50 = vector.shape_cast %49 : vector<1x40x5xbf16> to vector<40x5xbf16>
    %51 = arith.truncf %47 : vector<5x64xf32> to vector<5x64xbf16>
    %cst_33 = arith.constant dense<0.000000e+00> : vector<40x64xf32>
    %52 = tpu.matmul %50, %51, %cst_33 {dimension_numbers = #tpu.dot_dimension_numbers<[1], [0], [0], [1], [0, 0, 1, 1], [], []>} : vector<40x5xbf16>, vector<5x64xbf16>, vector<40x64xf32> -> vector<40x64xf32>
    %c0_34 = arith.constant 0 : index
    %c0_35 = arith.constant 0 : index
    %c0_36 = arith.constant 0 : index
    %53 = vector.load %arg31[%c0_34, %c0_35, %c0_36] : memref<6x40x5xbf16, #tpu.memory_space<vmem>>, vector<1x40x5xbf16>
    %54 = vector.shape_cast %53 : vector<1x40x5xbf16> to vector<40x5xbf16>
    %55 = arith.truncf %48 : vector<5x64xf32> to vector<5x64xbf16>
    %cst_37 = arith.constant dense<0.000000e+00> : vector<40x64xf32>
    %56 = tpu.matmul %54, %55, %cst_37 {dimension_numbers = #tpu.dot_dimension_numbers<[1], [0], [0], [1], [0, 0, 1, 1], [], []>} : vector<40x5xbf16>, vector<5x64xbf16>, vector<40x64xf32> -> vector<40x64xf32>
    %57 = arith.addf %52, %56 : vector<40x64xf32>
    %c0_38 = arith.constant 0 : index
    %c0_39 = arith.constant 0 : index
    %c0_40 = arith.constant 0 : index
    %58 = vector.load %arg32[%c0_38, %c0_39, %c0_40] : memref<6x40x4xbf16, #tpu.memory_space<vmem>>, vector<1x40x4xbf16>
    %59 = vector.shape_cast %58 : vector<1x40x4xbf16> to vector<40x4xbf16>
    %60 = arith.truncf %41 : vector<4x64xf32> to vector<4x64xbf16>
    %cst_41 = arith.constant dense<0.000000e+00> : vector<40x64xf32>
    %61 = tpu.matmul %59, %60, %cst_41 {dimension_numbers = #tpu.dot_dimension_numbers<[1], [0], [0], [1], [0, 0, 1, 1], [], []>} : vector<40x4xbf16>, vector<4x64xbf16>, vector<40x64xf32> -> vector<40x64xf32>
    %62 = arith.addf %57, %61 : vector<40x64xf32>
    %c0_42 = arith.constant 0 : index
    %c0_43 = arith.constant 0 : index
    %c0_44 = arith.constant 0 : index
    %63 = vector.load %arg27[%c0_42, %c0_43, %c0_44] : memref<6x40x1xf32, #tpu.memory_space<vmem>>, vector<1x40x1xf32>
    %64 = vector.shape_cast %63 : vector<1x40x1xf32> to vector<40x1xf32>
    %65 = vector.broadcast %64 : vector<40x1xf32> to vector<40x64xf32>
    %66 = arith.addf %62, %65 : vector<40x64xf32>
    %cst_45 = arith.constant 0.000000e+00 : f32
    %67 = vector.broadcast %cst_45 : f32 to vector<40x64xf32>
    %68 = arith.maximumf %66, %67 : vector<40x64xf32>
    %c0_46 = arith.constant 0 : index
    %c0_47 = arith.constant 0 : index
    %c0_48 = arith.constant 0 : index
    %69 = vector.load %arg33[%c0_46, %c0_47, %c0_48] : memref<6x40x40xbf16, #tpu.memory_space<vmem>>, vector<1x40x40xbf16>
    %70 = vector.shape_cast %69 : vector<1x40x40xbf16> to vector<40x40xbf16>
    %71 = arith.truncf %68 : vector<40x64xf32> to vector<40x64xbf16>
    %cst_49 = arith.constant dense<0.000000e+00> : vector<40x64xf32>
    %72 = tpu.matmul %70, %71, %cst_49 {dimension_numbers = #tpu.dot_dimension_numbers<[1], [0], [0], [1], [0, 0, 1, 1], [], []>} : vector<40x40xbf16>, vector<40x64xbf16>, vector<40x64xf32> -> vector<40x64xf32>
    %c0_50 = arith.constant 0 : index
    %c0_51 = arith.constant 0 : index
    %c0_52 = arith.constant 0 : index
    %73 = vector.load %arg28[%c0_50, %c0_51, %c0_52] : memref<6x40x1xf32, #tpu.memory_space<vmem>>, vector<1x40x1xf32>
    %74 = vector.shape_cast %73 : vector<1x40x1xf32> to vector<40x1xf32>
    %75 = vector.broadcast %74 : vector<40x1xf32> to vector<40x64xf32>
    %76 = arith.addf %72, %75 : vector<40x64xf32>
    %cst_53 = arith.constant 0.000000e+00 : f32
    %77 = vector.broadcast %cst_53 : f32 to vector<40x64xf32>
    %78 = arith.maximumf %76, %77 : vector<40x64xf32>
    %c0_54 = arith.constant 0 : index
    %c0_55 = arith.constant 0 : index
    %c0_56 = arith.constant 0 : index
    %79 = vector.load %arg34[%c0_54, %c0_55, %c0_56] : memref<6x4x40xbf16, #tpu.memory_space<vmem>>, vector<1x4x40xbf16>
    %80 = vector.shape_cast %79 : vector<1x4x40xbf16> to vector<4x40xbf16>
    %81 = arith.truncf %78 : vector<40x64xf32> to vector<40x64xbf16>
    %cst_57 = arith.constant dense<0.000000e+00> : vector<4x64xf32>
    %82 = tpu.matmul %80, %81, %cst_57 {dimension_numbers = #tpu.dot_dimension_numbers<[1], [0], [0], [1], [0, 0, 1, 1], [], []>} : vector<4x40xbf16>, vector<40x64xbf16>, vector<4x64xf32> -> vector<4x64xf32>
    %c0_58 = arith.constant 0 : index
    %c0_59 = arith.constant 0 : index
    %c0_60 = arith.constant 0 : index
    %83 = vector.load %arg29[%c0_58, %c0_59, %c0_60] : memref<6x4x1xf32, #tpu.memory_space<vmem>>, vector<1x4x1xf32>
    %84 = vector.shape_cast %83 : vector<1x4x1xf32> to vector<4x1xf32>
    %85 = vector.broadcast %84 : vector<4x1xf32> to vector<4x64xf32>
    %86 = arith.addf %82, %85 : vector<4x64xf32>
    %87 = arith.truncf %86 : vector<4x64xf32> to vector<4x64xbf16>
    %cst_61 = arith.constant dense<0.000000e+00> : vector<4x32xf32>
    %88 = tpu.matmul %87, %19, %cst_61 {dimension_numbers = #tpu.dot_dimension_numbers<[1], [0], [0], [1], [0, 0, 1, 1], [], []>} : vector<4x64xbf16>, vector<64x32xbf16>, vector<4x32xf32> -> vector<4x32xf32>
    %c0_62 = arith.constant 0 : index
    %c0_63 = arith.constant 0 : index
    %c0_64 = arith.constant 0 : index
    %89 = vector.load %arg24[%c0_62, %c0_63, %c0_64] : memref<6x40x5xbf16, #tpu.memory_space<vmem>>, vector<1x40x5xbf16>
    %90 = vector.shape_cast %89 : vector<1x40x5xbf16> to vector<40x5xbf16>
    %cst_65 = arith.constant dense<0.000000e+00> : vector<40x32xf32>
    %91 = tpu.matmul %90, %46, %cst_65 {dimension_numbers = #tpu.dot_dimension_numbers<[1], [0], [0], [1], [0, 0, 1, 1], [], []>} : vector<40x5xbf16>, vector<5x32xbf16>, vector<40x32xf32> -> vector<40x32xf32>
    %c0_66 = arith.constant 0 : index
    %c0_67 = arith.constant 0 : index
    %c0_68 = arith.constant 0 : index
    %92 = vector.load %arg23[%c0_66, %c0_67, %c0_68] : memref<6x40x4xbf16, #tpu.memory_space<vmem>>, vector<1x40x4xbf16>
    %93 = vector.shape_cast %92 : vector<1x40x4xbf16> to vector<40x4xbf16>
    %94 = arith.truncf %88 : vector<4x32xf32> to vector<4x32xbf16>
    %cst_69 = arith.constant dense<0.000000e+00> : vector<40x32xf32>
    %95 = tpu.matmul %93, %94, %cst_69 {dimension_numbers = #tpu.dot_dimension_numbers<[1], [0], [0], [1], [0, 0, 1, 1], [], []>} : vector<40x4xbf16>, vector<4x32xbf16>, vector<40x32xf32> -> vector<40x32xf32>
    %96 = arith.addf %91, %95 : vector<40x32xf32>
    %c0_70 = arith.constant 0 : index
    %c0_71 = arith.constant 0 : index
    %c0_72 = arith.constant 0 : index
    %97 = vector.load %arg20[%c0_70, %c0_71, %c0_72] : memref<6x40x1xf32, #tpu.memory_space<vmem>>, vector<1x40x1xf32>
    %98 = vector.shape_cast %97 : vector<1x40x1xf32> to vector<40x1xf32>
    %99 = vector.broadcast %98 : vector<40x1xf32> to vector<40x32xf32>
    %100 = arith.addf %96, %99 : vector<40x32xf32>
    %cst_73 = arith.constant 0.000000e+00 : f32
    %101 = vector.broadcast %cst_73 : f32 to vector<40x32xf32>
    %102 = arith.maximumf %100, %101 : vector<40x32xf32>
    %c0_74 = arith.constant 0 : index
    %c0_75 = arith.constant 0 : index
    %c0_76 = arith.constant 0 : index
    %103 = vector.load %arg25[%c0_74, %c0_75, %c0_76] : memref<6x40x40xbf16, #tpu.memory_space<vmem>>, vector<1x40x40xbf16>
    %104 = vector.shape_cast %103 : vector<1x40x40xbf16> to vector<40x40xbf16>
    %105 = arith.truncf %102 : vector<40x32xf32> to vector<40x32xbf16>
    %cst_77 = arith.constant dense<0.000000e+00> : vector<40x32xf32>
    %106 = tpu.matmul %104, %105, %cst_77 {dimension_numbers = #tpu.dot_dimension_numbers<[1], [0], [0], [1], [0, 0, 1, 1], [], []>} : vector<40x40xbf16>, vector<40x32xbf16>, vector<40x32xf32> -> vector<40x32xf32>
    %c0_78 = arith.constant 0 : index
    %c0_79 = arith.constant 0 : index
    %c0_80 = arith.constant 0 : index
    %107 = vector.load %arg21[%c0_78, %c0_79, %c0_80] : memref<6x40x1xf32, #tpu.memory_space<vmem>>, vector<1x40x1xf32>
    %108 = vector.shape_cast %107 : vector<1x40x1xf32> to vector<40x1xf32>
    %109 = vector.broadcast %108 : vector<40x1xf32> to vector<40x32xf32>
    %110 = arith.addf %106, %109 : vector<40x32xf32>
    %cst_81 = arith.constant 0.000000e+00 : f32
    %111 = vector.broadcast %cst_81 : f32 to vector<40x32xf32>
    %112 = arith.maximumf %110, %111 : vector<40x32xf32>
    %c0_82 = arith.constant 0 : index
    %c0_83 = arith.constant 0 : index
    %c0_84 = arith.constant 0 : index
    %113 = vector.load %arg26[%c0_82, %c0_83, %c0_84] : memref<6x5x40xbf16, #tpu.memory_space<vmem>>, vector<1x5x40xbf16>
    %114 = vector.shape_cast %113 : vector<1x5x40xbf16> to vector<5x40xbf16>
    %115 = arith.truncf %112 : vector<40x32xf32> to vector<40x32xbf16>
    %cst_85 = arith.constant dense<0.000000e+00> : vector<5x32xf32>
    %116 = tpu.matmul %114, %115, %cst_85 {dimension_numbers = #tpu.dot_dimension_numbers<[1], [0], [0], [1], [0, 0, 1, 1], [], []>} : vector<5x40xbf16>, vector<40x32xbf16>, vector<5x32xf32> -> vector<5x32xf32>
    %c0_86 = arith.constant 0 : index
    %c0_87 = arith.constant 0 : index
    %c0_88 = arith.constant 0 : index
    %117 = vector.load %arg22[%c0_86, %c0_87, %c0_88] : memref<6x5x1xf32, #tpu.memory_space<vmem>>, vector<1x5x1xf32>
    %118 = vector.shape_cast %117 : vector<1x5x1xf32> to vector<5x1xf32>
    %119 = vector.broadcast %118 : vector<5x1xf32> to vector<5x32xf32>
    %120 = arith.addf %116, %119 : vector<5x32xf32>
    %cst_89 = arith.constant 5.000000e-01 : f32
    %121 = vector.broadcast %cst_89 : f32 to vector<5x32xf32>
    %122 = arith.mulf %121, %30 : vector<5x32xf32>
    %cst_90 = arith.constant 0.000000e+00 : f32
    %123 = vector.broadcast %cst_90 : f32 to vector<5x32xf32>
    %124 = arith.maximumf %120, %123 : vector<5x32xf32>
    %cst_91 = arith.constant 5.000000e-01 : f32
    %125 = vector.broadcast %cst_91 : f32 to vector<5x32xf32>
    %126 = arith.mulf %125, %124 : vector<5x32xf32>
    %127 = arith.addf %122, %126 : vector<5x32xf32>
    %cst_92 = arith.constant 5.000000e-01 : f32
    %128 = vector.broadcast %cst_92 : f32 to vector<4x64xf32>
    %129 = arith.mulf %128, %41 : vector<4x64xf32>
    %cst_93 = arith.constant 0.000000e+00 : f32
    %130 = vector.broadcast %cst_93 : f32 to vector<4x64xf32>
    %131 = arith.maximumf %86, %130 : vector<4x64xf32>
    %cst_94 = arith.constant 5.000000e-01 : f32
    %132 = vector.broadcast %cst_94 : f32 to vector<4x64xf32>
    %133 = arith.mulf %132, %131 : vector<4x64xf32>
    %134 = arith.addf %129, %133 : vector<4x64xf32>
    %c1 = arith.constant 1 : index
    %c0_95 = arith.constant 0 : index
    %c0_96 = arith.constant 0 : index
    %135 = vector.load %arg38[%c1, %c0_95, %c0_96] : memref<4x40x4xbf16, #tpu.memory_space<vmem>>, vector<1x40x4xbf16>
    %136 = vector.shape_cast %135 : vector<1x40x4xbf16> to vector<40x4xbf16>
    %137 = arith.truncf %134 : vector<4x64xf32> to vector<4x64xbf16>
    %cst_97 = arith.constant dense<0.000000e+00> : vector<40x64xf32>
    %138 = tpu.matmul %136, %137, %cst_97 {dimension_numbers = #tpu.dot_dimension_numbers<[1], [0], [0], [1], [0, 0, 1, 1], [], []>} : vector<40x4xbf16>, vector<4x64xbf16>, vector<40x64xf32> -> vector<40x64xf32>
    %139 = arith.addf %45, %138 : vector<40x64xf32>
    %140 = arith.truncf %127 : vector<5x32xf32> to vector<5x32xbf16>
    %cst_98 = arith.constant dense<0.000000e+00> : vector<5x64xf32>
    %141 = tpu.matmul %140, %6, %cst_98 {dimension_numbers = #tpu.dot_dimension_numbers<[1], [0], [0], [1], [0, 0, 1, 1], [], []>} : vector<5x32xbf16>, vector<32x64xbf16>, vector<5x64xf32> -> vector<5x64xf32>
    %cst_99 = arith.constant dense<0.000000e+00> : vector<5x64xf32>
    %142 = tpu.matmul %140, %12, %cst_99 {dimension_numbers = #tpu.dot_dimension_numbers<[1], [0], [0], [1], [0, 0, 1, 1], [], []>} : vector<5x32xbf16>, vector<32x64xbf16>, vector<5x64xf32> -> vector<5x64xf32>
    %c1_100 = arith.constant 1 : index
    %c0_101 = arith.constant 0 : index
    %c0_102 = arith.constant 0 : index
    %143 = vector.load %arg30[%c1_100, %c0_101, %c0_102] : memref<6x40x5xbf16, #tpu.memory_space<vmem>>, vector<1x40x5xbf16>
    %144 = vector.shape_cast %143 : vector<1x40x5xbf16> to vector<40x5xbf16>
    %145 = arith.truncf %141 : vector<5x64xf32> to vector<5x64xbf16>
    %cst_103 = arith.constant dense<0.000000e+00> : vector<40x64xf32>
    %146 = tpu.matmul %144, %145, %cst_103 {dimension_numbers = #tpu.dot_dimension_numbers<[1], [0], [0], [1], [0, 0, 1, 1], [], []>} : vector<40x5xbf16>, vector<5x64xbf16>, vector<40x64xf32> -> vector<40x64xf32>
    %c1_104 = arith.constant 1 : index
    %c0_105 = arith.constant 0 : index
    %c0_106 = arith.constant 0 : index
    %147 = vector.load %arg31[%c1_104, %c0_105, %c0_106] : memref<6x40x5xbf16, #tpu.memory_space<vmem>>, vector<1x40x5xbf16>
    %148 = vector.shape_cast %147 : vector<1x40x5xbf16> to vector<40x5xbf16>
    %149 = arith.truncf %142 : vector<5x64xf32> to vector<5x64xbf16>
    %cst_107 = arith.constant dense<0.000000e+00> : vector<40x64xf32>
    %150 = tpu.matmul %148, %149, %cst_107 {dimension_numbers = #tpu.dot_dimension_numbers<[1], [0], [0], [1], [0, 0, 1, 1], [], []>} : vector<40x5xbf16>, vector<5x64xbf16>, vector<40x64xf32> -> vector<40x64xf32>
    %151 = arith.addf %146, %150 : vector<40x64xf32>
    %c1_108 = arith.constant 1 : index
    %c0_109 = arith.constant 0 : index
    %c0_110 = arith.constant 0 : index
    %152 = vector.load %arg32[%c1_108, %c0_109, %c0_110] : memref<6x40x4xbf16, #tpu.memory_space<vmem>>, vector<1x40x4xbf16>
    %153 = vector.shape_cast %152 : vector<1x40x4xbf16> to vector<40x4xbf16>
    %154 = arith.truncf %134 : vector<4x64xf32> to vector<4x64xbf16>
    %cst_111 = arith.constant dense<0.000000e+00> : vector<40x64xf32>
    %155 = tpu.matmul %153, %154, %cst_111 {dimension_numbers = #tpu.dot_dimension_numbers<[1], [0], [0], [1], [0, 0, 1, 1], [], []>} : vector<40x4xbf16>, vector<4x64xbf16>, vector<40x64xf32> -> vector<40x64xf32>
    %156 = arith.addf %151, %155 : vector<40x64xf32>
    %c1_112 = arith.constant 1 : index
    %c0_113 = arith.constant 0 : index
    %c0_114 = arith.constant 0 : index
    %157 = vector.load %arg27[%c1_112, %c0_113, %c0_114] : memref<6x40x1xf32, #tpu.memory_space<vmem>>, vector<1x40x1xf32>
    %158 = vector.shape_cast %157 : vector<1x40x1xf32> to vector<40x1xf32>
    %159 = vector.broadcast %158 : vector<40x1xf32> to vector<40x64xf32>
    %160 = arith.addf %156, %159 : vector<40x64xf32>
    %cst_115 = arith.constant 0.000000e+00 : f32
    %161 = vector.broadcast %cst_115 : f32 to vector<40x64xf32>
    %162 = arith.maximumf %160, %161 : vector<40x64xf32>
    %c1_116 = arith.constant 1 : index
    %c0_117 = arith.constant 0 : index
    %c0_118 = arith.constant 0 : index
    %163 = vector.load %arg33[%c1_116, %c0_117, %c0_118] : memref<6x40x40xbf16, #tpu.memory_space<vmem>>, vector<1x40x40xbf16>
    %164 = vector.shape_cast %163 : vector<1x40x40xbf16> to vector<40x40xbf16>
    %165 = arith.truncf %162 : vector<40x64xf32> to vector<40x64xbf16>
    %cst_119 = arith.constant dense<0.000000e+00> : vector<40x64xf32>
    %166 = tpu.matmul %164, %165, %cst_119 {dimension_numbers = #tpu.dot_dimension_numbers<[1], [0], [0], [1], [0, 0, 1, 1], [], []>} : vector<40x40xbf16>, vector<40x64xbf16>, vector<40x64xf32> -> vector<40x64xf32>
    %c1_120 = arith.constant 1 : index
    %c0_121 = arith.constant 0 : index
    %c0_122 = arith.constant 0 : index
    %167 = vector.load %arg28[%c1_120, %c0_121, %c0_122] : memref<6x40x1xf32, #tpu.memory_space<vmem>>, vector<1x40x1xf32>
    %168 = vector.shape_cast %167 : vector<1x40x1xf32> to vector<40x1xf32>
    %169 = vector.broadcast %168 : vector<40x1xf32> to vector<40x64xf32>
    %170 = arith.addf %166, %169 : vector<40x64xf32>
    %cst_123 = arith.constant 0.000000e+00 : f32
    %171 = vector.broadcast %cst_123 : f32 to vector<40x64xf32>
    %172 = arith.maximumf %170, %171 : vector<40x64xf32>
    %c1_124 = arith.constant 1 : index
    %c0_125 = arith.constant 0 : index
    %c0_126 = arith.constant 0 : index
    %173 = vector.load %arg34[%c1_124, %c0_125, %c0_126] : memref<6x4x40xbf16, #tpu.memory_space<vmem>>, vector<1x4x40xbf16>
    %174 = vector.shape_cast %173 : vector<1x4x40xbf16> to vector<4x40xbf16>
    %175 = arith.truncf %172 : vector<40x64xf32> to vector<40x64xbf16>
    %cst_127 = arith.constant dense<0.000000e+00> : vector<4x64xf32>
    %176 = tpu.matmul %174, %175, %cst_127 {dimension_numbers = #tpu.dot_dimension_numbers<[1], [0], [0], [1], [0, 0, 1, 1], [], []>} : vector<4x40xbf16>, vector<40x64xbf16>, vector<4x64xf32> -> vector<4x64xf32>
    %c1_128 = arith.constant 1 : index
    %c0_129 = arith.constant 0 : index
    %c0_130 = arith.constant 0 : index
    %177 = vector.load %arg29[%c1_128, %c0_129, %c0_130] : memref<6x4x1xf32, #tpu.memory_space<vmem>>, vector<1x4x1xf32>
    %178 = vector.shape_cast %177 : vector<1x4x1xf32> to vector<4x1xf32>
    %179 = vector.broadcast %178 : vector<4x1xf32> to vector<4x64xf32>
    %180 = arith.addf %176, %179 : vector<4x64xf32>
    %181 = arith.truncf %180 : vector<4x64xf32> to vector<4x64xbf16>
    %cst_131 = arith.constant dense<0.000000e+00> : vector<4x32xf32>
    %182 = tpu.matmul %181, %19, %cst_131 {dimension_numbers = #tpu.dot_dimension_numbers<[1], [0], [0], [1], [0, 0, 1, 1], [], []>} : vector<4x64xbf16>, vector<64x32xbf16>, vector<4x32xf32> -> vector<4x32xf32>
    %c1_132 = arith.constant 1 : index
    %c0_133 = arith.constant 0 : index
    %c0_134 = arith.constant 0 : index
    %183 = vector.load %arg24[%c1_132, %c0_133, %c0_134] : memref<6x40x5xbf16, #tpu.memory_space<vmem>>, vector<1x40x5xbf16>
    %184 = vector.shape_cast %183 : vector<1x40x5xbf16> to vector<40x5xbf16>
    %cst_135 = arith.constant dense<0.000000e+00> : vector<40x32xf32>
    %185 = tpu.matmul %184, %140, %cst_135 {dimension_numbers = #tpu.dot_dimension_numbers<[1], [0], [0], [1], [0, 0, 1, 1], [], []>} : vector<40x5xbf16>, vector<5x32xbf16>, vector<40x32xf32> -> vector<40x32xf32>
    %c1_136 = arith.constant 1 : index
    %c0_137 = arith.constant 0 : index
    %c0_138 = arith.constant 0 : index
    %186 = vector.load %arg23[%c1_136, %c0_137, %c0_138] : memref<6x40x4xbf16, #tpu.memory_space<vmem>>, vector<1x40x4xbf16>
    %187 = vector.shape_cast %186 : vector<1x40x4xbf16> to vector<40x4xbf16>
    %188 = arith.truncf %182 : vector<4x32xf32> to vector<4x32xbf16>
    %cst_139 = arith.constant dense<0.000000e+00> : vector<40x32xf32>
    %189 = tpu.matmul %187, %188, %cst_139 {dimension_numbers = #tpu.dot_dimension_numbers<[1], [0], [0], [1], [0, 0, 1, 1], [], []>} : vector<40x4xbf16>, vector<4x32xbf16>, vector<40x32xf32> -> vector<40x32xf32>
    %190 = arith.addf %185, %189 : vector<40x32xf32>
    %c1_140 = arith.constant 1 : index
    %c0_141 = arith.constant 0 : index
    %c0_142 = arith.constant 0 : index
    %191 = vector.load %arg20[%c1_140, %c0_141, %c0_142] : memref<6x40x1xf32, #tpu.memory_space<vmem>>, vector<1x40x1xf32>
    %192 = vector.shape_cast %191 : vector<1x40x1xf32> to vector<40x1xf32>
    %193 = vector.broadcast %192 : vector<40x1xf32> to vector<40x32xf32>
    %194 = arith.addf %190, %193 : vector<40x32xf32>
    %cst_143 = arith.constant 0.000000e+00 : f32
    %195 = vector.broadcast %cst_143 : f32 to vector<40x32xf32>
    %196 = arith.maximumf %194, %195 : vector<40x32xf32>
    %c1_144 = arith.constant 1 : index
    %c0_145 = arith.constant 0 : index
    %c0_146 = arith.constant 0 : index
    %197 = vector.load %arg25[%c1_144, %c0_145, %c0_146] : memref<6x40x40xbf16, #tpu.memory_space<vmem>>, vector<1x40x40xbf16>
    %198 = vector.shape_cast %197 : vector<1x40x40xbf16> to vector<40x40xbf16>
    %199 = arith.truncf %196 : vector<40x32xf32> to vector<40x32xbf16>
    %cst_147 = arith.constant dense<0.000000e+00> : vector<40x32xf32>
    %200 = tpu.matmul %198, %199, %cst_147 {dimension_numbers = #tpu.dot_dimension_numbers<[1], [0], [0], [1], [0, 0, 1, 1], [], []>} : vector<40x40xbf16>, vector<40x32xbf16>, vector<40x32xf32> -> vector<40x32xf32>
    %c1_148 = arith.constant 1 : index
    %c0_149 = arith.constant 0 : index
    %c0_150 = arith.constant 0 : index
    %201 = vector.load %arg21[%c1_148, %c0_149, %c0_150] : memref<6x40x1xf32, #tpu.memory_space<vmem>>, vector<1x40x1xf32>
    %202 = vector.shape_cast %201 : vector<1x40x1xf32> to vector<40x1xf32>
    %203 = vector.broadcast %202 : vector<40x1xf32> to vector<40x32xf32>
    %204 = arith.addf %200, %203 : vector<40x32xf32>
    %cst_151 = arith.constant 0.000000e+00 : f32
    %205 = vector.broadcast %cst_151 : f32 to vector<40x32xf32>
    %206 = arith.maximumf %204, %205 : vector<40x32xf32>
    %c1_152 = arith.constant 1 : index
    %c0_153 = arith.constant 0 : index
    %c0_154 = arith.constant 0 : index
    %207 = vector.load %arg26[%c1_152, %c0_153, %c0_154] : memref<6x5x40xbf16, #tpu.memory_space<vmem>>, vector<1x5x40xbf16>
    %208 = vector.shape_cast %207 : vector<1x5x40xbf16> to vector<5x40xbf16>
    %209 = arith.truncf %206 : vector<40x32xf32> to vector<40x32xbf16>
    %cst_155 = arith.constant dense<0.000000e+00> : vector<5x32xf32>
    %210 = tpu.matmul %208, %209, %cst_155 {dimension_numbers = #tpu.dot_dimension_numbers<[1], [0], [0], [1], [0, 0, 1, 1], [], []>} : vector<5x40xbf16>, vector<40x32xbf16>, vector<5x32xf32> -> vector<5x32xf32>
    %c1_156 = arith.constant 1 : index
    %c0_157 = arith.constant 0 : index
    %c0_158 = arith.constant 0 : index
    %211 = vector.load %arg22[%c1_156, %c0_157, %c0_158] : memref<6x5x1xf32, #tpu.memory_space<vmem>>, vector<1x5x1xf32>
    %212 = vector.shape_cast %211 : vector<1x5x1xf32> to vector<5x1xf32>
    %213 = vector.broadcast %212 : vector<5x1xf32> to vector<5x32xf32>
    %214 = arith.addf %210, %213 : vector<5x32xf32>
    %cst_159 = arith.constant 5.000000e-01 : f32
    %215 = vector.broadcast %cst_159 : f32 to vector<5x32xf32>
    %216 = arith.mulf %215, %127 : vector<5x32xf32>
    %cst_160 = arith.constant 0.000000e+00 : f32
    %217 = vector.broadcast %cst_160 : f32 to vector<5x32xf32>
    %218 = arith.maximumf %214, %217 : vector<5x32xf32>
    %cst_161 = arith.constant 5.000000e-01 : f32
    %219 = vector.broadcast %cst_161 : f32 to vector<5x32xf32>
    %220 = arith.mulf %219, %218 : vector<5x32xf32>
    %221 = arith.addf %216, %220 : vector<5x32xf32>
    %cst_162 = arith.constant 5.000000e-01 : f32
    %222 = vector.broadcast %cst_162 : f32 to vector<4x64xf32>
    %223 = arith.mulf %222, %134 : vector<4x64xf32>
    %cst_163 = arith.constant 0.000000e+00 : f32
    %224 = vector.broadcast %cst_163 : f32 to vector<4x64xf32>
    %225 = arith.maximumf %180, %224 : vector<4x64xf32>
    %cst_164 = arith.constant 5.000000e-01 : f32
    %226 = vector.broadcast %cst_164 : f32 to vector<4x64xf32>
    %227 = arith.mulf %226, %225 : vector<4x64xf32>
    %228 = arith.addf %223, %227 : vector<4x64xf32>
    %c2 = arith.constant 2 : index
    %c0_165 = arith.constant 0 : index
    %c0_166 = arith.constant 0 : index
    %229 = vector.load %arg38[%c2, %c0_165, %c0_166] : memref<4x40x4xbf16, #tpu.memory_space<vmem>>, vector<1x40x4xbf16>
    %230 = vector.shape_cast %229 : vector<1x40x4xbf16> to vector<40x4xbf16>
    %231 = arith.truncf %228 : vector<4x64xf32> to vector<4x64xbf16>
    %cst_167 = arith.constant dense<0.000000e+00> : vector<40x64xf32>
    %232 = tpu.matmul %230, %231, %cst_167 {dimension_numbers = #tpu.dot_dimension_numbers<[1], [0], [0], [1], [0, 0, 1, 1], [], []>} : vector<40x4xbf16>, vector<4x64xbf16>, vector<40x64xf32> -> vector<40x64xf32>
    %233 = arith.addf %139, %232 : vector<40x64xf32>
    %234 = arith.truncf %221 : vector<5x32xf32> to vector<5x32xbf16>
    %cst_168 = arith.constant dense<0.000000e+00> : vector<5x64xf32>
    %235 = tpu.matmul %234, %6, %cst_168 {dimension_numbers = #tpu.dot_dimension_numbers<[1], [0], [0], [1], [0, 0, 1, 1], [], []>} : vector<5x32xbf16>, vector<32x64xbf16>, vector<5x64xf32> -> vector<5x64xf32>
    %cst_169 = arith.constant dense<0.000000e+00> : vector<5x64xf32>
    %236 = tpu.matmul %234, %12, %cst_169 {dimension_numbers = #tpu.dot_dimension_numbers<[1], [0], [0], [1], [0, 0, 1, 1], [], []>} : vector<5x32xbf16>, vector<32x64xbf16>, vector<5x64xf32> -> vector<5x64xf32>
    %c2_170 = arith.constant 2 : index
    %c0_171 = arith.constant 0 : index
    %c0_172 = arith.constant 0 : index
    %237 = vector.load %arg30[%c2_170, %c0_171, %c0_172] : memref<6x40x5xbf16, #tpu.memory_space<vmem>>, vector<1x40x5xbf16>
    %238 = vector.shape_cast %237 : vector<1x40x5xbf16> to vector<40x5xbf16>
    %239 = arith.truncf %235 : vector<5x64xf32> to vector<5x64xbf16>
    %cst_173 = arith.constant dense<0.000000e+00> : vector<40x64xf32>
    %240 = tpu.matmul %238, %239, %cst_173 {dimension_numbers = #tpu.dot_dimension_numbers<[1], [0], [0], [1], [0, 0, 1, 1], [], []>} : vector<40x5xbf16>, vector<5x64xbf16>, vector<40x64xf32> -> vector<40x64xf32>
    %c2_174 = arith.constant 2 : index
    %c0_175 = arith.constant 0 : index
    %c0_176 = arith.constant 0 : index
    %241 = vector.load %arg31[%c2_174, %c0_175, %c0_176] : memref<6x40x5xbf16, #tpu.memory_space<vmem>>, vector<1x40x5xbf16>
    %242 = vector.shape_cast %241 : vector<1x40x5xbf16> to vector<40x5xbf16>
    %243 = arith.truncf %236 : vector<5x64xf32> to vector<5x64xbf16>
    %cst_177 = arith.constant dense<0.000000e+00> : vector<40x64xf32>
    %244 = tpu.matmul %242, %243, %cst_177 {dimension_numbers = #tpu.dot_dimension_numbers<[1], [0], [0], [1], [0, 0, 1, 1], [], []>} : vector<40x5xbf16>, vector<5x64xbf16>, vector<40x64xf32> -> vector<40x64xf32>
    %245 = arith.addf %240, %244 : vector<40x64xf32>
    %c2_178 = arith.constant 2 : index
    %c0_179 = arith.constant 0 : index
    %c0_180 = arith.constant 0 : index
    %246 = vector.load %arg32[%c2_178, %c0_179, %c0_180] : memref<6x40x4xbf16, #tpu.memory_space<vmem>>, vector<1x40x4xbf16>
    %247 = vector.shape_cast %246 : vector<1x40x4xbf16> to vector<40x4xbf16>
    %248 = arith.truncf %228 : vector<4x64xf32> to vector<4x64xbf16>
    %cst_181 = arith.constant dense<0.000000e+00> : vector<40x64xf32>
    %249 = tpu.matmul %247, %248, %cst_181 {dimension_numbers = #tpu.dot_dimension_numbers<[1], [0], [0], [1], [0, 0, 1, 1], [], []>} : vector<40x4xbf16>, vector<4x64xbf16>, vector<40x64xf32> -> vector<40x64xf32>
    %250 = arith.addf %245, %249 : vector<40x64xf32>
    %c2_182 = arith.constant 2 : index
    %c0_183 = arith.constant 0 : index
    %c0_184 = arith.constant 0 : index
    %251 = vector.load %arg27[%c2_182, %c0_183, %c0_184] : memref<6x40x1xf32, #tpu.memory_space<vmem>>, vector<1x40x1xf32>
    %252 = vector.shape_cast %251 : vector<1x40x1xf32> to vector<40x1xf32>
    %253 = vector.broadcast %252 : vector<40x1xf32> to vector<40x64xf32>
    %254 = arith.addf %250, %253 : vector<40x64xf32>
    %cst_185 = arith.constant 0.000000e+00 : f32
    %255 = vector.broadcast %cst_185 : f32 to vector<40x64xf32>
    %256 = arith.maximumf %254, %255 : vector<40x64xf32>
    %c2_186 = arith.constant 2 : index
    %c0_187 = arith.constant 0 : index
    %c0_188 = arith.constant 0 : index
    %257 = vector.load %arg33[%c2_186, %c0_187, %c0_188] : memref<6x40x40xbf16, #tpu.memory_space<vmem>>, vector<1x40x40xbf16>
    %258 = vector.shape_cast %257 : vector<1x40x40xbf16> to vector<40x40xbf16>
    %259 = arith.truncf %256 : vector<40x64xf32> to vector<40x64xbf16>
    %cst_189 = arith.constant dense<0.000000e+00> : vector<40x64xf32>
    %260 = tpu.matmul %258, %259, %cst_189 {dimension_numbers = #tpu.dot_dimension_numbers<[1], [0], [0], [1], [0, 0, 1, 1], [], []>} : vector<40x40xbf16>, vector<40x64xbf16>, vector<40x64xf32> -> vector<40x64xf32>
    %c2_190 = arith.constant 2 : index
    %c0_191 = arith.constant 0 : index
    %c0_192 = arith.constant 0 : index
    %261 = vector.load %arg28[%c2_190, %c0_191, %c0_192] : memref<6x40x1xf32, #tpu.memory_space<vmem>>, vector<1x40x1xf32>
    %262 = vector.shape_cast %261 : vector<1x40x1xf32> to vector<40x1xf32>
    %263 = vector.broadcast %262 : vector<40x1xf32> to vector<40x64xf32>
    %264 = arith.addf %260, %263 : vector<40x64xf32>
    %cst_193 = arith.constant 0.000000e+00 : f32
    %265 = vector.broadcast %cst_193 : f32 to vector<40x64xf32>
    %266 = arith.maximumf %264, %265 : vector<40x64xf32>
    %c2_194 = arith.constant 2 : index
    %c0_195 = arith.constant 0 : index
    %c0_196 = arith.constant 0 : index
    %267 = vector.load %arg34[%c2_194, %c0_195, %c0_196] : memref<6x4x40xbf16, #tpu.memory_space<vmem>>, vector<1x4x40xbf16>
    %268 = vector.shape_cast %267 : vector<1x4x40xbf16> to vector<4x40xbf16>
    %269 = arith.truncf %266 : vector<40x64xf32> to vector<40x64xbf16>
    %cst_197 = arith.constant dense<0.000000e+00> : vector<4x64xf32>
    %270 = tpu.matmul %268, %269, %cst_197 {dimension_numbers = #tpu.dot_dimension_numbers<[1], [0], [0], [1], [0, 0, 1, 1], [], []>} : vector<4x40xbf16>, vector<40x64xbf16>, vector<4x64xf32> -> vector<4x64xf32>
    %c2_198 = arith.constant 2 : index
    %c0_199 = arith.constant 0 : index
    %c0_200 = arith.constant 0 : index
    %271 = vector.load %arg29[%c2_198, %c0_199, %c0_200] : memref<6x4x1xf32, #tpu.memory_space<vmem>>, vector<1x4x1xf32>
    %272 = vector.shape_cast %271 : vector<1x4x1xf32> to vector<4x1xf32>
    %273 = vector.broadcast %272 : vector<4x1xf32> to vector<4x64xf32>
    %274 = arith.addf %270, %273 : vector<4x64xf32>
    %cst_201 = arith.constant 5.000000e-01 : f32
    %275 = vector.broadcast %cst_201 : f32 to vector<4x64xf32>
    %276 = arith.mulf %275, %228 : vector<4x64xf32>
    %cst_202 = arith.constant 0.000000e+00 : f32
    %277 = vector.broadcast %cst_202 : f32 to vector<4x64xf32>
    %278 = arith.maximumf %274, %277 : vector<4x64xf32>
    %cst_203 = arith.constant 5.000000e-01 : f32
    %279 = vector.broadcast %cst_203 : f32 to vector<4x64xf32>
    %280 = arith.mulf %279, %278 : vector<4x64xf32>
    %281 = arith.addf %276, %280 : vector<4x64xf32>
    %c3 = arith.constant 3 : index
    %c0_204 = arith.constant 0 : index
    %c0_205 = arith.constant 0 : index
    %282 = vector.load %arg38[%c3, %c0_204, %c0_205] : memref<4x40x4xbf16, #tpu.memory_space<vmem>>, vector<1x40x4xbf16>
    %283 = vector.shape_cast %282 : vector<1x40x4xbf16> to vector<40x4xbf16>
    %284 = arith.truncf %281 : vector<4x64xf32> to vector<4x64xbf16>
    %cst_206 = arith.constant dense<0.000000e+00> : vector<40x64xf32>
    %285 = tpu.matmul %283, %284, %cst_206 {dimension_numbers = #tpu.dot_dimension_numbers<[1], [0], [0], [1], [0, 0, 1, 1], [], []>} : vector<40x4xbf16>, vector<4x64xbf16>, vector<40x64xf32> -> vector<40x64xf32>
    %286 = arith.addf %233, %285 : vector<40x64xf32>
    %c0_207 = arith.constant 0 : index
    %c0_208 = arith.constant 0 : index
    %287 = vector.load %arg35[%c0_207, %c0_208] : memref<40x1xf32, #tpu.memory_space<vmem>>, vector<40x1xf32>
    %288 = vector.broadcast %287 : vector<40x1xf32> to vector<40x64xf32>
    %289 = arith.addf %286, %288 : vector<40x64xf32>
    %cst_209 = arith.constant 0.000000e+00 : f32
    %290 = vector.broadcast %cst_209 : f32 to vector<40x64xf32>
    %291 = arith.maximumf %289, %290 : vector<40x64xf32>
    %c0_210 = arith.constant 0 : index
    %c0_211 = arith.constant 0 : index
    %292 = vector.load %arg39[%c0_210, %c0_211] : memref<40x40xbf16, #tpu.memory_space<vmem>>, vector<40x40xbf16>
    %293 = arith.truncf %291 : vector<40x64xf32> to vector<40x64xbf16>
    %cst_212 = arith.constant dense<0.000000e+00> : vector<40x64xf32>
    %294 = tpu.matmul %292, %293, %cst_212 {dimension_numbers = #tpu.dot_dimension_numbers<[1], [0], [0], [1], [0, 0, 1, 1], [], []>} : vector<40x40xbf16>, vector<40x64xbf16>, vector<40x64xf32> -> vector<40x64xf32>
    %c0_213 = arith.constant 0 : index
    %c0_214 = arith.constant 0 : index
    %295 = vector.load %arg36[%c0_213, %c0_214] : memref<40x1xf32, #tpu.memory_space<vmem>>, vector<40x1xf32>
    %296 = vector.broadcast %295 : vector<40x1xf32> to vector<40x64xf32>
    %297 = arith.addf %294, %296 : vector<40x64xf32>
    %cst_215 = arith.constant 0.000000e+00 : f32
    %298 = vector.broadcast %cst_215 : f32 to vector<40x64xf32>
    %299 = arith.maximumf %297, %298 : vector<40x64xf32>
    %c0_216 = arith.constant 0 : index
    %c0_217 = arith.constant 0 : index
    %300 = vector.load %arg40[%c0_216, %c0_217] : memref<1x40xbf16, #tpu.memory_space<vmem>>, vector<1x40xbf16>
    %301 = arith.truncf %299 : vector<40x64xf32> to vector<40x64xbf16>
    %cst_218 = arith.constant dense<0.000000e+00> : vector<1x64xf32>
    %302 = tpu.matmul %300, %301, %cst_218 {dimension_numbers = #tpu.dot_dimension_numbers<[1], [0], [0], [1], [0, 0, 1, 1], [], []>} : vector<1x40xbf16>, vector<40x64xbf16>, vector<1x64xf32> -> vector<1x64xf32>
    %c0_219 = arith.constant 0 : index
    %c0_220 = arith.constant 0 : index
    %303 = vector.load %arg37[%c0_219, %c0_220] : memref<1x1xf32, #tpu.memory_space<vmem>>, vector<1x1xf32>
    %304 = vector.broadcast %303 : vector<1x1xf32> to vector<1x64xf32>
    %305 = arith.addf %302, %304 : vector<1x64xf32>
    %cst_221 = arith.constant 0.000000e+00 : f32
    %306 = vector.broadcast %cst_221 : f32 to vector<1x64xf32>
    %307 = arith.subf %306, %305 : vector<1x64xf32>
    %308 = math.exp %307 : vector<1x64xf32>
    %cst_222 = arith.constant 1.000000e+00 : f32
    %309 = vector.broadcast %cst_222 : f32 to vector<1x64xf32>
    %310 = arith.addf %309, %308 : vector<1x64xf32>
    %cst_223 = arith.constant 1.000000e+00 : f32
    %311 = vector.broadcast %cst_223 : f32 to vector<1x64xf32>
    %312 = arith.divf %311, %310 : vector<1x64xf32>
    %c0_224 = arith.constant 0 : index
    %c0_225 = arith.constant 0 : index
    %313 = vector.load %arg41[%c0_224, %c0_225] : memref<1x64xf32, #tpu.memory_space<vmem>>, vector<1x64xf32>
    tpu.vector_store %arg41[%c0_224, %c0_225], %312 {strides = array<i32>} : memref<1x64xf32, #tpu.memory_space<vmem>>, vector<1x64xf32>,
    %cst_226 = arith.constant 0.000000e+00 : f32
    %314 = vector.broadcast %cst_226 : f32 to vector<1x64xf32>
    %315 = arith.cmpf ogt, %305, %314 : vector<1x64xf32>
    %316 = arith.extui %315 : vector<1x64xi1> to vector<1x64xi32>
    %317 = arith.sitofp %316 : vector<1x64xi32> to vector<1x64xf32>
    %c0_227 = arith.constant 0 : index
    %c0_228 = arith.constant 0 : index
    %318 = vector.load %arg3[%c0_227, %c0_228] : memref<7x32xf32, #tpu.memory_space<vmem>>, vector<7x32xf32>
    %c0_229 = arith.constant 0 : index
    %c0_230 = arith.constant 0 : index
    %319 = vector.load %arg17[%c0_229, %c0_230] : memref<40x7xbf16, #tpu.memory_space<vmem>>, vector<40x7xbf16>
    %320 = arith.truncf %318 : vector<7x32xf32> to vector<7x32xbf16>
    %cst_231 = arith.constant dense<0.000000e+00> : vector<40x32xf32>
    %321 = tpu.matmul %319, %320, %cst_231 {dimension_numbers = #tpu.dot_dimension_numbers<[1], [0], [0], [1], [0, 0, 1, 1], [], []>} : vector<40x7xbf16>, vector<7x32xbf16>, vector<40x32xf32> -> vector<40x32xf32>
    %cst_232 = arith.constant 0.000000e+00 : f32
    %322 = vector.broadcast %cst_232 : f32 to vector<40x32xf32>
    %323 = arith.maximumf %321, %322 : vector<40x32xf32>
    %c0_233 = arith.constant 0 : index
    %c0_234 = arith.constant 0 : index
    %324 = vector.load %arg18[%c0_233, %c0_234] : memref<40x40xbf16, #tpu.memory_space<vmem>>, vector<40x40xbf16>
    %325 = arith.truncf %323 : vector<40x32xf32> to vector<40x32xbf16>
    %cst_235 = arith.constant dense<0.000000e+00> : vector<40x32xf32>
    %326 = tpu.matmul %324, %325, %cst_235 {dimension_numbers = #tpu.dot_dimension_numbers<[1], [0], [0], [1], [0, 0, 1, 1], [], []>} : vector<40x40xbf16>, vector<40x32xbf16>, vector<40x32xf32> -> vector<40x32xf32>
    %cst_236 = arith.constant 0.000000e+00 : f32
    %327 = vector.broadcast %cst_236 : f32 to vector<40x32xf32>
    %328 = arith.maximumf %326, %327 : vector<40x32xf32>
    %c0_237 = arith.constant 0 : index
    %c0_238 = arith.constant 0 : index
    %329 = vector.load %arg19[%c0_237, %c0_238] : memref<5x40xbf16, #tpu.memory_space<vmem>>, vector<5x40xbf16>
    %330 = arith.truncf %328 : vector<40x32xf32> to vector<40x32xbf16>
    %cst_239 = arith.constant dense<0.000000e+00> : vector<5x32xf32>
    %331 = tpu.matmul %329, %330, %cst_239 {dimension_numbers = #tpu.dot_dimension_numbers<[1], [0], [0], [1], [0, 0, 1, 1], [], []>} : vector<5x40xbf16>, vector<40x32xbf16>, vector<5x32xf32> -> vector<5x32xf32>
    %cst_240 = arith.constant 0.000000e+00 : f32
    %332 = vector.broadcast %cst_240 : f32 to vector<5x32xf32>
    %333 = arith.maximumf %331, %332 : vector<5x32xf32>
    %c0_241 = arith.constant 0 : index
    %c0_242 = arith.constant 0 : index
    %334 = vector.load %arg4[%c0_241, %c0_242] : memref<4x64xf32, #tpu.memory_space<vmem>>, vector<4x64xf32>
    %c0_243 = arith.constant 0 : index
    %c0_244 = arith.constant 0 : index
    %335 = vector.load %arg15[%c0_243, %c0_244] : memref<40x4xbf16, #tpu.memory_space<vmem>>, vector<40x4xbf16>
    %336 = arith.truncf %334 : vector<4x64xf32> to vector<4x64xbf16>
    %cst_245 = arith.constant dense<0.000000e+00> : vector<40x64xf32>
    %337 = tpu.matmul %335, %336, %cst_245 {dimension_numbers = #tpu.dot_dimension_numbers<[1], [0], [0], [1], [0, 0, 1, 1], [], []>} : vector<40x4xbf16>, vector<4x64xbf16>, vector<40x64xf32> -> vector<40x64xf32>
    %cst_246 = arith.constant 0.000000e+00 : f32
    %338 = vector.broadcast %cst_246 : f32 to vector<40x64xf32>
    %339 = arith.maximumf %337, %338 : vector<40x64xf32>
    %c0_247 = arith.constant 0 : index
    %c0_248 = arith.constant 0 : index
    %340 = vector.load %arg16[%c0_247, %c0_248] : memref<4x40xbf16, #tpu.memory_space<vmem>>, vector<4x40xbf16>
    %341 = arith.truncf %339 : vector<40x64xf32> to vector<40x64xbf16>
    %cst_249 = arith.constant dense<0.000000e+00> : vector<4x64xf32>
    %342 = tpu.matmul %340, %341, %cst_249 {dimension_numbers = #tpu.dot_dimension_numbers<[1], [0], [0], [1], [0, 0, 1, 1], [], []>} : vector<4x40xbf16>, vector<40x64xbf16>, vector<4x64xf32> -> vector<4x64xf32>
    %cst_250 = arith.constant 0.000000e+00 : f32
    %343 = vector.broadcast %cst_250 : f32 to vector<4x64xf32>
    %344 = arith.maximumf %342, %343 : vector<4x64xf32>
    %345 = arith.truncf %333 : vector<5x32xf32> to vector<5x32xbf16>
    %cst_251 = arith.constant dense<0.000000e+00> : vector<5x64xf32>
    %346 = tpu.matmul %345, %6, %cst_251 {dimension_numbers = #tpu.dot_dimension_numbers<[1], [0], [0], [1], [0, 0, 1, 1], [], []>} : vector<5x32xbf16>, vector<32x64xbf16>, vector<5x64xf32> -> vector<5x64xf32>
    %cst_252 = arith.constant dense<0.000000e+00> : vector<5x64xf32>
    %347 = tpu.matmul %345, %12, %cst_252 {dimension_numbers = #tpu.dot_dimension_numbers<[1], [0], [0], [1], [0, 0, 1, 1], [], []>} : vector<5x32xbf16>, vector<32x64xbf16>, vector<5x64xf32> -> vector<5x64xf32>
    %c3_253 = arith.constant 3 : index
    %c0_254 = arith.constant 0 : index
    %c0_255 = arith.constant 0 : index
    %348 = vector.load %arg30[%c3_253, %c0_254, %c0_255] : memref<6x40x5xbf16, #tpu.memory_space<vmem>>, vector<1x40x5xbf16>
    %349 = vector.shape_cast %348 : vector<1x40x5xbf16> to vector<40x5xbf16>
    %350 = arith.truncf %346 : vector<5x64xf32> to vector<5x64xbf16>
    %cst_256 = arith.constant dense<0.000000e+00> : vector<40x64xf32>
    %351 = tpu.matmul %349, %350, %cst_256 {dimension_numbers = #tpu.dot_dimension_numbers<[1], [0], [0], [1], [0, 0, 1, 1], [], []>} : vector<40x5xbf16>, vector<5x64xbf16>, vector<40x64xf32> -> vector<40x64xf32>
    %c3_257 = arith.constant 3 : index
    %c0_258 = arith.constant 0 : index
    %c0_259 = arith.constant 0 : index
    %352 = vector.load %arg31[%c3_257, %c0_258, %c0_259] : memref<6x40x5xbf16, #tpu.memory_space<vmem>>, vector<1x40x5xbf16>
    %353 = vector.shape_cast %352 : vector<1x40x5xbf16> to vector<40x5xbf16>
    %354 = arith.truncf %347 : vector<5x64xf32> to vector<5x64xbf16>
    %cst_260 = arith.constant dense<0.000000e+00> : vector<40x64xf32>
    %355 = tpu.matmul %353, %354, %cst_260 {dimension_numbers = #tpu.dot_dimension_numbers<[1], [0], [0], [1], [0, 0, 1, 1], [], []>} : vector<40x5xbf16>, vector<5x64xbf16>, vector<40x64xf32> -> vector<40x64xf32>
    %356 = arith.addf %351, %355 : vector<40x64xf32>
    %c3_261 = arith.constant 3 : index
    %c0_262 = arith.constant 0 : index
    %c0_263 = arith.constant 0 : index
    %357 = vector.load %arg32[%c3_261, %c0_262, %c0_263] : memref<6x40x4xbf16, #tpu.memory_space<vmem>>, vector<1x40x4xbf16>
    %358 = vector.shape_cast %357 : vector<1x40x4xbf16> to vector<40x4xbf16>
    %359 = arith.truncf %344 : vector<4x64xf32> to vector<4x64xbf16>
    %cst_264 = arith.constant dense<0.000000e+00> : vector<40x64xf32>
    %360 = tpu.matmul %358, %359, %cst_264 {dimension_numbers = #tpu.dot_dimension_numbers<[1], [0], [0], [1], [0, 0, 1, 1], [], []>} : vector<40x4xbf16>, vector<4x64xbf16>, vector<40x64xf32> -> vector<40x64xf32>
    %361 = arith.addf %356, %360 : vector<40x64xf32>
    %c3_265 = arith.constant 3 : index
    %c0_266 = arith.constant 0 : index
    %c0_267 = arith.constant 0 : index
    %362 = vector.load %arg27[%c3_265, %c0_266, %c0_267] : memref<6x40x1xf32, #tpu.memory_space<vmem>>, vector<1x40x1xf32>
    %363 = vector.shape_cast %362 : vector<1x40x1xf32> to vector<40x1xf32>
    %364 = vector.broadcast %363 : vector<40x1xf32> to vector<40x64xf32>
    %365 = arith.addf %361, %364 : vector<40x64xf32>
    %cst_268 = arith.constant 0.000000e+00 : f32
    %366 = vector.broadcast %cst_268 : f32 to vector<40x64xf32>
    %367 = arith.maximumf %365, %366 : vector<40x64xf32>
    %c3_269 = arith.constant 3 : index
    %c0_270 = arith.constant 0 : index
    %c0_271 = arith.constant 0 : index
    %368 = vector.load %arg33[%c3_269, %c0_270, %c0_271] : memref<6x40x40xbf16, #tpu.memory_space<vmem>>, vector<1x40x40xbf16>
    %369 = vector.shape_cast %368 : vector<1x40x40xbf16> to vector<40x40xbf16>
    %370 = arith.truncf %367 : vector<40x64xf32> to vector<40x64xbf16>
    %cst_272 = arith.constant dense<0.000000e+00> : vector<40x64xf32>
    %371 = tpu.matmul %369, %370, %cst_272 {dimension_numbers = #tpu.dot_dimension_numbers<[1], [0], [0], [1], [0, 0, 1, 1], [], []>} : vector<40x40xbf16>, vector<40x64xbf16>, vector<40x64xf32> -> vector<40x64xf32>
    %c3_273 = arith.constant 3 : index
    %c0_274 = arith.constant 0 : index
    %c0_275 = arith.constant 0 : index
    %372 = vector.load %arg28[%c3_273, %c0_274, %c0_275] : memref<6x40x1xf32, #tpu.memory_space<vmem>>, vector<1x40x1xf32>
    %373 = vector.shape_cast %372 : vector<1x40x1xf32> to vector<40x1xf32>
    %374 = vector.broadcast %373 : vector<40x1xf32> to vector<40x64xf32>
    %375 = arith.addf %371, %374 : vector<40x64xf32>
    %cst_276 = arith.constant 0.000000e+00 : f32
    %376 = vector.broadcast %cst_276 : f32 to vector<40x64xf32>
    %377 = arith.maximumf %375, %376 : vector<40x64xf32>
    %c3_277 = arith.constant 3 : index
    %c0_278 = arith.constant 0 : index
    %c0_279 = arith.constant 0 : index
    %378 = vector.load %arg34[%c3_277, %c0_278, %c0_279] : memref<6x4x40xbf16, #tpu.memory_space<vmem>>, vector<1x4x40xbf16>
    %379 = vector.shape_cast %378 : vector<1x4x40xbf16> to vector<4x40xbf16>
    %380 = arith.truncf %377 : vector<40x64xf32> to vector<40x64xbf16>
    %cst_280 = arith.constant dense<0.000000e+00> : vector<4x64xf32>
    %381 = tpu.matmul %379, %380, %cst_280 {dimension_numbers = #tpu.dot_dimension_numbers<[1], [0], [0], [1], [0, 0, 1, 1], [], []>} : vector<4x40xbf16>, vector<40x64xbf16>, vector<4x64xf32> -> vector<4x64xf32>
    %c3_281 = arith.constant 3 : index
    %c0_282 = arith.constant 0 : index
    %c0_283 = arith.constant 0 : index
    %382 = vector.load %arg29[%c3_281, %c0_282, %c0_283] : memref<6x4x1xf32, #tpu.memory_space<vmem>>, vector<1x4x1xf32>
    %383 = vector.shape_cast %382 : vector<1x4x1xf32> to vector<4x1xf32>
    %384 = vector.broadcast %383 : vector<4x1xf32> to vector<4x64xf32>
    %385 = arith.addf %381, %384 : vector<4x64xf32>
    %386 = vector.broadcast %317 : vector<1x64xf32> to vector<4x64xf32>
    %387 = arith.mulf %385, %386 : vector<4x64xf32>
    %388 = arith.truncf %387 : vector<4x64xf32> to vector<4x64xbf16>
    %cst_284 = arith.constant dense<0.000000e+00> : vector<4x32xf32>
    %389 = tpu.matmul %388, %19, %cst_284 {dimension_numbers = #tpu.dot_dimension_numbers<[1], [0], [0], [1], [0, 0, 1, 1], [], []>} : vector<4x64xbf16>, vector<64x32xbf16>, vector<4x32xf32> -> vector<4x32xf32>
    %c3_285 = arith.constant 3 : index
    %c0_286 = arith.constant 0 : index
    %c0_287 = arith.constant 0 : index
    %390 = vector.load %arg24[%c3_285, %c0_286, %c0_287] : memref<6x40x5xbf16, #tpu.memory_space<vmem>>, vector<1x40x5xbf16>
    %391 = vector.shape_cast %390 : vector<1x40x5xbf16> to vector<40x5xbf16>
    %cst_288 = arith.constant dense<0.000000e+00> : vector<40x32xf32>
    %392 = tpu.matmul %391, %345, %cst_288 {dimension_numbers = #tpu.dot_dimension_numbers<[1], [0], [0], [1], [0, 0, 1, 1], [], []>} : vector<40x5xbf16>, vector<5x32xbf16>, vector<40x32xf32> -> vector<40x32xf32>
    %c3_289 = arith.constant 3 : index
    %c0_290 = arith.constant 0 : index
    %c0_291 = arith.constant 0 : index
    %393 = vector.load %arg23[%c3_289, %c0_290, %c0_291] : memref<6x40x4xbf16, #tpu.memory_space<vmem>>, vector<1x40x4xbf16>
    %394 = vector.shape_cast %393 : vector<1x40x4xbf16> to vector<40x4xbf16>
    %395 = arith.truncf %389 : vector<4x32xf32> to vector<4x32xbf16>
    %cst_292 = arith.constant dense<0.000000e+00> : vector<40x32xf32>
    %396 = tpu.matmul %394, %395, %cst_292 {dimension_numbers = #tpu.dot_dimension_numbers<[1], [0], [0], [1], [0, 0, 1, 1], [], []>} : vector<40x4xbf16>, vector<4x32xbf16>, vector<40x32xf32> -> vector<40x32xf32>
    %397 = arith.addf %392, %396 : vector<40x32xf32>
    %c3_293 = arith.constant 3 : index
    %c0_294 = arith.constant 0 : index
    %c0_295 = arith.constant 0 : index
    %398 = vector.load %arg20[%c3_293, %c0_294, %c0_295] : memref<6x40x1xf32, #tpu.memory_space<vmem>>, vector<1x40x1xf32>
    %399 = vector.shape_cast %398 : vector<1x40x1xf32> to vector<40x1xf32>
    %400 = vector.broadcast %399 : vector<40x1xf32> to vector<40x32xf32>
    %401 = arith.addf %397, %400 : vector<40x32xf32>
    %cst_296 = arith.constant 0.000000e+00 : f32
    %402 = vector.broadcast %cst_296 : f32 to vector<40x32xf32>
    %403 = arith.maximumf %401, %402 : vector<40x32xf32>
    %c3_297 = arith.constant 3 : index
    %c0_298 = arith.constant 0 : index
    %c0_299 = arith.constant 0 : index
    %404 = vector.load %arg25[%c3_297, %c0_298, %c0_299] : memref<6x40x40xbf16, #tpu.memory_space<vmem>>, vector<1x40x40xbf16>
    %405 = vector.shape_cast %404 : vector<1x40x40xbf16> to vector<40x40xbf16>
    %406 = arith.truncf %403 : vector<40x32xf32> to vector<40x32xbf16>
    %cst_300 = arith.constant dense<0.000000e+00> : vector<40x32xf32>
    %407 = tpu.matmul %405, %406, %cst_300 {dimension_numbers = #tpu.dot_dimension_numbers<[1], [0], [0], [1], [0, 0, 1, 1], [], []>} : vector<40x40xbf16>, vector<40x32xbf16>, vector<40x32xf32> -> vector<40x32xf32>
    %c3_301 = arith.constant 3 : index
    %c0_302 = arith.constant 0 : index
    %c0_303 = arith.constant 0 : index
    %408 = vector.load %arg21[%c3_301, %c0_302, %c0_303] : memref<6x40x1xf32, #tpu.memory_space<vmem>>, vector<1x40x1xf32>
    %409 = vector.shape_cast %408 : vector<1x40x1xf32> to vector<40x1xf32>
    %410 = vector.broadcast %409 : vector<40x1xf32> to vector<40x32xf32>
    %411 = arith.addf %407, %410 : vector<40x32xf32>
    %cst_304 = arith.constant 0.000000e+00 : f32
    %412 = vector.broadcast %cst_304 : f32 to vector<40x32xf32>
    %413 = arith.maximumf %411, %412 : vector<40x32xf32>
    %c3_305 = arith.constant 3 : index
    %c0_306 = arith.constant 0 : index
    %c0_307 = arith.constant 0 : index
    %414 = vector.load %arg26[%c3_305, %c0_306, %c0_307] : memref<6x5x40xbf16, #tpu.memory_space<vmem>>, vector<1x5x40xbf16>
    %415 = vector.shape_cast %414 : vector<1x5x40xbf16> to vector<5x40xbf16>
    %416 = arith.truncf %413 : vector<40x32xf32> to vector<40x32xbf16>
    %cst_308 = arith.constant dense<0.000000e+00> : vector<5x32xf32>
    %417 = tpu.matmul %415, %416, %cst_308 {dimension_numbers = #tpu.dot_dimension_numbers<[1], [0], [0], [1], [0, 0, 1, 1], [], []>} : vector<5x40xbf16>, vector<40x32xbf16>, vector<5x32xf32> -> vector<5x32xf32>
    %c3_309 = arith.constant 3 : index
    %c0_310 = arith.constant 0 : index
    %c0_311 = arith.constant 0 : index
    %418 = vector.load %arg22[%c3_309, %c0_310, %c0_311] : memref<6x5x1xf32, #tpu.memory_space<vmem>>, vector<1x5x1xf32>
    %419 = vector.shape_cast %418 : vector<1x5x1xf32> to vector<5x1xf32>
    %420 = vector.broadcast %419 : vector<5x1xf32> to vector<5x32xf32>
    %421 = arith.addf %417, %420 : vector<5x32xf32>
    %cst_312 = arith.constant 5.000000e-01 : f32
    %422 = vector.broadcast %cst_312 : f32 to vector<5x32xf32>
    %423 = arith.mulf %422, %333 : vector<5x32xf32>
    %cst_313 = arith.constant 0.000000e+00 : f32
    %424 = vector.broadcast %cst_313 : f32 to vector<5x32xf32>
    %425 = arith.maximumf %421, %424 : vector<5x32xf32>
    %cst_314 = arith.constant 5.000000e-01 : f32
    %426 = vector.broadcast %cst_314 : f32 to vector<5x32xf32>
    %427 = arith.mulf %426, %425 : vector<5x32xf32>
    %428 = arith.addf %423, %427 : vector<5x32xf32>
    %cst_315 = arith.constant 5.000000e-01 : f32
    %429 = vector.broadcast %cst_315 : f32 to vector<4x64xf32>
    %430 = arith.mulf %429, %344 : vector<4x64xf32>
    %cst_316 = arith.constant 0.000000e+00 : f32
    %431 = vector.broadcast %cst_316 : f32 to vector<4x64xf32>
    %432 = arith.maximumf %385, %431 : vector<4x64xf32>
    %cst_317 = arith.constant 5.000000e-01 : f32
    %433 = vector.broadcast %cst_317 : f32 to vector<4x64xf32>
    %434 = arith.mulf %433, %432 : vector<4x64xf32>
    %435 = arith.addf %430, %434 : vector<4x64xf32>
    %436 = arith.truncf %428 : vector<5x32xf32> to vector<5x32xbf16>
    %cst_318 = arith.constant dense<0.000000e+00> : vector<5x64xf32>
    %437 = tpu.matmul %436, %6, %cst_318 {dimension_numbers = #tpu.dot_dimension_numbers<[1], [0], [0], [1], [0, 0, 1, 1], [], []>} : vector<5x32xbf16>, vector<32x64xbf16>, vector<5x64xf32> -> vector<5x64xf32>
    %cst_319 = arith.constant dense<0.000000e+00> : vector<5x64xf32>
    %438 = tpu.matmul %436, %12, %cst_319 {dimension_numbers = #tpu.dot_dimension_numbers<[1], [0], [0], [1], [0, 0, 1, 1], [], []>} : vector<5x32xbf16>, vector<32x64xbf16>, vector<5x64xf32> -> vector<5x64xf32>
    %c4 = arith.constant 4 : index
    %c0_320 = arith.constant 0 : index
    %c0_321 = arith.constant 0 : index
    %439 = vector.load %arg30[%c4, %c0_320, %c0_321] : memref<6x40x5xbf16, #tpu.memory_space<vmem>>, vector<1x40x5xbf16>
    %440 = vector.shape_cast %439 : vector<1x40x5xbf16> to vector<40x5xbf16>
    %441 = arith.truncf %437 : vector<5x64xf32> to vector<5x64xbf16>
    %cst_322 = arith.constant dense<0.000000e+00> : vector<40x64xf32>
    %442 = tpu.matmul %440, %441, %cst_322 {dimension_numbers = #tpu.dot_dimension_numbers<[1], [0], [0], [1], [0, 0, 1, 1], [], []>} : vector<40x5xbf16>, vector<5x64xbf16>, vector<40x64xf32> -> vector<40x64xf32>
    %c4_323 = arith.constant 4 : index
    %c0_324 = arith.constant 0 : index
    %c0_325 = arith.constant 0 : index
    %443 = vector.load %arg31[%c4_323, %c0_324, %c0_325] : memref<6x40x5xbf16, #tpu.memory_space<vmem>>, vector<1x40x5xbf16>
    %444 = vector.shape_cast %443 : vector<1x40x5xbf16> to vector<40x5xbf16>
    %445 = arith.truncf %438 : vector<5x64xf32> to vector<5x64xbf16>
    %cst_326 = arith.constant dense<0.000000e+00> : vector<40x64xf32>
    %446 = tpu.matmul %444, %445, %cst_326 {dimension_numbers = #tpu.dot_dimension_numbers<[1], [0], [0], [1], [0, 0, 1, 1], [], []>} : vector<40x5xbf16>, vector<5x64xbf16>, vector<40x64xf32> -> vector<40x64xf32>
    %447 = arith.addf %442, %446 : vector<40x64xf32>
    %c4_327 = arith.constant 4 : index
    %c0_328 = arith.constant 0 : index
    %c0_329 = arith.constant 0 : index
    %448 = vector.load %arg32[%c4_327, %c0_328, %c0_329] : memref<6x40x4xbf16, #tpu.memory_space<vmem>>, vector<1x40x4xbf16>
    %449 = vector.shape_cast %448 : vector<1x40x4xbf16> to vector<40x4xbf16>
    %450 = arith.truncf %435 : vector<4x64xf32> to vector<4x64xbf16>
    %cst_330 = arith.constant dense<0.000000e+00> : vector<40x64xf32>
    %451 = tpu.matmul %449, %450, %cst_330 {dimension_numbers = #tpu.dot_dimension_numbers<[1], [0], [0], [1], [0, 0, 1, 1], [], []>} : vector<40x4xbf16>, vector<4x64xbf16>, vector<40x64xf32> -> vector<40x64xf32>
    %452 = arith.addf %447, %451 : vector<40x64xf32>
    %c4_331 = arith.constant 4 : index
    %c0_332 = arith.constant 0 : index
    %c0_333 = arith.constant 0 : index
    %453 = vector.load %arg27[%c4_331, %c0_332, %c0_333] : memref<6x40x1xf32, #tpu.memory_space<vmem>>, vector<1x40x1xf32>
    %454 = vector.shape_cast %453 : vector<1x40x1xf32> to vector<40x1xf32>
    %455 = vector.broadcast %454 : vector<40x1xf32> to vector<40x64xf32>
    %456 = arith.addf %452, %455 : vector<40x64xf32>
    %cst_334 = arith.constant 0.000000e+00 : f32
    %457 = vector.broadcast %cst_334 : f32 to vector<40x64xf32>
    %458 = arith.maximumf %456, %457 : vector<40x64xf32>
    %c4_335 = arith.constant 4 : index
    %c0_336 = arith.constant 0 : index
    %c0_337 = arith.constant 0 : index
    %459 = vector.load %arg33[%c4_335, %c0_336, %c0_337] : memref<6x40x40xbf16, #tpu.memory_space<vmem>>, vector<1x40x40xbf16>
    %460 = vector.shape_cast %459 : vector<1x40x40xbf16> to vector<40x40xbf16>
    %461 = arith.truncf %458 : vector<40x64xf32> to vector<40x64xbf16>
    %cst_338 = arith.constant dense<0.000000e+00> : vector<40x64xf32>
    %462 = tpu.matmul %460, %461, %cst_338 {dimension_numbers = #tpu.dot_dimension_numbers<[1], [0], [0], [1], [0, 0, 1, 1], [], []>} : vector<40x40xbf16>, vector<40x64xbf16>, vector<40x64xf32> -> vector<40x64xf32>
    %c4_339 = arith.constant 4 : index
    %c0_340 = arith.constant 0 : index
    %c0_341 = arith.constant 0 : index
    %463 = vector.load %arg28[%c4_339, %c0_340, %c0_341] : memref<6x40x1xf32, #tpu.memory_space<vmem>>, vector<1x40x1xf32>
    %464 = vector.shape_cast %463 : vector<1x40x1xf32> to vector<40x1xf32>
    %465 = vector.broadcast %464 : vector<40x1xf32> to vector<40x64xf32>
    %466 = arith.addf %462, %465 : vector<40x64xf32>
    %cst_342 = arith.constant 0.000000e+00 : f32
    %467 = vector.broadcast %cst_342 : f32 to vector<40x64xf32>
    %468 = arith.maximumf %466, %467 : vector<40x64xf32>
    %c4_343 = arith.constant 4 : index
    %c0_344 = arith.constant 0 : index
    %c0_345 = arith.constant 0 : index
    %469 = vector.load %arg34[%c4_343, %c0_344, %c0_345] : memref<6x4x40xbf16, #tpu.memory_space<vmem>>, vector<1x4x40xbf16>
    %470 = vector.shape_cast %469 : vector<1x4x40xbf16> to vector<4x40xbf16>
    %471 = arith.truncf %468 : vector<40x64xf32> to vector<40x64xbf16>
    %cst_346 = arith.constant dense<0.000000e+00> : vector<4x64xf32>
    %472 = tpu.matmul %470, %471, %cst_346 {dimension_numbers = #tpu.dot_dimension_numbers<[1], [0], [0], [1], [0, 0, 1, 1], [], []>} : vector<4x40xbf16>, vector<40x64xbf16>, vector<4x64xf32> -> vector<4x64xf32>
    %c4_347 = arith.constant 4 : index
    %c0_348 = arith.constant 0 : index
    %c0_349 = arith.constant 0 : index
    %473 = vector.load %arg29[%c4_347, %c0_348, %c0_349] : memref<6x4x1xf32, #tpu.memory_space<vmem>>, vector<1x4x1xf32>
    %474 = vector.shape_cast %473 : vector<1x4x1xf32> to vector<4x1xf32>
    %475 = vector.broadcast %474 : vector<4x1xf32> to vector<4x64xf32>
    %476 = arith.addf %472, %475 : vector<4x64xf32>
    %477 = vector.broadcast %317 : vector<1x64xf32> to vector<4x64xf32>
    %478 = arith.mulf %476, %477 : vector<4x64xf32>
    %479 = arith.truncf %478 : vector<4x64xf32> to vector<4x64xbf16>
    %cst_350 = arith.constant dense<0.000000e+00> : vector<4x32xf32>
    %480 = tpu.matmul %479, %19, %cst_350 {dimension_numbers = #tpu.dot_dimension_numbers<[1], [0], [0], [1], [0, 0, 1, 1], [], []>} : vector<4x64xbf16>, vector<64x32xbf16>, vector<4x32xf32> -> vector<4x32xf32>
    %c4_351 = arith.constant 4 : index
    %c0_352 = arith.constant 0 : index
    %c0_353 = arith.constant 0 : index
    %481 = vector.load %arg24[%c4_351, %c0_352, %c0_353] : memref<6x40x5xbf16, #tpu.memory_space<vmem>>, vector<1x40x5xbf16>
    %482 = vector.shape_cast %481 : vector<1x40x5xbf16> to vector<40x5xbf16>
    %cst_354 = arith.constant dense<0.000000e+00> : vector<40x32xf32>
    %483 = tpu.matmul %482, %436, %cst_354 {dimension_numbers = #tpu.dot_dimension_numbers<[1], [0], [0], [1], [0, 0, 1, 1], [], []>} : vector<40x5xbf16>, vector<5x32xbf16>, vector<40x32xf32> -> vector<40x32xf32>
    %c4_355 = arith.constant 4 : index
    %c0_356 = arith.constant 0 : index
    %c0_357 = arith.constant 0 : index
    %484 = vector.load %arg23[%c4_355, %c0_356, %c0_357] : memref<6x40x4xbf16, #tpu.memory_space<vmem>>, vector<1x40x4xbf16>
    %485 = vector.shape_cast %484 : vector<1x40x4xbf16> to vector<40x4xbf16>
    %486 = arith.truncf %480 : vector<4x32xf32> to vector<4x32xbf16>
    %cst_358 = arith.constant dense<0.000000e+00> : vector<40x32xf32>
    %487 = tpu.matmul %485, %486, %cst_358 {dimension_numbers = #tpu.dot_dimension_numbers<[1], [0], [0], [1], [0, 0, 1, 1], [], []>} : vector<40x4xbf16>, vector<4x32xbf16>, vector<40x32xf32> -> vector<40x32xf32>
    %488 = arith.addf %483, %487 : vector<40x32xf32>
    %c4_359 = arith.constant 4 : index
    %c0_360 = arith.constant 0 : index
    %c0_361 = arith.constant 0 : index
    %489 = vector.load %arg20[%c4_359, %c0_360, %c0_361] : memref<6x40x1xf32, #tpu.memory_space<vmem>>, vector<1x40x1xf32>
    %490 = vector.shape_cast %489 : vector<1x40x1xf32> to vector<40x1xf32>
    %491 = vector.broadcast %490 : vector<40x1xf32> to vector<40x32xf32>
    %492 = arith.addf %488, %491 : vector<40x32xf32>
    %cst_362 = arith.constant 0.000000e+00 : f32
    %493 = vector.broadcast %cst_362 : f32 to vector<40x32xf32>
    %494 = arith.maximumf %492, %493 : vector<40x32xf32>
    %c4_363 = arith.constant 4 : index
    %c0_364 = arith.constant 0 : index
    %c0_365 = arith.constant 0 : index
    %495 = vector.load %arg25[%c4_363, %c0_364, %c0_365] : memref<6x40x40xbf16, #tpu.memory_space<vmem>>, vector<1x40x40xbf16>
    %496 = vector.shape_cast %495 : vector<1x40x40xbf16> to vector<40x40xbf16>
    %497 = arith.truncf %494 : vector<40x32xf32> to vector<40x32xbf16>
    %cst_366 = arith.constant dense<0.000000e+00> : vector<40x32xf32>
    %498 = tpu.matmul %496, %497, %cst_366 {dimension_numbers = #tpu.dot_dimension_numbers<[1], [0], [0], [1], [0, 0, 1, 1], [], []>} : vector<40x40xbf16>, vector<40x32xbf16>, vector<40x32xf32> -> vector<40x32xf32>
    %c4_367 = arith.constant 4 : index
    %c0_368 = arith.constant 0 : index
    %c0_369 = arith.constant 0 : index
    %499 = vector.load %arg21[%c4_367, %c0_368, %c0_369] : memref<6x40x1xf32, #tpu.memory_space<vmem>>, vector<1x40x1xf32>
    %500 = vector.shape_cast %499 : vector<1x40x1xf32> to vector<40x1xf32>
    %501 = vector.broadcast %500 : vector<40x1xf32> to vector<40x32xf32>
    %502 = arith.addf %498, %501 : vector<40x32xf32>
    %cst_370 = arith.constant 0.000000e+00 : f32
    %503 = vector.broadcast %cst_370 : f32 to vector<40x32xf32>
    %504 = arith.maximumf %502, %503 : vector<40x32xf32>
    %c4_371 = arith.constant 4 : index
    %c0_372 = arith.constant 0 : index
    %c0_373 = arith.constant 0 : index
    %505 = vector.load %arg26[%c4_371, %c0_372, %c0_373] : memref<6x5x40xbf16, #tpu.memory_space<vmem>>, vector<1x5x40xbf16>
    %506 = vector.shape_cast %505 : vector<1x5x40xbf16> to vector<5x40xbf16>
    %507 = arith.truncf %504 : vector<40x32xf32> to vector<40x32xbf16>
    %cst_374 = arith.constant dense<0.000000e+00> : vector<5x32xf32>
    %508 = tpu.matmul %506, %507, %cst_374 {dimension_numbers = #tpu.dot_dimension_numbers<[1], [0], [0], [1], [0, 0, 1, 1], [], []>} : vector<5x40xbf16>, vector<40x32xbf16>, vector<5x32xf32> -> vector<5x32xf32>
    %c4_375 = arith.constant 4 : index
    %c0_376 = arith.constant 0 : index
    %c0_377 = arith.constant 0 : index
    %509 = vector.load %arg22[%c4_375, %c0_376, %c0_377] : memref<6x5x1xf32, #tpu.memory_space<vmem>>, vector<1x5x1xf32>
    %510 = vector.shape_cast %509 : vector<1x5x1xf32> to vector<5x1xf32>
    %511 = vector.broadcast %510 : vector<5x1xf32> to vector<5x32xf32>
    %512 = arith.addf %508, %511 : vector<5x32xf32>
    %cst_378 = arith.constant 5.000000e-01 : f32
    %513 = vector.broadcast %cst_378 : f32 to vector<5x32xf32>
    %514 = arith.mulf %513, %428 : vector<5x32xf32>
    %cst_379 = arith.constant 0.000000e+00 : f32
    %515 = vector.broadcast %cst_379 : f32 to vector<5x32xf32>
    %516 = arith.maximumf %512, %515 : vector<5x32xf32>
    %cst_380 = arith.constant 5.000000e-01 : f32
    %517 = vector.broadcast %cst_380 : f32 to vector<5x32xf32>
    %518 = arith.mulf %517, %516 : vector<5x32xf32>
    %519 = arith.addf %514, %518 : vector<5x32xf32>
    %cst_381 = arith.constant 5.000000e-01 : f32
    %520 = vector.broadcast %cst_381 : f32 to vector<4x64xf32>
    %521 = arith.mulf %520, %435 : vector<4x64xf32>
    %cst_382 = arith.constant 0.000000e+00 : f32
    %522 = vector.broadcast %cst_382 : f32 to vector<4x64xf32>
    %523 = arith.maximumf %476, %522 : vector<4x64xf32>
    %cst_383 = arith.constant 5.000000e-01 : f32
    %524 = vector.broadcast %cst_383 : f32 to vector<4x64xf32>
    %525 = arith.mulf %524, %523 : vector<4x64xf32>
    %526 = arith.addf %521, %525 : vector<4x64xf32>
    %527 = arith.truncf %519 : vector<5x32xf32> to vector<5x32xbf16>
    %cst_384 = arith.constant dense<0.000000e+00> : vector<5x64xf32>
    %528 = tpu.matmul %527, %6, %cst_384 {dimension_numbers = #tpu.dot_dimension_numbers<[1], [0], [0], [1], [0, 0, 1, 1], [], []>} : vector<5x32xbf16>, vector<32x64xbf16>, vector<5x64xf32> -> vector<5x64xf32>
    %cst_385 = arith.constant dense<0.000000e+00> : vector<5x64xf32>
    %529 = tpu.matmul %527, %12, %cst_385 {dimension_numbers = #tpu.dot_dimension_numbers<[1], [0], [0], [1], [0, 0, 1, 1], [], []>} : vector<5x32xbf16>, vector<32x64xbf16>, vector<5x64xf32> -> vector<5x64xf32>
    %c5 = arith.constant 5 : index
    %c0_386 = arith.constant 0 : index
    %c0_387 = arith.constant 0 : index
    %530 = vector.load %arg30[%c5, %c0_386, %c0_387] : memref<6x40x5xbf16, #tpu.memory_space<vmem>>, vector<1x40x5xbf16>
    %531 = vector.shape_cast %530 : vector<1x40x5xbf16> to vector<40x5xbf16>
    %532 = arith.truncf %528 : vector<5x64xf32> to vector<5x64xbf16>
    %cst_388 = arith.constant dense<0.000000e+00> : vector<40x64xf32>
    %533 = tpu.matmul %531, %532, %cst_388 {dimension_numbers = #tpu.dot_dimension_numbers<[1], [0], [0], [1], [0, 0, 1, 1], [], []>} : vector<40x5xbf16>, vector<5x64xbf16>, vector<40x64xf32> -> vector<40x64xf32>
    %c5_389 = arith.constant 5 : index
    %c0_390 = arith.constant 0 : index
    %c0_391 = arith.constant 0 : index
    %534 = vector.load %arg31[%c5_389, %c0_390, %c0_391] : memref<6x40x5xbf16, #tpu.memory_space<vmem>>, vector<1x40x5xbf16>
    %535 = vector.shape_cast %534 : vector<1x40x5xbf16> to vector<40x5xbf16>
    %536 = arith.truncf %529 : vector<5x64xf32> to vector<5x64xbf16>
    %cst_392 = arith.constant dense<0.000000e+00> : vector<40x64xf32>
    %537 = tpu.matmul %535, %536, %cst_392 {dimension_numbers = #tpu.dot_dimension_numbers<[1], [0], [0], [1], [0, 0, 1, 1], [], []>} : vector<40x5xbf16>, vector<5x64xbf16>, vector<40x64xf32> -> vector<40x64xf32>
    %538 = arith.addf %533, %537 : vector<40x64xf32>
    %c5_393 = arith.constant 5 : index
    %c0_394 = arith.constant 0 : index
    %c0_395 = arith.constant 0 : index
    %539 = vector.load %arg32[%c5_393, %c0_394, %c0_395] : memref<6x40x4xbf16, #tpu.memory_space<vmem>>, vector<1x40x4xbf16>
    %540 = vector.shape_cast %539 : vector<1x40x4xbf16> to vector<40x4xbf16>
    %541 = arith.truncf %526 : vector<4x64xf32> to vector<4x64xbf16>
    %cst_396 = arith.constant dense<0.000000e+00> : vector<40x64xf32>
    %542 = tpu.matmul %540, %541, %cst_396 {dimension_numbers = #tpu.dot_dimension_numbers<[1], [0], [0], [1], [0, 0, 1, 1], [], []>} : vector<40x4xbf16>, vector<4x64xbf16>, vector<40x64xf32> -> vector<40x64xf32>
    %543 = arith.addf %538, %542 : vector<40x64xf32>
    %c5_397 = arith.constant 5 : index
    %c0_398 = arith.constant 0 : index
    %c0_399 = arith.constant 0 : index
    %544 = vector.load %arg27[%c5_397, %c0_398, %c0_399] : memref<6x40x1xf32, #tpu.memory_space<vmem>>, vector<1x40x1xf32>
    %545 = vector.shape_cast %544 : vector<1x40x1xf32> to vector<40x1xf32>
    %546 = vector.broadcast %545 : vector<40x1xf32> to vector<40x64xf32>
    %547 = arith.addf %543, %546 : vector<40x64xf32>
    %cst_400 = arith.constant 0.000000e+00 : f32
    %548 = vector.broadcast %cst_400 : f32 to vector<40x64xf32>
    %549 = arith.maximumf %547, %548 : vector<40x64xf32>
    %c5_401 = arith.constant 5 : index
    %c0_402 = arith.constant 0 : index
    %c0_403 = arith.constant 0 : index
    %550 = vector.load %arg33[%c5_401, %c0_402, %c0_403] : memref<6x40x40xbf16, #tpu.memory_space<vmem>>, vector<1x40x40xbf16>
    %551 = vector.shape_cast %550 : vector<1x40x40xbf16> to vector<40x40xbf16>
    %552 = arith.truncf %549 : vector<40x64xf32> to vector<40x64xbf16>
    %cst_404 = arith.constant dense<0.000000e+00> : vector<40x64xf32>
    %553 = tpu.matmul %551, %552, %cst_404 {dimension_numbers = #tpu.dot_dimension_numbers<[1], [0], [0], [1], [0, 0, 1, 1], [], []>} : vector<40x40xbf16>, vector<40x64xbf16>, vector<40x64xf32> -> vector<40x64xf32>
    %c5_405 = arith.constant 5 : index
    %c0_406 = arith.constant 0 : index
    %c0_407 = arith.constant 0 : index
    %554 = vector.load %arg28[%c5_405, %c0_406, %c0_407] : memref<6x40x1xf32, #tpu.memory_space<vmem>>, vector<1x40x1xf32>
    %555 = vector.shape_cast %554 : vector<1x40x1xf32> to vector<40x1xf32>
    %556 = vector.broadcast %555 : vector<40x1xf32> to vector<40x64xf32>
    %557 = arith.addf %553, %556 : vector<40x64xf32>
    %cst_408 = arith.constant 0.000000e+00 : f32
    %558 = vector.broadcast %cst_408 : f32 to vector<40x64xf32>
    %559 = arith.maximumf %557, %558 : vector<40x64xf32>
    %c5_409 = arith.constant 5 : index
    %c0_410 = arith.constant 0 : index
    %c0_411 = arith.constant 0 : index
    %560 = vector.load %arg34[%c5_409, %c0_410, %c0_411] : memref<6x4x40xbf16, #tpu.memory_space<vmem>>, vector<1x4x40xbf16>
    %561 = vector.shape_cast %560 : vector<1x4x40xbf16> to vector<4x40xbf16>
    %562 = arith.truncf %559 : vector<40x64xf32> to vector<40x64xbf16>
    %cst_412 = arith.constant dense<0.000000e+00> : vector<4x64xf32>
    %563 = tpu.matmul %561, %562, %cst_412 {dimension_numbers = #tpu.dot_dimension_numbers<[1], [0], [0], [1], [0, 0, 1, 1], [], []>} : vector<4x40xbf16>, vector<40x64xbf16>, vector<4x64xf32> -> vector<4x64xf32>
    %c5_413 = arith.constant 5 : index
    %c0_414 = arith.constant 0 : index
    %c0_415 = arith.constant 0 : index
    %564 = vector.load %arg29[%c5_413, %c0_414, %c0_415] : memref<6x4x1xf32, #tpu.memory_space<vmem>>, vector<1x4x1xf32>
    %565 = vector.shape_cast %564 : vector<1x4x1xf32> to vector<4x1xf32>
    %566 = vector.broadcast %565 : vector<4x1xf32> to vector<4x64xf32>
    %567 = arith.addf %563, %566 : vector<4x64xf32>
    %568 = vector.broadcast %317 : vector<1x64xf32> to vector<4x64xf32>
    %569 = arith.mulf %567, %568 : vector<4x64xf32>
    %570 = arith.truncf %569 : vector<4x64xf32> to vector<4x64xbf16>
    %cst_416 = arith.constant dense<0.000000e+00> : vector<4x32xf32>
    %571 = tpu.matmul %570, %19, %cst_416 {dimension_numbers = #tpu.dot_dimension_numbers<[1], [0], [0], [1], [0, 0, 1, 1], [], []>} : vector<4x64xbf16>, vector<64x32xbf16>, vector<4x32xf32> -> vector<4x32xf32>
    %c5_417 = arith.constant 5 : index
    %c0_418 = arith.constant 0 : index
    %c0_419 = arith.constant 0 : index
    %572 = vector.load %arg24[%c5_417, %c0_418, %c0_419] : memref<6x40x5xbf16, #tpu.memory_space<vmem>>, vector<1x40x5xbf16>
    %573 = vector.shape_cast %572 : vector<1x40x5xbf16> to vector<40x5xbf16>
    %cst_420 = arith.constant dense<0.000000e+00> : vector<40x32xf32>
    %574 = tpu.matmul %573, %527, %cst_420 {dimension_numbers = #tpu.dot_dimension_numbers<[1], [0], [0], [1], [0, 0, 1, 1], [], []>} : vector<40x5xbf16>, vector<5x32xbf16>, vector<40x32xf32> -> vector<40x32xf32>
    %c5_421 = arith.constant 5 : index
    %c0_422 = arith.constant 0 : index
    %c0_423 = arith.constant 0 : index
    %575 = vector.load %arg23[%c5_421, %c0_422, %c0_423] : memref<6x40x4xbf16, #tpu.memory_space<vmem>>, vector<1x40x4xbf16>
    %576 = vector.shape_cast %575 : vector<1x40x4xbf16> to vector<40x4xbf16>
    %577 = arith.truncf %571 : vector<4x32xf32> to vector<4x32xbf16>
    %cst_424 = arith.constant dense<0.000000e+00> : vector<40x32xf32>
    %578 = tpu.matmul %576, %577, %cst_424 {dimension_numbers = #tpu.dot_dimension_numbers<[1], [0], [0], [1], [0, 0, 1, 1], [], []>} : vector<40x4xbf16>, vector<4x32xbf16>, vector<40x32xf32> -> vector<40x32xf32>
    %579 = arith.addf %574, %578 : vector<40x32xf32>
    %c5_425 = arith.constant 5 : index
    %c0_426 = arith.constant 0 : index
    %c0_427 = arith.constant 0 : index
    %580 = vector.load %arg20[%c5_425, %c0_426, %c0_427] : memref<6x40x1xf32, #tpu.memory_space<vmem>>, vector<1x40x1xf32>
    %581 = vector.shape_cast %580 : vector<1x40x1xf32> to vector<40x1xf32>
    %582 = vector.broadcast %581 : vector<40x1xf32> to vector<40x32xf32>
    %583 = arith.addf %579, %582 : vector<40x32xf32>
    %cst_428 = arith.constant 0.000000e+00 : f32
    %584 = vector.broadcast %cst_428 : f32 to vector<40x32xf32>
    %585 = arith.maximumf %583, %584 : vector<40x32xf32>
    %c5_429 = arith.constant 5 : index
    %c0_430 = arith.constant 0 : index
    %c0_431 = arith.constant 0 : index
    %586 = vector.load %arg25[%c5_429, %c0_430, %c0_431] : memref<6x40x40xbf16, #tpu.memory_space<vmem>>, vector<1x40x40xbf16>
    %587 = vector.shape_cast %586 : vector<1x40x40xbf16> to vector<40x40xbf16>
    %588 = arith.truncf %585 : vector<40x32xf32> to vector<40x32xbf16>
    %cst_432 = arith.constant dense<0.000000e+00> : vector<40x32xf32>
    %589 = tpu.matmul %587, %588, %cst_432 {dimension_numbers = #tpu.dot_dimension_numbers<[1], [0], [0], [1], [0, 0, 1, 1], [], []>} : vector<40x40xbf16>, vector<40x32xbf16>, vector<40x32xf32> -> vector<40x32xf32>
    %c5_433 = arith.constant 5 : index
    %c0_434 = arith.constant 0 : index
    %c0_435 = arith.constant 0 : index
    %590 = vector.load %arg21[%c5_433, %c0_434, %c0_435] : memref<6x40x1xf32, #tpu.memory_space<vmem>>, vector<1x40x1xf32>
    %591 = vector.shape_cast %590 : vector<1x40x1xf32> to vector<40x1xf32>
    %592 = vector.broadcast %591 : vector<40x1xf32> to vector<40x32xf32>
    %593 = arith.addf %589, %592 : vector<40x32xf32>
    %cst_436 = arith.constant 0.000000e+00 : f32
    %594 = vector.broadcast %cst_436 : f32 to vector<40x32xf32>
    %595 = arith.maximumf %593, %594 : vector<40x32xf32>
    %c5_437 = arith.constant 5 : index
    %c0_438 = arith.constant 0 : index
    %c0_439 = arith.constant 0 : index
    %596 = vector.load %arg26[%c5_437, %c0_438, %c0_439] : memref<6x5x40xbf16, #tpu.memory_space<vmem>>, vector<1x5x40xbf16>
    %597 = vector.shape_cast %596 : vector<1x5x40xbf16> to vector<5x40xbf16>
    %598 = arith.truncf %595 : vector<40x32xf32> to vector<40x32xbf16>
    %cst_440 = arith.constant dense<0.000000e+00> : vector<5x32xf32>
    %599 = tpu.matmul %597, %598, %cst_440 {dimension_numbers = #tpu.dot_dimension_numbers<[1], [0], [0], [1], [0, 0, 1, 1], [], []>} : vector<5x40xbf16>, vector<40x32xbf16>, vector<5x32xf32> -> vector<5x32xf32>
    %c5_441 = arith.constant 5 : index
    %c0_442 = arith.constant 0 : index
    %c0_443 = arith.constant 0 : index
    %600 = vector.load %arg22[%c5_441, %c0_442, %c0_443] : memref<6x5x1xf32, #tpu.memory_space<vmem>>, vector<1x5x1xf32>
    %601 = vector.shape_cast %600 : vector<1x5x1xf32> to vector<5x1xf32>
    %602 = vector.broadcast %601 : vector<5x1xf32> to vector<5x32xf32>
    %603 = arith.addf %599, %602 : vector<5x32xf32>
    %cst_444 = arith.constant 5.000000e-01 : f32
    %604 = vector.broadcast %cst_444 : f32 to vector<5x32xf32>
    %605 = arith.mulf %604, %519 : vector<5x32xf32>
    %cst_445 = arith.constant 0.000000e+00 : f32
    %606 = vector.broadcast %cst_445 : f32 to vector<5x32xf32>
    %607 = arith.maximumf %603, %606 : vector<5x32xf32>
    %cst_446 = arith.constant 5.000000e-01 : f32
    %608 = vector.broadcast %cst_446 : f32 to vector<5x32xf32>
    %609 = arith.mulf %608, %607 : vector<5x32xf32>
    %610 = arith.addf %605, %609 : vector<5x32xf32>
    %c0_447 = arith.constant 0 : index
    %c0_448 = arith.constant 0 : index
    %611 = vector.load %arg8[%c0_447, %c0_448] : memref<80x5xbf16, #tpu.memory_space<vmem>>, vector<80x5xbf16>
    %612 = arith.truncf %610 : vector<5x32xf32> to vector<5x32xbf16>
    %cst_449 = arith.constant dense<0.000000e+00> : vector<80x32xf32>
    %613 = tpu.matmul %611, %612, %cst_449 {dimension_numbers = #tpu.dot_dimension_numbers<[1], [0], [0], [1], [0, 0, 1, 1], [], []>} : vector<80x5xbf16>, vector<5x32xbf16>, vector<80x32xf32> -> vector<80x32xf32>
    %c0_450 = arith.constant 0 : index
    %c0_451 = arith.constant 0 : index
    %614 = vector.load %arg5[%c0_450, %c0_451] : memref<80x1xf32, #tpu.memory_space<vmem>>, vector<80x1xf32>
    %615 = vector.broadcast %614 : vector<80x1xf32> to vector<80x32xf32>
    %616 = arith.addf %613, %615 : vector<80x32xf32>
    %cst_452 = arith.constant 0.000000e+00 : f32
    %617 = vector.broadcast %cst_452 : f32 to vector<80x32xf32>
    %618 = arith.maximumf %616, %617 : vector<80x32xf32>
    %c0_453 = arith.constant 0 : index
    %c0_454 = arith.constant 0 : index
    %619 = vector.load %arg9[%c0_453, %c0_454] : memref<80x80xbf16, #tpu.memory_space<vmem>>, vector<80x80xbf16>
    %620 = arith.truncf %618 : vector<80x32xf32> to vector<80x32xbf16>
    %cst_455 = arith.constant dense<0.000000e+00> : vector<80x32xf32>
    %621 = tpu.matmul %619, %620, %cst_455 {dimension_numbers = #tpu.dot_dimension_numbers<[1], [0], [0], [1], [0, 0, 1, 1], [], []>} : vector<80x80xbf16>, vector<80x32xbf16>, vector<80x32xf32> -> vector<80x32xf32>
    %c0_456 = arith.constant 0 : index
    %c0_457 = arith.constant 0 : index
    %622 = vector.load %arg6[%c0_456, %c0_457] : memref<80x1xf32, #tpu.memory_space<vmem>>, vector<80x1xf32>
    %623 = vector.broadcast %622 : vector<80x1xf32> to vector<80x32xf32>
    %624 = arith.addf %621, %623 : vector<80x32xf32>
    %cst_458 = arith.constant 0.000000e+00 : f32
    %625 = vector.broadcast %cst_458 : f32 to vector<80x32xf32>
    %626 = arith.maximumf %624, %625 : vector<80x32xf32>
    %c0_459 = arith.constant 0 : index
    %c0_460 = arith.constant 0 : index
    %627 = vector.load %arg10[%c0_459, %c0_460] : memref<3x80xbf16, #tpu.memory_space<vmem>>, vector<3x80xbf16>
    %628 = arith.truncf %626 : vector<80x32xf32> to vector<80x32xbf16>
    %cst_461 = arith.constant dense<0.000000e+00> : vector<3x32xf32>
    %629 = tpu.matmul %627, %628, %cst_461 {dimension_numbers = #tpu.dot_dimension_numbers<[1], [0], [0], [1], [0, 0, 1, 1], [], []>} : vector<3x80xbf16>, vector<80x32xbf16>, vector<3x32xf32> -> vector<3x32xf32>
    %c0_462 = arith.constant 0 : index
    %c0_463 = arith.constant 0 : index
    %630 = vector.load %arg7[%c0_462, %c0_463] : memref<3x1xf32, #tpu.memory_space<vmem>>, vector<3x1xf32>
    %631 = vector.broadcast %630 : vector<3x1xf32> to vector<3x32xf32>
    %632 = arith.addf %629, %631 : vector<3x32xf32>
    %633 = vector.extract_strided_slice %632 {offsets = [0, 0], sizes = [1, 32], strides = [1, 1]} : vector<3x32xf32> to vector<1x32xf32>
    %cst_464 = arith.constant 0.000000e+00 : f32
    %634 = vector.broadcast %cst_464 : f32 to vector<1x32xf32>
    %635 = arith.subf %634, %633 : vector<1x32xf32>
    %636 = math.exp %635 : vector<1x32xf32>
    %cst_465 = arith.constant 1.000000e+00 : f32
    %637 = vector.broadcast %cst_465 : f32 to vector<1x32xf32>
    %638 = arith.addf %637, %636 : vector<1x32xf32>
    %cst_466 = arith.constant 1.000000e+00 : f32
    %639 = vector.broadcast %cst_466 : f32 to vector<1x32xf32>
    %640 = arith.divf %639, %638 : vector<1x32xf32>
    %cst_467 = arith.constant 0.999997973 : f32
    %641 = vector.broadcast %cst_467 : f32 to vector<1x32xf32>
    %642 = arith.mulf %641, %640 : vector<1x32xf32>
    %cst_468 = arith.constant 9.99999997E-7 : f32
    %643 = vector.broadcast %cst_468 : f32 to vector<1x32xf32>
    %644 = arith.addf %643, %642 : vector<1x32xf32>
    %c0_469 = arith.constant 0 : index
    %c0_470 = arith.constant 0 : index
    %645 = vector.load %arg42[%c0_469, %c0_470] : memref<1x32xf32, #tpu.memory_space<vmem>>, vector<1x32xf32>
    tpu.vector_store %arg42[%c0_469, %c0_470], %644 {strides = array<i32>} : memref<1x32xf32, #tpu.memory_space<vmem>>, vector<1x32xf32>,
    %646 = vector.extract_strided_slice %632 {offsets = [1, 0], sizes = [2, 32], strides = [1, 1]} : vector<3x32xf32> to vector<2x32xf32>
    %c0_471 = arith.constant 0 : index
    %c0_472 = arith.constant 0 : index
    %647 = vector.load %arg43[%c0_471, %c0_472] : memref<2x32xf32, #tpu.memory_space<vmem>>, vector<2x32xf32>
    tpu.vector_store %arg43[%c0_471, %c0_472], %646 {strides = array<i32>} : memref<2x32xf32, #tpu.memory_space<vmem>>, vector<2x32xf32>,
    return
  }
}

</mosaic_0001>

<bundles_post_ra>
// kernel: graph_tcn_forward.1
= control target key start
LH: loop header
LB: loop body
LE: loop exit
PB: predicated region body
PF: predicated region fallthrough
CT: control target
= control target key end

     0   :  { %s6445_s6 = smov 1   ;;  %s6446_s10 = smov 2   ;;  %s7661_s0 = inlined_call_operand.smem [shape: u32[44], index: -1, kind: input, shape index: {}] }
   0x1   :  { %s6502_s5 = sld [smem:[%s7661_s0]]   ;;  %s6447_s14 = smov 3  }
   0x2   :  { %s6507_s9 = sld [smem:[%s7661_s0 + %s6445_s6]]   ;;  %s6448_s18 = smov 4  }
   0x3   :  { %s6512_s13 = sld [smem:[%s7661_s0 + %s6446_s10]]   ;;  %s6449_s22 = smov 5  }
   0x4   :  { %s6517_s17 = sld [smem:[%s7661_s0 + %s6447_s14]]   ;;  %s6450_s26 = smov 6  }
   0x5   :  { %s6522_s21 = sld [smem:[%s7661_s0 + %s6448_s18]]   ;;  %s6451_s30 = smov 7  }
   0x6   :  { %s6527_s25 = sld [smem:[%s7661_s0 + %s6449_s22]]   ;;  %s6452_s4 = smov 8  }
   0x7   :  { %7686 = sst [smem:[#allocation9_spill]] %s6502_s5  ;;  %s6453_s10 = smov 9  }
   0x8   :  { %7687 = sst [smem:[#allocation10_spill]] %s6507_s9  ;;  %s6454_s15 = smov 10  }
   0x9   :  { %s6532_s29 = sld [smem:[%s7661_s0 + %s6450_s26]]   ;;  %s6455_s20 = smov 11  }
   0xa   :  { %s6537_s3 = sld [smem:[%s7661_s0 + %s6451_s30]]   ;;  %s6456_s26 = smov 12  }
   0xb   :  { %s6542_s8 = sld [smem:[%s7661_s0 + %s6452_s4]]   ;;  %s6457_s1 = smov 13  }
   0xc   :  { %7688 = sst [smem:[#allocation11_spill]] %s6527_s25  ;;  %s6458_s7 = smov 14  }
   0xd   :  { %s6547_s14 = sld [smem:[%s7661_s0 + %s6453_s10]]   ;;  %s6460_s22 = smov 16  }
   0xe   :  { %s6552_s19 = sld [smem:[%s7661_s0 + %s6454_s15]]   ;;  %s6459_s15 = smov 15  }
   0xf   :  { %7689 = sst [smem:[#allocation12_spill]] %s6532_s29  ;;  %s6461_s28 = smov 17  }
  0x10   :  { %7690 = sst [smem:[#allocation13_spill]] %s6537_s3  ;;  %s6482_s10 = smov 38  }
  0x11   :  { %7691 = sst [smem:[#allocation14_spill]] %s6542_s8  ;;  %s6483_s16 = smov 39  }
  0x12   :  { %s6557_s24 = sld [smem:[%s7661_s0 + %s6455_s20]]   ;;  %s6484_s23 = smov 40  }
  0x13   :  { %7692 = sst [smem:[#allocation15_spill]] %s6547_s14 }
  0x14   :  { %7693 = sst [smem:[#allocation16_spill]] %s6552_s19 }
  0x15   :  { %s6562_s30 = sld [smem:[%s7661_s0 + %s6456_s26]]  }
  0x16   :  { %s6567_s6 = sld [smem:[%s7661_s0 + %s6457_s1]]   ;;  %s6485_s1 = smov 41  }
  0x17   :  { %s6572_s12 = sld [smem:[%s7661_s0 + %s6458_s7]]   ;;  %s6462_s7 = smov 18  }
  0x18   :  { %s6577_s20 = sld [smem:[%s7661_s0 + %s6459_s15]]   ;;  %s6463_s15 = smov 19  }
  0x19   :  { %s6582_s27 = sld [smem:[%s7661_s0 + %s6460_s22]]   ;;  %s6464_s22 = smov 20  }
  0x1a   :  { %s6587_s4 = sld [smem:[%s7661_s0 + %s6461_s28]]   ;;  %s6465_s28 = smov 21  }
  0x1b   :  { %7694 = sst [smem:[#allocation17_spill]] %s6562_s30 }
  0x1c   :  { %s6592_s19 = sld [smem:[%s7661_s0 + %s6462_s7]]   ;;  %s6466_s7 = smov 22  }
  0x1d   :  { %s6597_s14 = sld [smem:[%s7661_s0 + %s6463_s15]]   ;;  %s6467_s15 = smov 23  }
  0x1e   :  { %7695 = sst [smem:[#allocation18_spill]] %s6577_s20 }
  0x1f   :  { %7696 = sst [smem:[#allocation19_spill]] %s6582_s27 }
  0x20   :  { %7697 = sst [smem:[#allocation20_spill]] %s6587_s4 }
  0x21   :  { %s6602_s8 = sld [smem:[%s7661_s0 + %s6464_s22]]   ;;  %s6468_s22 = smov 24  }
  0x22   :  { %7698 = sst [smem:[#allocation21_spill]] %s6592_s19 }
  0x23   :  { %7699 = sst [smem:[#allocation22_spill]] %s6597_s14 }
  0x24   :  { %s6607_s27 = sld [smem:[%s7661_s0 + %s6465_s28]]   ;;  %s6469_s28 = smov 25  }
  0x25   :  { %s6612_s20 = sld [smem:[%s7661_s0 + %s6466_s7]]   ;;  %s6470_s7 = smov 26  }
  0x26   :  { %s6617_s14 = sld [smem:[%s7661_s0 + %s6467_s15]]   ;;  %s6471_s15 = smov 27  }
  0x27   :  { %s6622_s19 = sld [smem:[%s7661_s0 + %s6468_s22]]   ;;  %s6472_s22 = smov 28  }
  0x28   :  { %s6627_s4 = sld [smem:[%s7661_s0 + %s6469_s28]]   ;;  %s6473_s28 = smov 29  }
  0x29   :  { %s6632_s3 = sld [smem:[%s7661_s0 + %s6470_s7]]   ;;  %s6474_s7 = smov 30  }
  0x2a   :  { %s6695_s9 = sld [smem:[%s7661_s0 + %s6483_s16]]   ;;  %s6487_s16 = smov 43  }
  0x2b   :  { %s6705_s5 = sld [smem:[%s7661_s0 + %s6485_s1]]  }
  0x2c   :  { %7700 = sst [smem:[#allocation23_spill]] %s6617_s14 }
  0x2d   :  { %7701 = sst [smem:[#allocation24_spill]] %s6622_s19 }
  0x2e   :  { %7702 = sst [smem:[#allocation25_spill]] %s6627_s4 }
  0x2f   :  { %7703 = sst [smem:[#allocation26_spill]] %s6632_s3 }
  0x30   :  { %s6637_s14 = sld [smem:[%s7661_s0 + %s6471_s15]]   ;;  %s6475_s15 = smov 31  }
  0x31   :  { %s6642_s19 = sld [smem:[%s7661_s0 + %s6472_s22]]   ;;  %s6476_s22 = smov 32  }
  0x32   :  { %s6647_s4 = sld [smem:[%s7661_s0 + %s6473_s28]]   ;;  %s6477_s28 = smov 33  }
  0x33   :  { %s6652_s3 = sld [smem:[%s7661_s0 + %s6474_s7]]   ;;  %s6478_s7 = smov 34  }
  0x34   :  { %s6657_s29 = sld [smem:[%s7661_s0 + %s6475_s15]]   ;;  %s6479_s15 = smov 35  }
  0x35   :  { %s6662_s25 = sld [smem:[%s7661_s0 + %s6476_s22]]   ;;  %s6480_s22 = smov 36  }
  0x36   :  { %s6667_s30 = sld [smem:[%s7661_s0 + %s6477_s28]]   ;;  %s6481_s28 = smov 37  }
  0x37   :  { %7711 = sst [smem:[#allocation34_spill]] %s6695_s9 }
  0x38   :  { %s6715_s9 = sld [smem:[%s7661_s0 + %s6487_s16]]  }
  0x39   :  { %7704 = sst [smem:[#allocation27_spill]] %s6652_s3 }
  0x3a   :  { %7705 = sst [smem:[#allocation28_spill]] %s6657_s29 }
  0x3b   :  { %7706 = sst [smem:[#allocation29_spill]] %s6662_s25 }
  0x3c   :  { %7707 = sst [smem:[#allocation30_spill]] %s6667_s30 }
  0x3d   :  { %s6672_s3 = sld [smem:[%s7661_s0 + %s6478_s7]]  }
  0x3e   :  { %s6677_s29 = sld [smem:[%s7661_s0 + %s6479_s15]]  }
  0x3f   :  { %s6682_s25 = sld [smem:[%s7661_s0 + %s6480_s22]]  }
  0x40   :  { %s5203_s30 = sld [smem:[%s7661_s0 + %s6481_s28]]  }
  0x43   :  { %7708 = sst [smem:[#allocation31_spill]] %s6672_s3 }
  0x44   :  { %s6690_s3 = sld [smem:[%s7661_s0 + %s6482_s10]]   ;;  %s6486_s10 = smov 42  }
  0x45   :  { %7709 = sst [smem:[#allocation32_spill]] %s6682_s25 }
  0x46   :  { %s6700_s25 = sld [smem:[%s7661_s0 + %s6484_s23]]   ;;  %v93_v0 = vstv %s5203_s30 }
  0x47   :  { %94 = vst [vmem:[#allocation2] sm:$0x1] %v93_v0 }
  0x4a   :  { %7710 = sst [smem:[#allocation33_spill]] %s6690_s3 }
  0x4b   :  { %s6710_s3 = sld [smem:[%s7661_s0 + %s6486_s10]]  }
  0x4c   :  { %95 = vsyncpa [#allocation4], 0  ;;  %v279_v1 = vld [vmem:[%s6517_s17] sm:$0x7f]  ;;  %vm309_vm0 = vcmask 1042432   ;;  %vm310_vm1 = vcmask 1043456  }
  0x4d   :  { %vm7683_vm2 = vcmask 1041408   ;;  %v285_v2 = vpack.c.bf16 %v279_v1, %v279_v1  ;;  %v6488_v3 = vmov 65535  }
  0x4e   :  { %v311_v4 = vsel %vm309_vm0, 4294967295, %v6488_v3  ;;  %v527_v5 = vsel %vm7683_vm2, 4294967295, %v6488_v3 }
  0x4f   :  { %v6720_v6 = vsel %vm310_vm1, %v311_v4, 0  ;;  %v6722_v7 = vsel %vm309_vm0, %v527_v5, 0 }
  0x50   :  { %v314_v8 = vand.u32 %v6720_v6, %v285_v2 }
  0x51   :  { %96 = vsyncpa [#allocation6], 0  ;;  %v6221_v9 = vld [vmem:[%s6567_s6] sm:$0xff]  ;;  %vm7681_vm3 = vcmask 56320   ;;  %v664_v11 = vld [vmem:[%s6637_s14 + $0x18] sm:$0xff]  ;;  %v6489_v13 = vmov 0  }
  0x52   :  { %323 = vmatpush.bf16.msra.mxu0 %v314_v8  ;;  %v665_v10 = vld [vmem:[%s6637_s14 + $0x20] sm:$0xff]  ;;  %6380 = vset.pattern.permute.xlu0 %v6489_v13  ;;  %v6224_v16 = vld [vmem:[%s6557_s24 + $0x8] sm:$0xff]  ;;  %vm389_vm4 = vcmask 31744   ;;  %v663_v17 = vld [vmem:[%s6637_s14 + $0x10] sm:$0xff]  ;;  %vm348_vm5 = vcmask 326656   ;;  %s7712_s0 = sld [smem:[#allocation9_spill]] }
  0x53   :  { %v369_v12 = vld [vmem:[%s6522_s21] sm:$0xf]  ;;  %6381 = vset.pattern.permute.xlu1 %v6489_v13  ;;  %688 = vperm.xlu0 %6380, %v665_v10   ;;  %v6222_v19 = vld [vmem:[%s6567_s6 + $0x8] sm:$0xff]  ;;  %v374_v20 = vld [vmem:[%s6557_s24 + $0x10] sm:$0xf]  ;;  %s7715_s30 = sld [smem:[#allocation17_spill]] }
  0x54   :  { %v375_v14 = vpack.c.bf16 %v369_v12, %v369_v12  ;;  %683 = vperm.xlu1 %6381, %v664_v11   ;;  %6382 = vset.pattern.permute.xlu2 %v6489_v13  ;;  %v661_v18 = vld [vmem:[%s6637_s14] sm:$0xff]  ;;  %v711_v21 = vld [vmem:[%s6642_s19 + $0x10] sm:$0xff]  ;;  %v712_v22 = vld [vmem:[%s6642_s19 + $0x18] sm:$0xff]  ;;  %v385_v23 = vunpack.c.l.b16 %v374_v20  ;;  %s7741_s23 = sld [smem:[#allocation23_spill]]  ;;  %s6492_s16 = smov [#allocation5]  }
  0x55   :  { %5234 = vmatmul.msk.bf16.vlgmr.msra.gmra.mxu0 %vm7681_vm3, %v6221_v9  ;;  %v284_v25 = vld [vmem:[%s6567_s6 + $0x10] sm:$0xf]  ;;  %v710_v26 = vld [vmem:[%s6642_s19 + $0x8] sm:$0xff]  ;;  %v223_v30 = vld [vmem:[%s6512_s13 + $0x20] sm:$0xff]  ;;  %s7725_s6 = sld [smem:[#allocation28_spill]]  ;;  %s5149_s15 = sshll.u32 %s6492_s16, 4  ;;  %s5150_s15 = int_to_ptr.vmem [resolvable:$true] %s5149_s15 }
  0x56   :  { %v401_v15 = vsel %vm7683_vm2, %v375_v14, 0  ;;  %v388_v24 = vpack.c.b16 %v385_v23, %v385_v23  ;;  %v225_v27 = vld [vmem:[%s6512_s13 + $0x30] sm:$0xff]  ;;  %v295_v28 = vunpack.c.l.b16 %v284_v25  ;;  %v224_v31 = vld [vmem:[%s6512_s13 + $0x28] sm:$0xff]  ;;  %v6223_v32 = vld [vmem:[%s6557_s24] sm:$0xff]  ;;  %s7714_s24 = sld [smem:[#allocation32_spill]]  ;;  %s5151_s18 = sshll.u32 %s6715_s9, 4  ;;  %s5152_s18 = int_to_ptr.hbm [resolvable:$true] %s5151_s18 }
  0x57   :  { %6329 = vmatpush.bf16.msra.mxu3 %v401_v15  ;;  %410 = vmatpush.bf16.msra.mxu2 %v401_v15  ;;  %v222_v33 = vld [vmem:[%s6512_s13 + $0x18] sm:$0xff]  ;;  %v662_v34 = vld [vmem:[%s6637_s14 + $0x8] sm:$0xff]  ;;  %v219_v35 = vld [vmem:[%s6512_s13] sm:$0xff]  ;;  %s7743_s22 = sld [smem:[#allocation25_spill]] }
  0x58   :  { %v298_v29 = vpack.c.b16 %v295_v28, %v295_v28  ;;  %673 = vperm.xlu2 %6382, %v662_v34   ;;  %v796_v36 = vld [vmem:[%s6647_s4] sm:$0xf]  ;;  %v948_v39 = vld [vmem:[%s6602_s8 + $0x18] sm:$0xff]  ;;  %v995_v45 = vld [vmem:[%s6607_s27 + $0x10] sm:$0xff]  ;;  %s7744_s26 = sld [smem:[#allocation26_spill]] }
  0x59   :  { %v713_v37 = vld [vmem:[%s6642_s19 + $0x20] sm:$0xff]  ;;  %v226_v44 = vld [vmem:[%s6512_s13 + $0x38] sm:$0xff]  ;;  %v221_v48 = vld [vmem:[%s6512_s13 + $0x10] sm:$0xff]  ;;  %s7745_s1 = sld [smem:[#allocation33_spill]] }
  0x5a   :  { %5247 = vmatmul.msk.bf16.vlgmr.msra.gmra.mxu3 %vm389_vm4, %v6224_v16  ;;  %5246 = vmatmul.msk.bf16.vlgmr.msra.gmra.mxu2 %vm389_vm4, %v6223_v32  ;;  %v949_v38 = vld [vmem:[%s6602_s8 + $0x20] sm:$0xff]  ;;  %v994_v49 = vld [vmem:[%s6607_s27 + $0x8] sm:$0xff]  ;;  %v5435_v53 = vld [vmem:[%s6637_s14 + $0x38] sm:$0xff]  ;;  %s7753_s28 = sld [smem:[#allocation34_spill]] }
  0x5b   :  { %678 = vperm.xlu0 %6380, %v663_v17   ;;  %v709_v40 = vld [vmem:[%s6642_s19] sm:$0xff]  ;;  %v5437_v50 = vld [vmem:[%s6637_s14 + $0x48] sm:$0xff]  ;;  %v947_v56 = vld [vmem:[%s6602_s8 + $0x10] sm:$0xff]  ;;  %s7756_s2 = sld [smem:[#allocation21_spill]] }
  0x5c   :  { %668 = vperm.xlu1 %6381, %v661_v18   ;;  %v945_v41 = vld [vmem:[%s6602_s8] sm:$0xff]  ;;  %v220_v52 = vld [vmem:[%s6512_s13 + $0x8] sm:$0xff]  ;;  %v5434_v57 = vld [vmem:[%s6637_s14 + $0x30] sm:$0xff]  ;;  %s7713_s13 = sld [smem:[#allocation10_spill]] }
  0x5d   :  { %v997_v42 = vld [vmem:[%s6607_s27 + $0x20] sm:$0xff]  ;;  %v5433_v54 = vld [vmem:[%s6637_s14 + $0x28] sm:$0xff]  ;;  %v5445_v58 = vld [vmem:[%s6642_s19 + $0x38] sm:$0xff]  ;;  %s7757_s10 = sld [smem:[#allocation18_spill]] }
  0x5e   :  { %v993_v46 = vld [vmem:[%s6607_s27] sm:$0xff]  ;;  %v946_v61 = vld [vmem:[%s6602_s8 + $0x8] sm:$0xff]  ;;  %v5444_v2 = vld [vmem:[%s6642_s19 + $0x30] sm:$0xff]  ;;  %s7805_s7 = sld [smem:[#allocation15_spill]] }
  0x5f   :  { %v5446_v62 = vld [vmem:[%s6642_s19 + $0x40] sm:$0xff]  ;;  %v996_v9 = vld [vmem:[%s6607_s27 + $0x18] sm:$0xff]  ;;  %v5530_v32 = vld [vmem:[%s6612_s20 + $0x8] sm:$0x1f]  ;;  %s7806_s11 = sld [smem:[#allocation16_spill]] }
  0x60   :  { %736 = vperm.xlu2 %6382, %v713_v37   ;;  %v5460_v10 = vld [vmem:[%s6647_s4 + $0x4] sm:$0xf]  ;;  %v5505_v14 = vld [vmem:[%s6602_s8 + $0x38] sm:$0xff]  ;;  %v344_v15 = vld [vmem:[%s6572_s12] sm:$0x7]  ;;  %s7737_s12 = sld [smem:[#allocation13_spill]] }
  0x61   :  { %v1080_v16 = vld [vmem:[%s6612_s20] sm:$0x1f]  ;;  %v5443_v34 = vld [vmem:[%s6642_s19 + $0x28] sm:$0xff] }
  0x62   :  { %v5506_v17 = vld [vmem:[%s6602_s8 + $0x40] sm:$0xff]  ;;  %v5507_v37 = vld [vmem:[%s6602_s8 + $0x48] sm:$0xff] }
  0x63   :  { %726 = vperm.xlu0 %6380, %v711_v21   ;;  %v5436_v20 = vld [vmem:[%s6637_s14 + $0x40] sm:$0xff]  ;;  %v5517_v21 = vld [vmem:[%s6607_s27 + $0x48] sm:$0xff] }
  0x64   :  { %731 = vperm.xlu1 %6381, %v712_v22   ;;  %v5516_v23 = vld [vmem:[%s6607_s27 + $0x40] sm:$0xff] }
  0x65   :  { %5235 = vmatmul.msk.bf16.gmra.mxu0 %vm7681_vm3, %v6222_v19  ;;  %v5504_v19 = vld [vmem:[%s6602_s8 + $0x30] sm:$0xff] }
  0x68   :  { %716 = vperm.xlu2 %6382, %v709_v40   ;;  %v5503_v40 = vld [vmem:[%s6602_s8 + $0x28] sm:$0xff] }
  0x6a   :  { %5248 = vmatmul.msk.bf16.gmra.mxu3 %vm389_vm4, %v388_v24 }
  0x6b   :  { %721 = vperm.xlu0 %6380, %v710_v26   ;;  %v5447_v26 = vld [vmem:[%s6642_s19 + $0x48] sm:$0xff] }
  0x6c   :  { %246 = vperm.xlu1 %6381, %v225_v27   ;;  %v5513_v27 = vld [vmem:[%s6607_s27 + $0x28] sm:$0xff] }
  0x70   :  { %249 = vperm.xlu2 %6382, %v226_v44   ;;  %v5617_v44 = vld [vmem:[%s6642_s19 + $0x58] sm:$0xff] }
  0x73   :  { %240 = vperm.xlu0 %6380, %v223_v30  }
  0x74   :  { %243 = vperm.xlu1 %6381, %v224_v31  }
  0x75   :  { %5236 = vmatmul.msk.bf16.gmra.mxu0 %vm7681_vm3, %v298_v29 }
  0x78   :  { %234 = vperm.xlu2 %6382, %v221_v48   ;;  %v2359_v48 = vld [vmem:[%s6677_s29 + $0x10] sm:$0xff] }
  0x7b   :  { %237 = vperm.xlu0 %6380, %v222_v33  }
  0x7c   :  { %228 = vperm.xlu1 %6381, %v219_v35   ;;  %v5610_v35 = vld [vmem:[%s6637_s14 + $0x70] sm:$0xff] }
  0x80   :  { %231 = vperm.xlu2 %6382, %v220_v52   ;;  %v2357_v52 = vld [vmem:[%s6677_s29] sm:$0xff] }
  0x83   :  { %799 = vperm.xlu0 %6380, %v796_v36   ;;  %v5609_v36 = vld [vmem:[%s6637_s14 + $0x68] sm:$0xff] }
  0x84   :  { %972 = vperm.xlu1 %6381, %v949_v38   ;;  %v5606_v38 = vld [vmem:[%s6637_s14 + $0x50] sm:$0xff] }
  0x88   :  { %962 = vperm.xlu2 %6382, %v947_v56   ;;  %v5608_v56 = vld [vmem:[%s6637_s14 + $0x60] sm:$0xff] }
  0x8b   :  { %967 = vperm.xlu0 %6380, %v948_v39   ;;  %v5620_v39 = vld [vmem:[%s6642_s19 + $0x70] sm:$0xff] }
  0x8c   :  { %952 = vperm.xlu1 %6381, %v945_v41   ;;  %v5618_v41 = vld [vmem:[%s6642_s19 + $0x60] sm:$0xff] }
  0x90   :  { %957 = vperm.xlu2 %6382, %v946_v61  }
  0x93   :  { %1020 = vperm.xlu0 %6380, %v997_v42   ;;  %v5616_v42 = vld [vmem:[%s6642_s19 + $0x50] sm:$0xff] }
  0x94   :  { %1010 = vperm.xlu1 %6381, %v995_v45   ;;  %v2361_v45 = vld [vmem:[%s6677_s29 + $0x20] sm:$0xff] }
  0x98   :  { %1015 = vperm.xlu2 %6382, %v996_v9   ;;  %v5761_v9 = vld [vmem:[%s6637_s14 + $0x98] sm:$0xff] }
  0x9b   :  { %1000 = vperm.xlu0 %6380, %v993_v46   ;;  %v180_v46 = vlaneseq }
  0x9c   :  { %1005 = vperm.xlu1 %6381, %v994_v49  }
  0xa0   :  { %1083 = vperm.xlu2 %6382, %v1080_v16  }
  0xa3   :  { %1437 = vperm.xlu0 %6380, %v5437_v50   ;;  %v181_v50 = vshrl.u32 %v180_v46, 7 }
  0xa4   :  { %1427 = vperm.xlu1 %6381, %v5435_v53  }
  0xa5   :  { %v183_v53 = vadd.s32 16, %v181_v50 }
  0xa8   :  { %1432 = vperm.xlu2 %6382, %v5436_v20   ;;  %v2409_v20 = vld [vmem:[%s7714_s24 + $0x20] sm:$0xff] }
  0xab   :  { %1417 = vperm.xlu0 %6380, %v5433_v54   ;;  %v184_v54 = vadd.s32 24, %v181_v50 }
  0xac   :  { %1422 = vperm.xlu1 %6381, %v5434_v57   ;;  %v2358_v57 = vld [vmem:[%s6677_s29 + $0x8] sm:$0xff] }
  0xb0   :  { %1487 = vperm.xlu2 %6382, %v5447_v26   ;;  %v5759_v26 = vld [vmem:[%s6637_s14 + $0x88] sm:$0xff] }
  0xb3   :  { %1477 = vperm.xlu0 %6380, %v5445_v58  }
  0xb4   :  { %1482 = vperm.xlu1 %6381, %v5446_v62  }
  0xb8   :  { %1467 = vperm.xlu2 %6382, %v5443_v34   ;;  %v5837_v34 = vld [vmem:[%s6607_s27 + $0x78] sm:$0xff] }
  0xbb   :  { %1472 = vperm.xlu0 %6380, %v5444_v2   ;;  %v431_v2 = vld [vmem:[%s7715_s30] sm:$0x3] }
  0xbc   :  { %1552 = vperm.xlu1 %6381, %v5460_v10   ;;  %v5760_v10 = vld [vmem:[%s6637_s14 + $0x90] sm:$0xff] }
  0xc0   :  { %1727 = vperm.xlu2 %6382, %v5507_v37   ;;  %v5838_v37 = vld [vmem:[%s6607_s27 + $0x80] sm:$0xff] }
  0xc3   :  { %1717 = vperm.xlu0 %6380, %v5505_v14   ;;  %v5771_v14 = vld [vmem:[%s6642_s19 + $0x98] sm:$0xff] }
  0xc4   :  { %1722 = vperm.xlu1 %6381, %v5506_v17   ;;  %v2360_v17 = vld [vmem:[%s6677_s29 + $0x18] sm:$0xff]  ;;  %s7724_s29 = sld [smem:[#allocation11_spill]] }
  0xc8   :  { %1707 = vperm.xlu2 %6382, %v5503_v40   ;;  %v5916_v40 = vld [vmem:[%s6637_s14 + $0xb0] sm:$0xff] }
  0xcb   :  { %1712 = vperm.xlu0 %6380, %v5504_v19   ;;  %v5767_v19 = vld [vmem:[%s6642_s19 + $0x78] sm:$0xff] }
  0xcc   :  { %1777 = vperm.xlu1 %6381, %v5517_v21   ;;  %v5768_v21 = vld [vmem:[%s6642_s19 + $0x80] sm:$0xff] }
  0xd2   :  { %v325_v43 = vpop.f32.mrf.mxu0 }
  0xd3   :  { %v339_v11 = vmax.f32 %v325_v43, 0.0  ;;  %1772 = vperm.xlu0 %6380, %v5516_v23   ;;  %v5515_v43 = vld [vmem:[%s6607_s27 + $0x38] sm:$0xff]  ;;  %v2405_v23 = vld [vmem:[%s7714_s24] sm:$0xff] }
  0xd4   :  { %1757 = vperm.xlu1 %6381, %v5513_v27   ;;  %1767 = vperm.xlu2 %6382, %v5515_v43   ;;  %v5827_v27 = vld [vmem:[%s6602_s8 + $0x78] sm:$0xff]  ;;  %v5915_v43 = vld [vmem:[%s6637_s14 + $0xa8] sm:$0xff] }
  0xda   :  { %v327_v47 = vpop.f32.mrf.mxu0 }
  0xdb   :  { %v340_v4 = vmax.f32 %v327_v47, 0.0  ;;  %1842 = vperm.xlu0 %6380, %v5530_v32   ;;  %v5514_v47 = vld [vmem:[%s6607_s27 + $0x30] sm:$0xff]  ;;  %v5758_v32 = vld [vmem:[%s6637_s14 + $0x80] sm:$0xff] }
  0xdc   :  { %2156 = vperm.xlu1 %6381, %v5610_v35   ;;  %1762 = vperm.xlu2 %6382, %v5514_v47   ;;  %v5927_v47 = vld [vmem:[%s6642_s19 + $0xb8] sm:$0xff] }
  0xdd   :  { %v345_v12 = vpack.c.bf16 %v340_v4, %v339_v11  ;;  %v417_v13 = vpop.f32.mrf.mxu3  ;;  %v412_v49 = vpop.f32.mrf.mxu2  ;;  %v2408_v4 = vld [vmem:[%s7714_s24 + $0x18] sm:$0xff]  ;;  %v5633_v11 = vld [vmem:[%s6647_s4 + $0x8] sm:$0xf] }
  0xde   :  { %v428_v29 = vmax.f32 %v417_v13, 0.0  ;;  %v182_v13 = vadd.s32 8, %v181_v50 }
  0xe2   :  { %v330_v51 = vpop.f32.mrf.mxu0 }
  0xe3   :  { %v341_v3 = vmax.f32 %v330_v51, 0.0  ;;  %2151 = vperm.xlu0 %6380, %v5609_v36   ;;  %v6383_v51 = vld [vmem:[%s7712_s0] ss:$0 sm:$0xff]  ;;  %v5770_v36 = vld [vmem:[%s6642_s19 + $0x90] sm:$0xff]  ;;  %s6405_s0 = sshra.s32 %s5152_s18, 4  ;;  %s6406_s0 = int_to_ptr.hbm [resolvable:$true] %s6405_s0 }
  0xe4   :  { %2136 = vperm.xlu1 %6381, %v5606_v38   ;;  %vm189_vm6 = vcmp.eq.s32.totalorder %v183_v53, %v6383_v51  ;;  %vm190_vm7 = vcmp.eq.s32.totalorder %v184_v54, %v6383_v51  ;;  %2146 = vperm.xlu2 %6382, %v5608_v56   ;;  %vm187_vm12 = vcmp.eq.s32.totalorder %v181_v50, %v6383_v51  ;;  %v5918_v38 = vld [vmem:[%s6637_s14 + $0xc0] sm:$0xff]  ;;  %p6410_p1 = scmp.lt.s32.totalorder %s6406_s0, %s6715_s9 }
  0xe5   :  { %v419_v18 = vpop.f32.mrf.mxu3  ;;  %vm6810_vm8 = vmpackc.low %vm190_vm7, %vm189_vm6  ;;  %v414_v61 = vpop.f32.mrf.mxu2  ;;  %vm188_vm13 = vcmp.eq.s32.totalorder %v182_v13, %v6383_v51  ;;  %vm7682_vm7 = vcmask 261120   ;;  %v5986_v51 = vld [vmem:[%s6602_s8 + $0xb0] sm:$0xff]  ;;  %v5998_v56 = vld [vmem:[%s6607_s27 + $0xc0] sm:$0xff] }
  0xe6   :  { %v429_v30 = vmax.f32 %v419_v18, 0.0  ;;  %v427_v62 = vmax.f32 %v414_v61, 0.0  ;;  %vm6836_vm0 = vmpackc.low %vm188_vm13, %vm187_vm12  ;;  %v5769_v18 = vld [vmem:[%s6642_s19 + $0x88] sm:$0xff]  ;;  %v5994_v61 = vld [vmem:[%s6607_s27 + $0xa0] sm:$0xff]  ;;  %vm7685_vm13 = vcmask 39936  }
  0xe8   :  { %v433_v33 = vpack.c.bf16 %v429_v30, %v428_v29 }
  0xea   :  { %v332_v55 = vpop.f32.mrf.mxu0 }
  0xeb   :  { %v342_v0 = vmax.f32 %v332_v55, 0.0  ;;  %2206 = vperm.xlu0 %6380, %v5620_v39   ;;  %v6384_v55 = vld [vmem:[%s7713_s13] ss:$0 sm:$0xff]  ;;  %s6407_s13 = scalar_lea.hbm %s6406_s0, 2 }
  0xec   :  { %2196 = vperm.xlu1 %6381, %v5618_v41   ;;  %vm205_vm9 = vcmp.eq.s32.totalorder %v183_v53, %v6384_v55  ;;  %vm206_vm10 = vcmp.eq.s32.totalorder %v184_v54, %v6384_v55  ;;  %vm203_vm14 = vcmp.eq.s32.totalorder %v181_v50, %v6384_v55  ;;  %vm204_vm15 = vcmp.eq.s32.totalorder %v182_v13, %v6384_v55  ;;  %v2492_v39 = vld [vmem:[#allocation2] sm:$0x1]  ;;  %v5941_v50 = vld [vmem:[%s6647_s4 + $0x10] sm:$0xf]  ;;  %v5987_v53 = vld [vmem:[%s6602_s8 + $0xb8] sm:$0xff]  ;;  %p6408_p0 = scmp.ne.s32.totalorder %s6406_s0, %s6407_s13 }
  0xed   :  { %v346_v8 = vpack.c.bf16 %v342_v0, %v341_v3  ;;  %v422_v22 = vpop.f32.mrf.mxu3  ;;  %vm6818_vm11 = vmpackc.low %vm206_vm10, %vm205_vm9  ;;  %v5607_v3 = vld [vmem:[%s6637_s14 + $0x58] sm:$0xff]  ;;  %v5914_v41 = vld [vmem:[%s6637_s14 + $0xa0] sm:$0xff] }
  0xee   :  { %v430_v24 = vmax.f32 %v422_v22, 0.0  ;;  %2141 = vperm.xlu2 %6382, %v5607_v3   ;;  %vm6843_vm6 = vmpackc.low %vm204_vm15, %vm203_vm14  ;;  %v5784_v22 = vld [vmem:[%s6647_s4 + $0xc] sm:$0xf]  ;;  %v5917_v55 = vld [vmem:[%s6637_s14 + $0xb8] sm:$0xff] }
  0xef   :  { %v5985_v54 = vld [vmem:[%s6602_s8 + $0xa8] sm:$0xff] }
  0xf0   :  { %v434_v25 = vpack.c.bf16 %v430_v24, %v430_v24  ;;  %v5831_v24 = vld [vmem:[%s6602_s8 + $0x98] sm:$0xff]  ;;  %v6081_v13 = vld [vmem:[%s6642_s19 + $0xc8] sm:$0xff] }
  0xf2   :  { %v335_v59 = vpop.f32.mrf.mxu0  ;;  %v439_v28 = vsel %vm310_vm1, %v434_v25, 0  ;;  %v5830_v25 = vld [vmem:[%s6602_s8 + $0x90] sm:$0xff] }
  0xf3   :  { %v343_v60 = vmax.f32 %v335_v59, 0.0  ;;  %446 = vmatpush.bf16.msrb.mxu3 %v439_v28  ;;  %2186 = vperm.xlu0 %6380, %v5616_v42   ;;  %v426_v59 = vmax.f32 %v412_v49, 0.0  ;;  %v5841_v28 = vld [vmem:[%s6607_s27 + $0x98] sm:$0xff]  ;;  %v5829_v42 = vld [vmem:[%s6602_s8 + $0x88] sm:$0xff]  ;;  %v5840_v49 = vld [vmem:[%s6607_s27 + $0x90] sm:$0xff] }
  0xf4   :  { %2191 = vperm.xlu1 %6381, %v5617_v44   ;;  %v5926_v44 = vld [vmem:[%s6642_s19 + $0xb0] sm:$0xff] }
  0xf5   :  { %v347_v63 = vpack.c.bf16 %v343_v60, %v343_v60  ;;  %v424_v31 = vpop.f32.mrf.mxu3  ;;  %v6490_v60 = vmov 1.0|1.0   ;;  %v432_v0 = vpack.c.bf16 %v427_v62, %v426_v59  ;;  %v5928_v59 = vld [vmem:[%s6642_s19 + $0xc0] sm:$0xff] }
  0xf6   :  { %5251 = vmatpush.bf16.msk.msrb.mxu2 %vm6810_vm8, %v6490_v60  ;;  %v6011_v62 = vld [vmem:[%s6612_s20 + $0x20] sm:$0x1f] }
  0xf7   :  { %v353_v1 = vsel %vm310_vm1, %v347_v63, 0  ;;  %447 = vmatpush.bf16.msrb.mxu3 %v433_v33  ;;  %v2407_v63 = vld [vmem:[%s7714_s24 + $0x10] sm:$0xff]  ;;  %v5839_v33 = vld [vmem:[%s6607_s27 + $0x88] sm:$0xff] }
  0xf8   :  { %360 = vmatpush.bf16.msra.mxu1 %v353_v1 }
  0xfa   :  { %v337_v5 = vpop.f32.mrf.mxu0  ;;  %5253 = vmatpush.bf16.msk.msrb.mxu2 %vm6836_vm0, %v6490_v60 }
  0xfb   :  { %2384 = vperm.xlu0 %6380, %v2361_v45   ;;  %448 = vmatpush.bf16.msrb.mxu3 %v432_v0  ;;  %v2406_v5 = vld [vmem:[%s7714_s24 + $0x8] sm:$0xff]  ;;  %v5828_v45 = vld [vmem:[%s6602_s8 + $0x80] sm:$0xff]  ;;  %s6409_s24 = scalar_lea.hbm %s6715_s9, 2 }
  0xfc   :  { %361 = vmatpush.bf16.msra.mxu1 %v346_v8  ;;  %2374 = vperm.xlu1 %6381, %v2359_v48   ;;  %v5619_v8 = vld [vmem:[%s6642_s19 + $0x68] sm:$0xff]  ;;  %p6411_p2 = scmp.lt.s32.totalorder %s6409_s24, %s6407_s13 }
  0xfd   :  { %2201 = vperm.xlu2 %6382, %v5619_v8   ;;  %v5925_v48 = vld [vmem:[%s6642_s19 + $0xa8] sm:$0xff] }
  0xfe   :  { %5249 = vmatmul.msk.bf16.vlgmr.msrb.gmra.mxu3 %vm348_vm5, %v431_v2  ;;  %v6075_v0 = vld [vmem:[%s6637_s14 + $0xe8] sm:$0xff]  ;;  %v6074_v2 = vld [vmem:[%s6637_s14 + $0xe0] sm:$0xff]  ;;  %p6412_p3 = por %p6411_p2, %p6410_p1 }
  0xff   :  { %5256 = vmatpush.bf16.msk.msra.mxu3 %vm6818_vm11, %v6490_v60  ;;  %v6085_v8 = vld [vmem:[%s6642_s19 + $0xe8] sm:$0xff] }
 0x100   :  { %362 = vmatpush.bf16.msra.mxu1 %v345_v12  ;;  %v5757_v12 = vld [vmem:[%s6637_s14 + $0x78] sm:$0xff]  ;;  %p6413_p4 = pnand %p6412_p3, %p6408_p0 }
 0x103   :  { %5237 = vmatmul.msk.bf16.vlgmr.msra.gmra.mxu1 %vm348_vm5, %v344_v15  ;;  %2364 = vperm.xlu0 %6380, %v2357_v52   ;;  %v5854_v52 = vld [vmem:[%s6612_s20 + $0x18] sm:$0x1f] }
 0x104   :  { %2369 = vperm.xlu1 %6381, %v2358_v57   ;;  %5258 = vmatpush.bf16.msk.msra.mxu3 %vm6843_vm6, %v6490_v60  ;;  %v5997_v57 = vld [vmem:[%s6607_s27 + $0xb8] sm:$0xff] }
 0x105   :  { %2271 = vperm.xlu2 %6382, %v5633_v11   ;;  %v6083_v11 = vld [vmem:[%s6642_s19 + $0xd8] sm:$0xff] }
 0x10b   :  { %2422 = vperm.xlu0 %6380, %v2407_v63   ;;  %v5924_v63 = vld [vmem:[%s6642_s19 + $0xa0] sm:$0xff] }
 0x10c   :  { %2427 = vperm.xlu1 %6381, %v2408_v4   ;;  %v5988_v4 = vld [vmem:[%s6602_s8 + $0xc0] sm:$0xff] }
 0x10d   :  { %2379 = vperm.xlu2 %6382, %v2360_v17   ;;  %v6911_v17 = vpop.permute.xlu2 %673 }
 0x113   :  { %2417 = vperm.xlu0 %6380, %v2406_v5   ;;  %v6071_v5 = vld [vmem:[%s6637_s14 + $0xc8] sm:$0xff] }
 0x114   :  { %2999 = vperm.xlu1 %6381, %v5761_v9  }
 0x115   :  { %2432 = vperm.xlu2 %6382, %v2409_v20  }
 0x11b   :  { %2994 = vperm.xlu0 %6380, %v5760_v10   ;;  %v5984_v10 = vld [vmem:[%s6602_s8 + $0xa0] sm:$0xff] }
 0x11c   :  { %2979 = vperm.xlu1 %6381, %v5757_v12   ;;  %v6906_v12 = vpop.permute.xlu0 %688 }
 0x11d   :  { %2412 = vperm.xlu2 %6382, %v2405_v23   ;;  %v6920_v23 = vpop.permute.xlu2 %736 }
 0x123   :  { %3049 = vperm.xlu0 %6380, %v5771_v14   ;;  %v6909_v14 = vpop.permute.xlu1 %683 }
 0x124   :  { %3039 = vperm.xlu1 %6381, %v5769_v18   ;;  %v5996_v18 = vld [vmem:[%s6607_s27 + $0xb0] sm:$0xff]  ;;  %v6915_v20 = vpop.permute.xlu0 %678 }
 0x125   :  { %2989 = vperm.xlu2 %6382, %v5759_v26   ;;  %v6141_v26 = vld [vmem:[%s6602_s8 + $0xc8] sm:$0xff] }
 0x12b   :  { %3029 = vperm.xlu0 %6380, %v5767_v19   ;;  %v6082_v19 = vld [vmem:[%s6642_s19 + $0xd0] sm:$0xff] }
 0x12c   :  { %3034 = vperm.xlu1 %6381, %v5768_v21   ;;  %v6145_v21 = vld [vmem:[%s6602_s8 + $0xe8] sm:$0xff] }
 0x12d   :  { %2984 = vperm.xlu2 %6382, %v5758_v32  }
 0x133   :  { %3114 = vperm.xlu0 %6380, %v5784_v22   ;;  %v6918_v22 = vpop.permute.xlu1 %668 }
 0x134   :  { %3291 = vperm.xlu1 %6381, %v5831_v24   ;;  %v5995_v24 = vld [vmem:[%s6607_s27 + $0xa8] sm:$0xff] }
 0x135   :  { %3044 = vperm.xlu2 %6382, %v5770_v36   ;;  %v6154_v36 = vld [vmem:[%s6607_s27 + $0xe0] sm:$0xff] }
 0x13b   :  { %3286 = vperm.xlu0 %6380, %v5830_v25   ;;  %v6143_v25 = vld [vmem:[%s6602_s8 + $0xd8] sm:$0xff]  ;;  %v6929_v32 = vpop.permute.xlu1 %731 }
 0x13c   :  { %3271 = vperm.xlu1 %6381, %v5827_v27   ;;  %v6925_v27 = vpop.permute.xlu0 %726 }
 0x13d   :  { %2495 = vperm.xlu2 %6382, %v2492_v39  }
 0x143   :  { %3341 = vperm.xlu0 %6380, %v5841_v28   ;;  %v6073_v28 = vld [vmem:[%s6637_s14 + $0xd8] sm:$0xff] }
 0x144   :  { %3331 = vperm.xlu1 %6381, %v5839_v33   ;;  %v6931_v33 = vpop.permute.xlu2 %716 }
 0x145   :  { %3281 = vperm.xlu2 %6382, %v5829_v42   ;;  %v6168_v42 = vld [vmem:[%s6612_s20 + $0x28] sm:$0x1f]  ;;  %s7738_s20 = sld [smem:[#allocation30_spill]] }
 0x14b   :  { %3321 = vperm.xlu0 %6380, %v5837_v34   ;;  %v6153_v34 = vld [vmem:[%s6607_s27 + $0xd8] sm:$0xff] }
 0x14c   :  { %3326 = vperm.xlu1 %6381, %v5838_v37   ;;  %v6936_v37 = vpop.permute.xlu0 %721  ;;  %v250_v39 = vpop.permute.xlu2 %249 }
 0x14d   :  { %3276 = vperm.xlu2 %6382, %v5828_v45  }
 0x153   :  { %3664 = vperm.xlu0 %6380, %v5918_v38   ;;  %v247_v38 = vpop.permute.xlu1 %246 }
 0x154   :  { %3654 = vperm.xlu1 %6381, %v5916_v40   ;;  %v6152_v40 = vld [vmem:[%s6607_s27 + $0xd0] sm:$0xff]  ;;  %v241_v45 = vpop.permute.xlu0 %240 }
 0x155   :  { %3336 = vperm.xlu2 %6382, %v5840_v49  }
 0x15b   :  { %3644 = vperm.xlu0 %6380, %v5914_v41   ;;  %v6084_v41 = vld [vmem:[%s6642_s19 + $0xe0] sm:$0xff]  ;;  %s7733_s19 = sld [smem:[#allocation12_spill]] }
 0x15c   :  { %3649 = vperm.xlu1 %6381, %v5915_v43  }
 0x15d   :  { %3406 = vperm.xlu2 %6382, %v5854_v52  }
 0x163   :  { %3704 = vperm.xlu0 %6380, %v5926_v44   ;;  %v218_v44 = vand.u32 127, %v180_v46  ;;  %v235_v46 = vpop.permute.xlu2 %234 }
 0x164   :  { %3709 = vperm.xlu1 %6381, %v5927_v47   ;;  %v4780_v47 = vld [vmem:[%s7724_s29 + $0x48] sm:$0xff] }
 0x165   :  { %3659 = vperm.xlu2 %6382, %v5917_v55   ;;  %vm257_vm9 = vcmp.eq.s32.totalorder %v218_v44, %v247_v38  ;;  %vm258_vm10 = vcmp.eq.s32.totalorder %v218_v44, %v250_v39  ;;  %vm255_vm14 = vcmp.eq.s32.totalorder %v218_v44, %v241_v45  ;;  %vm253_vm3 = vcmp.eq.s32.totalorder %v218_v44, %v235_v46  ;;  %v4937_v45 = vld [vmem:[%s7733_s19 + $0x20] sm:$0xff] }
 0x166   :  { %vm6952_vm12 = vmpackc.low %vm258_vm10, %vm257_vm9  ;;  %v5084_v46 = vld [vmem:[%s7737_s12] sm:$0x7] }
 0x16b   :  { %3699 = vperm.xlu0 %6380, %v5925_v48  }
 0x16c   :  { %3779 = vperm.xlu1 %6381, %v5941_v50  }
 0x16d   :  { %3714 = vperm.xlu2 %6382, %v5928_v59   ;;  %v4777_v59 = vld [vmem:[%s7724_s29 + $0x30] sm:$0xff] }
 0x173   :  { %3945 = vperm.xlu0 %6380, %v5986_v51  }
 0x174   :  { %3950 = vperm.xlu1 %6381, %v5987_v53   ;;  %v244_v53 = vpop.permute.xlu1 %243 }
 0x175   :  { %3694 = vperm.xlu2 %6382, %v5924_v63   ;;  %vm256_vm15 = vcmp.eq.s32.totalorder %v218_v44, %v244_v53  ;;  %v4773_v53 = vld [vmem:[%s7724_s29 + $0x10] sm:$0xff] }
 0x176   :  { %vm6966_vm9 = vmpackc.low %vm256_vm15, %vm255_vm14 }
 0x17b   :  { %3940 = vperm.xlu0 %6380, %v5985_v54  }
 0x17c   :  { %4005 = vperm.xlu1 %6381, %v5998_v56   ;;  %v6229_v56 = vld [vmem:[%s7725_s6] sm:$0xff] }
 0x17d   :  { %3955 = vperm.xlu2 %6382, %v5988_v4   ;;  %v6307_v4 = vld [vmem:[%s7725_s6 + $0x64] sm:$0xff] }
 0x180   :  { %v364_v29 = vpop.f32.mrf.mxu1 }
 0x181   :  { %v6862_v30 = vmax.f32 %v364_v29, 0.0  ;;  %v450_v3 = vpop.f32.mrf.mxu3  ;;  %v6142_v29 = vld [vmem:[%s6602_s8 + $0xd0] sm:$0xff] }
 0x182   :  { %v6941_v43 = vmax.f32 %v450_v3, 0.0  ;;  %v4775_v3 = vld [vmem:[%s7724_s29 + $0x20] sm:$0xff] }
 0x183   :  { %v6866_v31 = vpack.c.bf16 %v6862_v30, %v6862_v30  ;;  %4000 = vperm.xlu0 %6380, %v5997_v57   ;;  %v6098_v57 = vld [vmem:[%s6647_s4 + $0x14] sm:$0xf]  ;;  %s7740_s4 = sld [smem:[#allocation24_spill]] }
 0x184   :  { %3985 = vperm.xlu1 %6381, %v5994_v61   ;;  %v460_v50 = vpack.c.bf16 %v6941_v43, %v6941_v43 }
 0x185   :  { %5254 = vmatmul.msk.bf16.vlgmr.msrb.gmra.mxu2 %vm7682_vm7, %v6866_v31  ;;  %5259 = vmatmul.msk.bf16.vlgmr.msra.gmra.mxu3 %vm7682_vm7, %v6866_v31 }
 0x186   :  { %3935 = vperm.xlu2 %6382, %v5984_v10   ;;  %v229_v10 = vpop.permute.xlu1 %228 }
 0x187   :  { %vm251_vm15 = vcmp.eq.s32.totalorder %v218_v44, %v229_v10 }
 0x188   :  { %v366_v35 = vpop.f32.mrf.mxu1 }
 0x189   :  { %v452_v9 = vpop.f32.mrf.mxu3  ;;  %v6072_v35 = vld [vmem:[%s6637_s14 + $0xd0] sm:$0xff]  ;;  %s7726_s14 = sld [smem:[#allocation27_spill]] }
 0x18a   :  { %v4776_v9 = vld [vmem:[%s7724_s29 + $0x28] sm:$0xff] }
 0x18b   :  { %4070 = vperm.xlu0 %6380, %v6011_v62   ;;  %v6957_v62 = vsel %vm7683_vm2, %v460_v50, 0  ;;  %v4936_v50 = vld [vmem:[%s7733_s19 + $0x18] sm:$0xff] }
 0x18c   :  { %4328 = vperm.xlu1 %6381, %v6075_v0  }
 0x18e   :  { %3995 = vperm.xlu2 %6382, %v5996_v18   ;;  %v4774_v18 = vld [vmem:[%s7724_s29 + $0x18] sm:$0xff] }
 0x18f   :  { %v6227_v63 = vld [vmem:[%s7726_s14] sm:$0xff]  ;;  %v496_v39 = vld [vmem:[%s7726_s14 + $0x10] sm:$0xf] }
 0x193   :  { %4323 = vperm.xlu0 %6380, %v6074_v2  }
 0x194   :  { %4308 = vperm.xlu1 %6381, %v6071_v5   ;;  %v238_v5 = vpop.permute.xlu0 %237 }
 0x195   :  { %vm254_vm10 = vcmp.eq.s32.totalorder %v218_v44, %v238_v5 }
 0x196   :  { %3990 = vperm.xlu2 %6382, %v5995_v24   ;;  %vm6976_vm14 = vmpackc.low %vm254_vm10, %vm253_vm3  ;;  %v6155_v24 = vld [vmem:[%s6607_s27 + $0xe8] sm:$0xff]  ;;  %vm7684_vm3 = vcmask 523264  }
 0x19b   :  { %4378 = vperm.xlu0 %6380, %v6085_v8   ;;  %v6144_v8 = vld [vmem:[%s6602_s8 + $0xe0] sm:$0xff]  ;;  %s7736_s8 = sld [smem:[#allocation29_spill]] }
 0x19c   :  { %4368 = vperm.xlu1 %6381, %v6083_v11   ;;  %v6027_v11 = vld [vmem:[%s7726_s14 + $0x74] sm:$0xf] }
 0x19e   :  { %4318 = vperm.xlu2 %6382, %v6073_v28   ;;  %v4941_v28 = vld [vmem:[%s7733_s19 + $0x40] sm:$0xff] }
 0x1a1   :  { %v6309_v16 = vld [vmem:[%s7736_s8 + $0x64] sm:$0xff] }
 0x1a3   :  { %4358 = vperm.xlu0 %6380, %v6081_v13   ;;  %v232_v13 = vpop.permute.xlu2 %231 }
 0x1a4   :  { %4363 = vperm.xlu1 %6381, %v6082_v19   ;;  %vm252_vm7 = vcmp.eq.s32.totalorder %v218_v44, %v232_v13  ;;  %v4779_v44 = vld [vmem:[%s7724_s29 + $0x40] sm:$0xff] }
 0x1a5   :  { %vm6984_vm2 = vmpackc.low %vm252_vm7, %vm251_vm15  ;;  %vm7742_vm7 = vcmask 1041408   ;;  %vm7747_vm15 = vcmask 261120  }
 0x1a6   :  { %4313 = vperm.xlu2 %6382, %v6072_v35   ;;  %v6151_v35 = vld [vmem:[%s6607_s27 + $0xc8] sm:$0xff]  ;;  %s7739_s27 = sld [smem:[#allocation31_spill]]  ;;  %vm7746_vm10 = vmmov %vm7742_vm7 }
 0x1ab   :  { %4619 = vperm.xlu0 %6380, %v6145_v21   ;;  %v6230_v21 = vld [vmem:[%s7725_s6 + $0x8] sm:$0xff] }
 0x1ac   :  { %4609 = vperm.xlu1 %6381, %v6143_v25   ;;  %v4771_v25 = vld [vmem:[%s7724_s29] sm:$0xff] }
 0x1ae   :  { %4373 = vperm.xlu2 %6382, %v6084_v41   ;;  %v564_v41 = vunpack.c.l.b16 %v496_v39 }
 0x1b3   :  { %4599 = vperm.xlu0 %6380, %v6141_v26   ;;  %v6228_v26 = vld [vmem:[%s7726_s14 + $0x8] sm:$0xff] }
 0x1b4   :  { %4604 = vperm.xlu1 %6381, %v6142_v29   ;;  %v502_v29 = vld [vmem:[%s7725_s6 + $0x10] sm:$0xf] }
 0x1b6   :  { %4443 = vperm.xlu2 %6382, %v6098_v57  }
 0x1bb   :  { %4659 = vperm.xlu0 %6380, %v6153_v34   ;;  %v513_v34 = vunpack.c.l.b16 %v502_v29 }
 0x1bc   :  { %4664 = vperm.xlu1 %6381, %v6154_v36   ;;  %v4942_v36 = vld [vmem:[%s7733_s19 + $0x48] sm:$0xff] }
 0x1bd   :  { %v516_v38 = vpack.c.b16 %v513_v34, %v513_v34 }
 0x1be   :  { %4614 = vperm.xlu2 %6382, %v6144_v8  }
 0x1c3   :  { %4654 = vperm.xlu0 %6380, %v6152_v40   ;;  %v4940_v40 = vld [vmem:[%s7733_s19 + $0x38] sm:$0xff] }
 0x1c4   :  { %4734 = vperm.xlu1 %6381, %v6168_v42   ;;  %v6231_v42 = vld [vmem:[%s7736_s8] sm:$0xff] }
 0x1c6   :  { %4669 = vperm.xlu2 %6382, %v6155_v24  }
 0x1cb   :  { %4828 = vperm.xlu0 %6380, %v4780_v47   ;;  %v567_v47 = vpack.c.b16 %v564_v41, %v564_v41 }
 0x1cc   :  { %4813 = vperm.xlu1 %6381, %v4777_v59   ;;  %v4939_v59 = vld [vmem:[%s7733_s19 + $0x30] sm:$0xff] }
 0x1ce   :  { %4649 = vperm.xlu2 %6382, %v6151_v35  }
 0x1d3   :  { %4803 = vperm.xlu0 %6380, %v4775_v3  }
 0x1d4   :  { %4808 = vperm.xlu1 %6381, %v4776_v9  }
 0x1d6   :  { %4823 = vperm.xlu2 %6382, %v4779_v44  }
 0x1db   :  { %4798 = vperm.xlu0 %6380, %v4774_v18  }
 0x1dc   :  { %4783 = vperm.xlu1 %6381, %v4771_v25  }
 0x1e3   :  { %4985 = vperm.xlu0 %6380, %v4941_v28  }
 0x1e4   :  { %4990 = vperm.xlu1 %6381, %v4942_v36  }
 0x1eb   :  { %4980 = vperm.xlu0 %6380, %v4940_v40  }
 0x1ec   :  { %4965 = vperm.xlu1 %6381, %v4937_v45  }
 0x1f4   :  { %4960 = vperm.xlu1 %6381, %v4936_v50  }
 0x1fc   :  { %5087 = vperm.xlu1 %6381, %v5084_v46  }
 0x208   :  { %v475_v48 = vpop.f32.mrf.mxu2  ;;  %v488_v49 = vpop.f32.mrf.mxu3 }
 0x209   :  { %v497_v51 = vpack.c.bf16 %v475_v48, %v475_v48  ;;  %v503_v52 = vpack.c.bf16 %v488_v49, %v488_v49  ;;  %v4935_v48 = vld [vmem:[%s7733_s19 + $0x10] sm:$0xff]  ;;  %v4778_v49 = vld [vmem:[%s7724_s29 + $0x38] sm:$0xff] }
 0x20a   :  { %4955 = vperm.xlu0 %6380, %v4935_v48   ;;  %4818 = vperm.xlu2 %6382, %v4778_v49  }
 0x20b   :  { %v578_v54 = vand.u32 %v6722_v7, %v497_v51  ;;  %v530_v55 = vand.u32 %v6722_v7, %v503_v52  ;;  %v4934_v51 = vld [vmem:[%s7733_s19 + $0x8] sm:$0xff] }
 0x20c   :  { %v6232_v52 = vld [vmem:[%s7736_s8 + $0x8] sm:$0xff] }
 0x20d   :  { %539 = vmatpush.bf16.msrb.mxu0 %v530_v55  ;;  %6330 = vmatpush.bf16.msrb.mxu1 %v530_v55  ;;  %v607_v55 = vld [vmem:[%s7736_s8 + $0x10] sm:$0xf] }
 0x20e   :  { %587 = vmatpush.bf16.msrb.mxu3 %v578_v54  ;;  %v4772_v54 = vld [vmem:[%s7724_s29 + $0x8] sm:$0xff] }
 0x210   :  { %v477_v0 = vpop.f32.mrf.mxu2  ;;  %v490_v2 = vpop.f32.mrf.mxu3  ;;  %5268 = vmatmul.msk.bf16.vlgmr.msrb.gmra.mxu0 %vm7685_vm13, %v6229_v56  ;;  %5270 = vmatmul.msk.bf16.vlgmr.msrb.gmra.mxu1 %vm7685_vm13, %v516_v38  ;;  %v617_v56 = vunpack.c.l.b16 %v607_v55 }
 0x211   :  { %640 = vmatpush.bf16.msra.mxu0 %v6957_v62  ;;  %5279 = vmatmul.msk.bf16.vlgmr.msrb.gmra.mxu3 %vm7685_vm13, %v6227_v63  ;;  %v4938_v63 = vld [vmem:[%s7733_s19 + $0x28] sm:$0xff]  ;;  %v4933_v0 = vld [vmem:[%s7733_s19] sm:$0xff] }
 0x212   :  { %5306 = vmatpush.bf16.msk.msra.mxu3 %vm6952_vm12, %v6490_v60  ;;  %4950 = vperm.xlu0 %6380, %v4934_v51   ;;  %v620_v57 = vpack.c.b16 %v617_v56, %v617_v56 }
 0x213   :  { %4793 = vperm.xlu2 %6382, %v4773_v53  }
 0x216   :  { %5308 = vmatpush.bf16.msk.msra.mxu3 %vm6966_vm9, %v6490_v60 }
 0x21a   :  { %5310 = vmatpush.bf16.msk.msra.mxu3 %vm6976_vm14, %v6490_v60 }
 0x21b   :  { %4788 = vperm.xlu2 %6382, %v4772_v54  }
 0x21e   :  { %5312 = vmatpush.bf16.msk.msra.mxu3 %vm6984_vm2, %v6490_v60 }
 0x220   :  { %5269 = vmatmul.msk.bf16.gmra.mxu0 %vm7685_vm13, %v6230_v21 }
 0x221   :  { %5280 = vmatmul.msk.bf16.gmra.mxu3 %vm7685_vm13, %v6228_v26 }
 0x223   :  { %4975 = vperm.xlu2 %6382, %v4939_v59  }
 0x22b   :  { %4970 = vperm.xlu2 %6382, %v4938_v63  }
 0x230   :  { %5290 = vmatmul.msk.bf16.vlgmr.msra.gmra.mxu0 %vm389_vm4, %v6231_v42 }
 0x231   :  { %5281 = vmatmul.msk.bf16.gmra.mxu3 %vm7685_vm13, %v567_v47 }
 0x233   :  { %4945 = vperm.xlu2 %6382, %v4933_v0  }
 0x240   :  { %5291 = vmatmul.msk.bf16.gmra.mxu0 %vm389_vm4, %v6232_v52 }
 0x250   :  { %5292 = vmatmul.msk.bf16.gmra.mxu0 %vm389_vm4, %v620_v57 }
 0x28d   :  { %v541_v2 = vpop.f32.mrf.mxu0  ;;  %v551_v13 = vpop.f32.mrf.mxu1 }
 0x294   :  { %v589_v3 = vpop.f32.mrf.mxu3 }
 0x295   :  { %v590_v5 = vadd.f32 %v589_v3, %v541_v2  ;;  %v543_v8 = vpop.f32.mrf.mxu0  ;;  %v553_v24 = vpop.f32.mrf.mxu1  ;;  %v6233_v3 = vld [vmem:[%s7738_s20] sm:$0xff] }
 0x29c   :  { %v591_v9 = vpop.f32.mrf.mxu3 }
 0x29d   :  { %v546_v10 = vpop.f32.mrf.mxu0  ;;  %v592_v45 = vadd.f32 %v591_v9, %v543_v8 }
 0x2a4   :  { %v594_v18 = vpop.f32.mrf.mxu3 }
 0x2a5   :  { %v548_v21 = vpop.f32.mrf.mxu0  ;;  %v595_v40 = vadd.f32 %v594_v18, %v546_v10 }
 0x2ac   :  { %v596_v25 = vpop.f32.mrf.mxu3 }
 0x2ad   :  { %v642_v26 = vpop.f32.mrf.mxu0  ;;  %v597_v39 = vadd.f32 %v596_v25, %v548_v21 }
 0x2ae   :  { %v656_v52 = vadd.f32 %v642_v26, %v590_v5 }
 0x2b0   :  { %v691_v59 = vadd.f32 %v6918_v22, %v656_v52  ;;  %v705_v22 = vld [vmem:[%s7738_s20 + $0x10] sm:$0xf]  ;;  %v6236_v52 = vld [vmem:[%s7740_s4 + $0x8] sm:$0xff] }
 0x2b1   :  { %v748_v5 = vunpack.c.l.b16 %v705_v22 }
 0x2b2   :  { %v696_v0 = vmax.f32 %v691_v59, 0.0 }
 0x2b3   :  { %v751_v8 = vpack.c.b16 %v748_v5, %v748_v5 }
 0x2b4   :  { %v599_v28 = vpop.f32.mrf.mxu3 }
 0x2b5   :  { %v644_v29 = vpop.f32.mrf.mxu0  ;;  %v600_v38 = vadd.f32 %v599_v28, %v551_v13 }
 0x2b6   :  { %v657_v49 = vadd.f32 %v644_v29, %v592_v45 }
 0x2b8   :  { %v692_v54 = vadd.f32 %v6911_v17, %v657_v49  ;;  %v6234_v17 = vld [vmem:[%s7738_s20 + $0x8] sm:$0xff] }
 0x2bc   :  { %v601_v34 = vpop.f32.mrf.mxu3 }
 0x2bd   :  { %v647_v35 = vpop.f32.mrf.mxu0 }
 0x2be   :  { %v658_v47 = vadd.f32 %v647_v35, %v595_v40 }
 0x2c0   :  { %v693_v53 = vadd.f32 %v6915_v20, %v658_v47  ;;  %v920_v20 = vand.u32 %v6722_v7, %v6866_v31 }
 0x2c2   :  { %v698_v63 = vmax.f32 %v693_v53, 0.0  ;;  %v843_v53 = vld [vmem:[%s7740_s4 + $0x10] sm:$0xf] }
 0x2c5   :  { %v649_v36 = vpop.f32.mrf.mxu0 }
 0x2c6   :  { %v659_v41 = vadd.f32 %v649_v36, %v597_v39 }
 0x2c8   :  { %v694_v50 = vadd.f32 %v6909_v14, %v659_v41 }
 0x2ca   :  { %v699_v55 = vmax.f32 %v694_v50, 0.0 }
 0x2cc   :  { %v707_v14 = vpack.c.bf16 %v699_v55, %v698_v63  ;;  %v6238_v63 = vld [vmem:[%s7741_s23 + $0x8] sm:$0xff] }
 0x2cd   :  { %v652_v42 = vpop.f32.mrf.mxu0 }
 0x2ce   :  { %v660_v44 = vadd.f32 %v652_v42, %v600_v38  ;;  %v800_v42 = vpop.permute.xlu0 %799 }
 0x2d0   :  { %v695_v48 = vadd.f32 %v6906_v12, %v660_v44  ;;  %v697_v12 = vmax.f32 %v692_v54, 0.0 }
 0x2d2   :  { %v700_v51 = vmax.f32 %v695_v48, 0.0  ;;  %v706_v2 = vpack.c.bf16 %v697_v12, %v696_v0  ;;  %v1109_v48 = vmul.f32 0.5, %v6941_v43  ;;  %v848_v12 = vld [vmem:[%s7741_s23 + $0x10] sm:$0xf] }
 0x2d4   :  { %v708_v46 = vpack.c.bf16 %v700_v51, %v700_v51 }
 0x2d5   :  { %v654_v56 = vpop.f32.mrf.mxu0 }
 0x2d6   :  { %v762_v57 = vsel %vm310_vm1, %v708_v46, 0  ;;  %v907_v46 = vunpack.c.l.b16 %v843_v53 }
 0x2d7   :  { %769 = vmatpush.bf16.msra.mxu2 %v762_v57  ;;  %v6237_v57 = vld [vmem:[%s7741_s23] sm:$0xff] }
 0x2d8   :  { %v910_v54 = vpack.c.b16 %v907_v46, %v907_v46 }
 0x2db   :  { %770 = vmatpush.bf16.msra.mxu2 %v707_v14  ;;  %v859_v14 = vunpack.c.l.b16 %v848_v12 }
 0x2dd   :  { %v862_v0 = vpack.c.b16 %v859_v14, %v859_v14 }
 0x2df   :  { %771 = vmatpush.bf16.msra.mxu2 %v706_v2 }
 0x2e2   :  { %5301 = vmatmul.msk.bf16.vlgmr.msra.gmra.mxu2 %vm348_vm5, %v6233_v3 }
 0x2e3   :  { %929 = vmatpush.bf16.msrb.mxu2 %v920_v20 }
 0x2e7   :  { %5376 = vmatpush.bf16.msk.msra.mxu2 %vm6810_vm8, %v6490_v60 }
 0x2eb   :  { %5378 = vmatpush.bf16.msk.msra.mxu2 %vm6836_vm0, %v6490_v60 }
 0x2f2   :  { %5302 = vmatmul.msk.bf16.gmra.mxu2 %vm348_vm5, %v6234_v17 }
 0x302   :  { %5303 = vmatmul.msk.bf16.gmra.mxu2 %vm348_vm5, %v751_v8 }
 0x365   :  { %v773_v31 = vpop.f32.mrf.mxu2 }
 0x366   :  { %v774_v36 = vadd.f32 %v773_v31, %v6931_v33 }
 0x368   :  { %v787_v41 = vmax.f32 %v774_v36, 0.0 }
 0x36d   :  { %v775_v9 = vpop.f32.mrf.mxu2 }
 0x36e   :  { %v776_v29 = vadd.f32 %v775_v9, %v6936_v37  ;;  %v6235_v37 = vld [vmem:[%s7740_s4] sm:$0xff] }
 0x36f   :  { %5333 = vmatmul.msk.bf16.vlgmr.msrb.gmra.mxu2 %vm7685_vm13, %v6235_v37 }
 0x370   :  { %v788_v40 = vmax.f32 %v776_v29, 0.0 }
 0x375   :  { %v778_v10 = vpop.f32.mrf.mxu2 }
 0x376   :  { %v779_v26 = vadd.f32 %v778_v10, %v6925_v27  ;;  %v792_v27 = vld [vmem:[%s7739_s27] sm:$0x3]  ;;  %v963_v10 = vpop.permute.xlu2 %962 }
 0x378   :  { %v789_v38 = vmax.f32 %v779_v26, 0.0  ;;  %v968_v26 = vpop.permute.xlu0 %967 }
 0x37d   :  { %v780_v13 = vpop.f32.mrf.mxu2 }
 0x37e   :  { %v781_v24 = vadd.f32 %v780_v13, %v6929_v32  ;;  %v793_v32 = vpack.c.bf16 %v788_v40, %v787_v41  ;;  %v973_v13 = vpop.permute.xlu1 %972 }
 0x37f   :  { %5334 = vmatmul.msk.bf16.gmra.mxu2 %vm7685_vm13, %v6236_v52  ;;  %v989_v52 = vld [vmem:[%s7743_s22 + $0x10] sm:$0xf] }
 0x380   :  { %v790_v34 = vmax.f32 %v781_v24, 0.0  ;;  %v1032_v53 = vunpack.c.l.b16 %v989_v52  ;;  %v5421_v52 = vld [vmem:[%s7736_s8 + $0x24] sm:$0xf] }
 0x382   :  { %v1035_v46 = vpack.c.b16 %v1032_v53, %v1032_v53  ;;  %v1368_v53 = vunpack.c.l.b16 %v5421_v52 }
 0x385   :  { %v783_v18 = vpop.f32.mrf.mxu2 }
 0x386   :  { %v784_v21 = vadd.f32 %v783_v18, %v6920_v23  ;;  %v794_v23 = vpack.c.bf16 %v790_v34, %v789_v38 }
 0x388   :  { %v791_v25 = vmax.f32 %v784_v21, 0.0 }
 0x38a   :  { %v795_v28 = vpack.c.bf16 %v791_v25, %v791_v25 }
 0x38c   :  { %v806_v35 = vsel %vm310_vm1, %v795_v28, 0 }
 0x38d   :  { %v785_v39 = vpop.f32.mrf.mxu2  ;;  %813 = vmatpush.bf16.msra.mxu1 %v806_v35 }
 0x38e   :  { %v958_v39 = vpop.permute.xlu2 %957 }
 0x38f   :  { %5335 = vmatmul.msk.bf16.gmra.mxu2 %vm7685_vm13, %v910_v54 }
 0x391   :  { %814 = vmatpush.bf16.msra.mxu1 %v794_v23 }
 0x395   :  { %815 = vmatpush.bf16.msra.mxu1 %v793_v32 }
 0x396   :  { %v1016_v12 = vpop.permute.xlu2 %1015 }
 0x398   :  { %5304 = vmatmul.msk.bf16.vlgmr.msra.gmra.mxu1 %vm348_vm5, %v792_v27  ;;  %v953_v27 = vpop.permute.xlu1 %952 }
 0x3f2   :  { %v931_v2 = vpop.f32.mrf.mxu2 }
 0x3fa   :  { %v933_v20 = vpop.f32.mrf.mxu2 }
 0x402   :  { %v936_v3 = vpop.f32.mrf.mxu2 }
 0x40a   :  { %v938_v17 = vpop.f32.mrf.mxu2 }
 0x412   :  { %v941_v22 = vpop.f32.mrf.mxu2 }
 0x415   :  { %v817_v44 = vpop.f32.mrf.mxu1 }
 0x416   :  { %v818_v33 = vadd.f32 %v817_v44, %v800_v42 }
 0x418   :  { %v821_v45 = vpack.c.bf16 %v818_v33, %v818_v33  ;;  %v1110_v47 = vmax.f32 %v818_v33, 0.0 }
 0x41a   :  { %v1111_v49 = vmul.f32 0.5, %v1110_v47  ;;  %5313 = vmatmul.msk.bf16.vlgmr.msra.gmra.mxu3 %vm7684_vm3, %v821_v45  ;;  %v943_v8 = vpop.f32.mrf.mxu2 }
 0x41c   :  { %v7055_v50 = vadd.f32 %v1111_v49, %v1109_v48  ;;  %v6239_v49 = vld [vmem:[%s7743_s22] sm:$0xff] }
 0x41d   :  { %v819_v51 = vpop.f32.mrf.mxu1 }
 0x41e   :  { %v6240_v51 = vld [vmem:[%s7743_s22 + $0x8] sm:$0xff] }
 0x49d   :  { %v835_v55 = vpop.f32.mrf.mxu3 }
 0x49e   :  { %v849_v56 = vpack.c.bf16 %v835_v55, %v835_v55 }
 0x4a0   :  { %v873_v43 = vsel %vm7742_vm7, %v849_v56, 0  ;;  %vm7748_vm7 = vmmov %vm7747_vm15 }
 0x4a1   :  { %882 = vmatpush.bf16.msrb.mxu0 %v873_v43 }
 0x4a4   :  { %5322 = vmatmul.msk.bf16.vlgmr.msrb.gmra.mxu0 %vm389_vm4, %v6237_v57  ;;  %v1011_v57 = vpop.permute.xlu1 %1010 }
 0x4a5   :  { %1197 = vmatpush.bf16.msra.mxu0 %v6957_v62  ;;  %v837_v59 = vpop.f32.mrf.mxu3 }
 0x4a6   :  { %v1021_v59 = vpop.permute.xlu0 %1020 }
 0x4ae   :  { %v1001_v8 = vpop.permute.xlu0 %1000 }
 0x4b4   :  { %5323 = vmatmul.msk.bf16.gmra.mxu0 %vm389_vm4, %v6238_v63 }
 0x4c4   :  { %5324 = vmatmul.msk.bf16.gmra.mxu0 %vm389_vm4, %v862_v0 }
 0x521   :  { %v884_v5 = vpop.f32.mrf.mxu0 }
 0x522   :  { %v932_v36 = vadd.f32 %v931_v2, %v884_v5 }
 0x524   :  { %v975_v42 = vadd.f32 %v953_v27, %v932_v36  ;;  %v6226_v36 = vld [vmem:[%s7745_s1 + $0x8] sm:$0xff]  ;;  %v1105_v27 = vmul.f32 0.5, %v6862_v30  ;;  %v6247_v30 = vld [vmem:[%s7736_s8 + $0x14] sm:$0xff] }
 0x526   :  { %v980_v47 = vmax.f32 %v975_v42, 0.0 }
 0x529   :  { %v886_v31 = vpop.f32.mrf.mxu0 }
 0x52a   :  { %v934_v29 = vadd.f32 %v933_v20, %v886_v31 }
 0x52c   :  { %v976_v23 = vadd.f32 %v958_v39, %v934_v29  ;;  %v6241_v29 = vld [vmem:[%s7745_s1 + $0x14] sm:$0xff] }
 0x52e   :  { %v981_v33 = vmax.f32 %v976_v23, 0.0  ;;  %v5352_v23 = vld [vmem:[%s7745_s1 + $0x24] sm:$0xf] }
 0x52f   :  { %v1129_v42 = vunpack.c.l.b16 %v5352_v23 }
 0x530   :  { %v990_v48 = vpack.c.bf16 %v981_v33, %v980_v47 }
 0x531   :  { %v889_v62 = vpop.f32.mrf.mxu0 }
 0x532   :  { %v937_v25 = vadd.f32 %v936_v3, %v889_v62  ;;  %v1006_v3 = vpop.permute.xlu1 %1005 }
 0x534   :  { %v977_v38 = vadd.f32 %v963_v10, %v937_v25 }
 0x536   :  { %v982_v44 = vmax.f32 %v977_v38, 0.0  ;;  %v1084_v38 = vpop.permute.xlu2 %1083 }
 0x539   :  { %v891_v9 = vpop.f32.mrf.mxu0 }
 0x53a   :  { %v939_v18 = vadd.f32 %v938_v17, %v891_v9 }
 0x53c   :  { %v978_v34 = vadd.f32 %v968_v26, %v939_v18 }
 0x53e   :  { %v983_v41 = vmax.f32 %v978_v34, 0.0  ;;  %v6225_v34 = vld [vmem:[%s7745_s1] sm:$0xff] }
 0x53f   :  { %5372 = vmatmul.msk.bf16.vlgmr.msra.gmra.mxu0 %vm389_vm4, %v6225_v34 }
 0x540   :  { %v991_v45 = vpack.c.bf16 %v983_v41, %v982_v44  ;;  %v459_v41 = vld [vmem:[%s7745_s1 + $0x10] sm:$0xf] }
 0x541   :  { %v894_v21 = vpop.f32.mrf.mxu0  ;;  %v1177_v44 = vunpack.c.l.b16 %v459_v41 }
 0x542   :  { %v942_v24 = vadd.f32 %v941_v22, %v894_v21 }
 0x544   :  { %v979_v28 = vadd.f32 %v973_v13, %v942_v24  ;;  %v1119_v24 = vpack.c.bf16 %v7055_v50, %v7055_v50 }
 0x546   :  { %v984_v35 = vmax.f32 %v979_v28, 0.0  ;;  %v1143_v26 = vsel %vm7746_vm10, %v1119_v24, 0  ;;  %v1076_v28 = vld [vmem:[%s7744_s26] sm:$0x7] }
 0x548   :  { %v992_v40 = vpack.c.bf16 %v984_v35, %v984_v35  ;;  %v6242_v35 = vld [vmem:[%s7745_s1 + $0x1c] sm:$0xff] }
 0x549   :  { %v896_v32 = vpop.f32.mrf.mxu0 }
 0x54a   :  { %v1046_v37 = vsel %vm310_vm1, %v992_v40, 0 }
 0x54b   :  { %1053 = vmatpush.bf16.msrb.mxu1 %v1046_v37 }
 0x54f   :  { %1054 = vmatpush.bf16.msrb.mxu1 %v991_v45  ;;  %5373 = vmatmul.msk.bf16.gmra.mxu0 %vm389_vm4, %v6226_v36 }
 0x553   :  { %1055 = vmatpush.bf16.msrb.mxu1 %v990_v48  ;;  %v1132_v48 = vpack.c.b16 %v1129_v42, %v1129_v42 }
 0x556   :  { %5344 = vmatmul.msk.bf16.vlgmr.msrb.gmra.mxu1 %vm348_vm5, %v6239_v49  ;;  %v1180_v49 = vpack.c.b16 %v1177_v44, %v1177_v44 }
 0x557   :  { %5381 = vmatpush.bf16.msk.msra.mxu1 %vm6818_vm11, %v6490_v60 }
 0x55b   :  { %5383 = vmatpush.bf16.msk.msra.mxu1 %vm6843_vm6, %v6490_v60 }
 0x55f   :  { %5374 = vmatmul.msk.bf16.gmra.mxu0 %vm389_vm4, %v1180_v49 }
 0x566   :  { %5345 = vmatmul.msk.bf16.gmra.mxu1 %vm348_vm5, %v6240_v51  ;;  %v6248_v51 = vld [vmem:[%s7736_s8 + $0x1c] sm:$0xff] }
 0x576   :  { %5346 = vmatmul.msk.bf16.gmra.mxu1 %vm348_vm5, %v1035_v46 }
 0x5d3   :  { %v1057_v54 = vpop.f32.mrf.mxu1 }
 0x5d4   :  { %v1058_v62 = vadd.f32 %v1057_v54, %v1001_v8  ;;  %v6244_v8 = vld [vmem:[%s7726_s14 + $0x1c] sm:$0xff] }
 0x5d6   :  { %v1071_v21 = vmax.f32 %v1058_v62, 0.0 }
 0x5db   :  { %v1059_v55 = vpop.f32.mrf.mxu1 }
 0x5dc   :  { %v1060_v22 = vadd.f32 %v1059_v55, %v1006_v3  ;;  %v1371_v55 = vpack.c.b16 %v1368_v53, %v1368_v53  ;;  %v1428_v53 = vpop.permute.xlu1 %1427 }
 0x5de   :  { %v1072_v13 = vmax.f32 %v1060_v22, 0.0 }
 0x5e0   :  { %v1077_v25 = vpack.c.bf16 %v1072_v13, %v1071_v21 }
 0x5e3   :  { %v1062_v56 = vpop.f32.mrf.mxu1 }
 0x5e4   :  { %v1063_v20 = vadd.f32 %v1062_v56, %v1011_v57 }
 0x5e6   :  { %v1073_v9 = vmax.f32 %v1063_v20, 0.0  ;;  %v1199_v20 = vpop.f32.mrf.mxu0 }
 0x5eb   :  { %v1064_v43 = vpop.f32.mrf.mxu1 }
 0x5ec   :  { %v1065_v0 = vadd.f32 %v1064_v43, %v1016_v12  ;;  %v6245_v43 = vld [vmem:[%s7725_s6 + $0x14] sm:$0xff] }
 0x5ee   :  { %v1074_v5 = vmax.f32 %v1065_v0, 0.0 }
 0x5f0   :  { %v1078_v18 = vpack.c.bf16 %v1074_v5, %v1073_v9  ;;  %v7137_v5 = vpop.f32.mrf.mxu0 }
 0x5f3   :  { %v1067_v63 = vpop.f32.mrf.mxu1 }
 0x5f4   :  { %v1068_v14 = vadd.f32 %v1067_v63, %v1021_v59 }
 0x5f6   :  { %v1075_v2 = vmax.f32 %v1068_v14, 0.0  ;;  %v6243_v14 = vld [vmem:[%s7726_s14 + $0x14] sm:$0xff] }
 0x5f8   :  { %v1079_v17 = vpack.c.bf16 %v1075_v2, %v1075_v2  ;;  %v1204_v9 = vpop.f32.mrf.mxu0 }
 0x5fa   :  { %v1090_v31 = vsel %vm310_vm1, %v1079_v17, 0  ;;  %v6246_v17 = vld [vmem:[%s7725_s6 + $0x1c] sm:$0xff] }
 0x5fb   :  { %v1069_v10 = vpop.f32.mrf.mxu1  ;;  %1097 = vmatpush.bf16.msrb.mxu3 %v1090_v31  ;;  %v5394_v31 = vld [vmem:[%s7725_s6 + $0x24] sm:$0xf] }
 0x5fc   :  { %v1266_v10 = vunpack.c.l.b16 %v5394_v31 }
 0x5fe   :  { %v1269_v21 = vpack.c.b16 %v1266_v10, %v1266_v10 }
 0x5ff   :  { %1098 = vmatpush.bf16.msrb.mxu3 %v1078_v18  ;;  %v5389_v18 = vld [vmem:[%s7726_s14 + $0x24] sm:$0xf] }
 0x600   :  { %v1314_v24 = vunpack.c.l.b16 %v5389_v18  ;;  %v1423_v18 = vpop.permute.xlu1 %1422 }
 0x603   :  { %1099 = vmatpush.bf16.msrb.mxu3 %v1077_v25 }
 0x606   :  { %5347 = vmatmul.msk.bf16.vlgmr.msrb.gmra.mxu3 %vm348_vm5, %v1076_v28  ;;  %v1317_v28 = vpack.c.b16 %v1314_v24, %v1314_v24 }
 0x607   :  { %1152 = vmatpush.bf16.msra.mxu3 %v1143_v26 }
 0x60b   :  { %1388 = vmatpush.bf16.msrb.mxu3 %v1143_v26  ;;  %v7151_v26 = vpop.f32.mrf.mxu0 }
 0x613   :  { %v1209_v34 = vpop.f32.mrf.mxu0 }
 0x616   :  { %5361 = vmatmul.msk.bf16.vlgmr.msra.gmra.mxu3 %vm389_vm4, %v6241_v29 }
 0x626   :  { %5362 = vmatmul.msk.bf16.gmra.mxu3 %vm389_vm4, %v6242_v35 }
 0x636   :  { %5363 = vmatmul.msk.bf16.gmra.mxu3 %vm389_vm4, %v1132_v48 }
 0x646   :  { %5430 = vmatmul.msk.bf16.vlgmr.msrb.gmra.mxu3 %vm389_vm4, %v6247_v30 }
 0x656   :  { %5431 = vmatmul.msk.bf16.gmra.mxu3 %vm389_vm4, %v6248_v51 }
 0x666   :  { %5432 = vmatmul.msk.bf16.gmra.mxu3 %vm389_vm4, %v1371_v55 }
 0x689   :  { %v1101_v39 = vpop.f32.mrf.mxu3 }
 0x68a   :  { %v1102_v40 = vadd.f32 %v1101_v39, %v1084_v38  ;;  %v1211_v38 = vpop.f32.mrf.mxu0 }
 0x68c   :  { %v1106_v32 = vmax.f32 %v1102_v40, 0.0 }
 0x68e   :  { %v1107_v37 = vmul.f32 0.5, %v1106_v32 }
 0x690   :  { %v7099_v33 = vadd.f32 %v1107_v37, %v1105_v27 }
 0x691   :  { %v1103_v45 = vpop.f32.mrf.mxu3 }
 0x692   :  { %v7103_v47 = vpack.c.bf16 %v7099_v33, %v7099_v33 }
 0x694   :  { %5379 = vmatmul.msk.bf16.vlgmr.msra.gmra.mxu2 %vm7747_vm15, %v7103_v47  ;;  %5384 = vmatmul.msk.bf16.vlgmr.msra.gmra.mxu1 %vm7748_vm7, %v7103_v47  ;;  %vm7749_vm15 = vmmov %vm7746_vm10 }
 0x699   :  { %v1154_v2 = vpop.f32.mrf.mxu3 }
 0x69a   :  { %v7129_v3 = vadd.f32 %v1199_v20, %v1154_v2 }
 0x6a1   :  { %v7135_v22 = vpop.f32.mrf.mxu3 }
 0x6a9   :  { %v1159_v62 = vpop.f32.mrf.mxu3 }
 0x6aa   :  { %v7146_v13 = vadd.f32 %v1204_v9, %v1159_v62 }
 0x6b1   :  { %v7149_v25 = vpop.f32.mrf.mxu3 }
 0x6b9   :  { %v1164_v29 = vpop.f32.mrf.mxu3 }
 0x6ba   :  { %v7155_v35 = vadd.f32 %v1209_v34, %v1164_v29 }
 0x6c1   :  { %v1166_v36 = vpop.f32.mrf.mxu3 }
 0x6c9   :  { %v1390_v39 = vpop.f32.mrf.mxu3 }
 0x6d1   :  { %v1392_v40 = vpop.f32.mrf.mxu3 }
 0x6d9   :  { %v1395_v23 = vpop.f32.mrf.mxu3 }
 0x6e1   :  { %v1397_v41 = vpop.f32.mrf.mxu3 }
 0x6e9   :  { %v1400_v32 = vpop.f32.mrf.mxu3 }
 0x6f1   :  { %v1402_v42 = vpop.f32.mrf.mxu3 }
 0x711   :  { %v1239_v46 = vpop.f32.mrf.mxu1 }
 0x712   :  { %v1256_v54 = vpack.c.bf16 %v1239_v46, %v1239_v46 }
 0x714   :  { %v1280_v56 = vand.u32 %v1256_v54, %v6722_v7 }
 0x716   :  { %1289 = vmatpush.bf16.msrb.mxu2 %v1280_v56  ;;  %v1438_v56 = vpop.permute.xlu0 %1437 }
 0x717   :  { %v1226_v57 = vpop.f32.mrf.mxu2 }
 0x718   :  { %v1249_v59 = vpack.c.bf16 %v1226_v57, %v1226_v57 }
 0x719   :  { %v1241_v63 = vpop.f32.mrf.mxu1  ;;  %5403 = vmatmul.msk.bf16.vlgmr.msrb.gmra.mxu2 %vm7685_vm13, %v6245_v43 }
 0x71a   :  { %v1328_v12 = vand.u32 %v1249_v59, %v6722_v7 }
 0x71c   :  { %1337 = vmatpush.bf16.msrb.mxu1 %v1328_v12 }
 0x71e   :  { %v1418_v29 = vpop.permute.xlu0 %1417 }
 0x71f   :  { %v1228_v0 = vpop.f32.mrf.mxu2  ;;  %5414 = vmatmul.msk.bf16.vlgmr.msrb.gmra.mxu1 %vm7685_vm13, %v6243_v14 }
 0x720   :  { %5463 = vmatpush.bf16.msk.msra.mxu1 %vm6952_vm12, %v6490_v60  ;;  %v1433_v0 = vpop.permute.xlu2 %1432 }
 0x724   :  { %5465 = vmatpush.bf16.msk.msra.mxu1 %vm6966_vm9, %v6490_v60 }
 0x728   :  { %5467 = vmatpush.bf16.msk.msra.mxu1 %vm6976_vm14, %v6490_v60 }
 0x729   :  { %5404 = vmatmul.msk.bf16.gmra.mxu2 %vm7685_vm13, %v6246_v17 }
 0x72c   :  { %5469 = vmatpush.bf16.msk.msra.mxu1 %vm6984_vm2, %v6490_v60 }
 0x72f   :  { %5415 = vmatmul.msk.bf16.gmra.mxu1 %vm7685_vm13, %v6244_v8 }
 0x739   :  { %5405 = vmatmul.msk.bf16.gmra.mxu2 %vm7685_vm13, %v1269_v21 }
 0x73f   :  { %5416 = vmatmul.msk.bf16.gmra.mxu1 %vm7685_vm13, %v1317_v28 }
 0x79c   :  { %v1291_v27 = vpop.f32.mrf.mxu2  ;;  %v1339_v37 = vpop.f32.mrf.mxu1 }
 0x79d   :  { %v1340_v12 = vadd.f32 %v1339_v37, %v1291_v27  ;;  %v6250_v27 = vld [vmem:[%s7738_s20 + $0x1c] sm:$0xff]  ;;  %v5442_v37 = vld [vmem:[%s7738_s20 + $0x24] sm:$0xf] }
 0x79e   :  { %v1499_v42 = vunpack.c.l.b16 %v5442_v37 }
 0x79f   :  { %v1404_v31 = vadd.f32 %v1390_v39, %v1340_v12 }
 0x7a1   :  { %v1440_v36 = vadd.f32 %v1418_v29, %v1404_v31 }
 0x7a4   :  { %v1293_v44 = vpop.f32.mrf.mxu2  ;;  %v1341_v45 = vpop.f32.mrf.mxu1 }
 0x7a5   :  { %v1342_v57 = vadd.f32 %v1341_v45, %v1293_v44  ;;  %v1502_v44 = vpack.c.b16 %v1499_v42, %v1499_v42 }
 0x7a7   :  { %v1405_v20 = vadd.f32 %v1392_v40, %v1342_v57 }
 0x7a9   :  { %v1441_v24 = vadd.f32 %v1423_v18, %v1405_v20  ;;  %v5459_v18 = vld [vmem:[%s7739_s27 + $0x2] sm:$0x3] }
 0x7ac   :  { %v1296_v48 = vpop.f32.mrf.mxu2  ;;  %v1344_v49 = vpop.f32.mrf.mxu1 }
 0x7ad   :  { %v1345_v46 = vadd.f32 %v1344_v49, %v1296_v48 }
 0x7af   :  { %v1406_v14 = vadd.f32 %v1395_v23, %v1345_v46  ;;  %v1446_v23 = vmax.f32 %v1441_v24, 0.0  ;;  %v1483_v46 = vpop.permute.xlu1 %1482 }
 0x7b1   :  { %v1442_v62 = vadd.f32 %v1428_v53, %v1406_v14 }
 0x7b3   :  { %v1447_v38 = vmax.f32 %v1442_v62, 0.0 }
 0x7b4   :  { %v1298_v30 = vpop.f32.mrf.mxu2  ;;  %v1346_v51 = vpop.f32.mrf.mxu1 }
 0x7b5   :  { %v1347_v52 = vadd.f32 %v1346_v51, %v1298_v30  ;;  %v1478_v51 = vpop.permute.xlu0 %1477 }
 0x7b7   :  { %v1407_v59 = vadd.f32 %v1397_v41, %v1347_v52  ;;  %v1445_v41 = vmax.f32 %v1440_v36, 0.0  ;;  %v1488_v52 = vpop.permute.xlu2 %1487  ;;  %v1553_v24 = vpop.permute.xlu1 %1552  ;;  %v1868_v36 = vmul.f32 0.5, %v7055_v50  ;;  %v5475_v50 = vld [vmem:[%s7740_s4 + $0x24] sm:$0xf] }
 0x7b9   :  { %v1443_v17 = vadd.f32 %v1433_v0, %v1407_v59  ;;  %v1456_v39 = vpack.c.bf16 %v1446_v23, %v1445_v41 }
 0x7bb   :  { %v1448_v28 = vmax.f32 %v1443_v17, 0.0 }
 0x7bc   :  { %v1301_v54 = vpop.f32.mrf.mxu2  ;;  %v1349_v55 = vpop.f32.mrf.mxu1 }
 0x7bd   :  { %v1350_v43 = vadd.f32 %v1349_v55, %v1301_v54  ;;  %v1457_v40 = vpack.c.bf16 %v1448_v28, %v1447_v38  ;;  %v1473_v57 = vpop.permute.xlu0 %1472 }
 0x7bf   :  { %v1408_v63 = vadd.f32 %v1400_v32, %v1350_v43  ;;  %v6249_v32 = vld [vmem:[%s7738_s20 + $0x14] sm:$0xff]  ;;  %v1468_v14 = vpop.permute.xlu2 %1467 }
 0x7c1   :  { %v1444_v2 = vadd.f32 %v1438_v56, %v1408_v63 }
 0x7c3   :  { %v1449_v8 = vmax.f32 %v1444_v2, 0.0 }
 0x7c4   :  { %v1303_v9 = vpop.f32.mrf.mxu2  ;;  %v1351_v10 = vpop.f32.mrf.mxu1 }
 0x7c5   :  { %v1458_v21 = vpack.c.bf16 %v1449_v8, %v1449_v8  ;;  %v1674_v10 = vand.u32 %v7103_v47, %v6722_v7 }
 0x7c7   :  { %v1513_v34 = vsel %vm310_vm1, %v1458_v21, 0  ;;  %v6251_v21 = vld [vmem:[%s7740_s4 + $0x14] sm:$0xff] }
 0x7c8   :  { %1520 = vmatpush.bf16.msrb.mxu0 %v1513_v34 }
 0x7cc   :  { %1521 = vmatpush.bf16.msrb.mxu0 %v1457_v40 }
 0x7d0   :  { %1522 = vmatpush.bf16.msrb.mxu0 %v1456_v39 }
 0x7d3   :  { %5456 = vmatmul.msk.bf16.vlgmr.msrb.gmra.mxu0 %vm348_vm5, %v6249_v32  ;;  %v6252_v32 = vld [vmem:[%s7740_s4 + $0x1c] sm:$0xff] }
 0x7e3   :  { %5457 = vmatmul.msk.bf16.gmra.mxu0 %vm348_vm5, %v6250_v27  ;;  %v1661_v27 = vunpack.c.l.b16 %v5475_v50 }
 0x7e5   :  { %v1664_v37 = vpack.c.b16 %v1661_v27, %v1661_v27 }
 0x7f3   :  { %5458 = vmatmul.msk.bf16.gmra.mxu0 %vm348_vm5, %v1502_v44 }
 0x850   :  { %v1524_v45 = vpop.f32.mrf.mxu0 }
 0x851   :  { %v1525_v2 = vadd.f32 %v1524_v45, %v1468_v14 }
 0x853   :  { %v1538_v62 = vmax.f32 %v1525_v2, 0.0  ;;  %v1728_v2 = vpop.permute.xlu2 %1727 }
 0x858   :  { %v1526_v48 = vpop.f32.mrf.mxu0 }
 0x859   :  { %v1527_v63 = vadd.f32 %v1526_v48, %v1473_v57  ;;  %v6253_v48 = vld [vmem:[%s7741_s23 + $0x14] sm:$0xff] }
 0x85b   :  { %v1539_v8 = vmax.f32 %v1527_v63, 0.0 }
 0x85d   :  { %v1545_v9 = vpack.c.bf16 %v1539_v8, %v1538_v62  ;;  %v1723_v62 = vpop.permute.xlu1 %1722 }
 0x860   :  { %v1529_v49 = vpop.f32.mrf.mxu0 }
 0x861   :  { %v1530_v43 = vadd.f32 %v1529_v49, %v1478_v51  ;;  %v5480_v51 = vld [vmem:[%s7741_s23 + $0x24] sm:$0xf] }
 0x863   :  { %v1540_v20 = vmax.f32 %v1530_v43, 0.0 }
 0x868   :  { %v1531_v30 = vpop.f32.mrf.mxu0 }
 0x869   :  { %v1532_v55 = vadd.f32 %v1531_v30, %v1483_v46  ;;  %v6254_v30 = vld [vmem:[%s7741_s23 + $0x1c] sm:$0xff] }
 0x86b   :  { %v1541_v12 = vmax.f32 %v1532_v55, 0.0 }
 0x86d   :  { %v1546_v31 = vpack.c.bf16 %v1541_v12, %v1540_v20 }
 0x870   :  { %v1534_v53 = vpop.f32.mrf.mxu0 }
 0x871   :  { %v1535_v54 = vadd.f32 %v1534_v53, %v1488_v52  ;;  %v1613_v52 = vunpack.c.l.b16 %v5480_v51 }
 0x873   :  { %v1542_v56 = vmax.f32 %v1535_v54, 0.0  ;;  %v1616_v53 = vpack.c.b16 %v1613_v52, %v1613_v52 }
 0x875   :  { %v1547_v59 = vpack.c.bf16 %v1542_v56, %v1542_v56 }
 0x877   :  { %v1559_v0 = vsel %vm310_vm1, %v1547_v59, 0 }
 0x878   :  { %v1536_v17 = vpop.f32.mrf.mxu0  ;;  %1566 = vmatpush.bf16.msra.mxu2 %v1559_v0  ;;  %v1718_v0 = vpop.permute.xlu0 %1717 }
 0x87c   :  { %1567 = vmatpush.bf16.msra.mxu2 %v1546_v31 }
 0x880   :  { %1568 = vmatpush.bf16.msra.mxu2 %v1545_v9 }
 0x883   :  { %5461 = vmatmul.msk.bf16.vlgmr.msra.gmra.mxu2 %vm348_vm5, %v5459_v18 }
 0x884   :  { %1683 = vmatpush.bf16.msrb.mxu2 %v1674_v10 }
 0x888   :  { %5554 = vmatpush.bf16.msk.msra.mxu2 %vm6818_vm11, %v6490_v60 }
 0x88c   :  { %5556 = vmatpush.bf16.msk.msra.mxu2 %vm6843_vm6, %v6490_v60 }
 0x893   :  { %5500 = vmatmul.msk.bf16.vlgmr.msrb.gmra.mxu2 %vm7685_vm13, %v6251_v21 }
 0x8a3   :  { %5501 = vmatmul.msk.bf16.gmra.mxu2 %vm7685_vm13, %v6252_v32 }
 0x8b3   :  { %5502 = vmatmul.msk.bf16.gmra.mxu2 %vm7685_vm13, %v1664_v37 }
 0x906   :  { %v1570_v47 = vpop.f32.mrf.mxu2 }
 0x907   :  { %v1571_v28 = vadd.f32 %v1570_v47, %v1553_v24 }
 0x909   :  { %v1574_v29 = vpack.c.bf16 %v1571_v28, %v1571_v28  ;;  %v1869_v34 = vmax.f32 %v1571_v28, 0.0  ;;  %v1713_v28 = vpop.permute.xlu0 %1712 }
 0x90b   :  { %v1870_v38 = vmul.f32 0.5, %v1869_v34  ;;  %5470 = vmatmul.msk.bf16.vlgmr.msra.gmra.mxu1 %vm7684_vm3, %v1574_v29  ;;  %vm2537_vm3 = vcmask 516096  }
 0x90d   :  { %v7179_v40 = vadd.f32 %v1870_v38, %v1868_v36 }
 0x90e   :  { %v1572_v23 = vpop.f32.mrf.mxu2 }
 0x90f   :  { %v1878_v41 = vpack.c.bf16 %v7179_v40, %v7179_v40  ;;  %v1708_v23 = vpop.permute.xlu2 %1707 }
 0x911   :  { %v7184_v39 = vsel %vm7746_vm10, %v1878_v41, 0  ;;  %vm7750_vm10 = vmmov %vm7748_vm7 }
 0x912   :  { %2107 = vmatpush.bf16.msrb.mxu2 %v7184_v39 }
 0x916   :  { %v1685_v46 = vpop.f32.mrf.mxu2 }
 0x91e   :  { %v1687_v54 = vpop.f32.mrf.mxu2 }
 0x926   :  { %v1690_v55 = vpop.f32.mrf.mxu2 }
 0x92e   :  { %v1692_v56 = vpop.f32.mrf.mxu2 }
 0x936   :  { %v1695_v43 = vpop.f32.mrf.mxu2 }
 0x93e   :  { %v1697_v59 = vpop.f32.mrf.mxu2 }
 0x988   :  { %v1587_v42 = vpop.f32.mrf.mxu1 }
 0x989   :  { %v1603_v44 = vpack.c.bf16 %v1587_v42, %v1587_v42 }
 0x98b   :  { %v1627_v45 = vsel %vm7749_vm15, %v1603_v44, 0 }
 0x98c   :  { %1636 = vmatpush.bf16.msra.mxu3 %v1627_v45  ;;  %v6255_v45 = vld [vmem:[%s7743_s22 + $0x14] sm:$0xff] }
 0x98f   :  { %5489 = vmatmul.msk.bf16.vlgmr.msra.gmra.mxu3 %vm389_vm4, %v6253_v48  ;;  %v6256_v48 = vld [vmem:[%s7743_s22 + $0x1c] sm:$0xff] }
 0x990   :  { %5549 = vmatpush.bf16.msk.msrb.mxu3 %vm6810_vm8, %v6490_v60  ;;  %v1589_v49 = vpop.f32.mrf.mxu1 }
 0x991   :  { %v5512_v49 = vld [vmem:[%s7743_s22 + $0x24] sm:$0xf] }
 0x994   :  { %5551 = vmatpush.bf16.msk.msrb.mxu3 %vm6836_vm0, %v6490_v60 }
 0x99f   :  { %5490 = vmatmul.msk.bf16.gmra.mxu3 %vm389_vm4, %v6254_v30  ;;  %v1789_v30 = vunpack.c.l.b16 %v5512_v49 }
 0x9a1   :  { %v1792_v51 = vpack.c.b16 %v1789_v30, %v1789_v30 }
 0x9af   :  { %5491 = vmatmul.msk.bf16.gmra.mxu3 %vm389_vm4, %v1616_v53 }
 0xa12   :  { %v1638_v57 = vpop.f32.mrf.mxu3 }
 0xa13   :  { %v1686_v24 = vadd.f32 %v1685_v46, %v1638_v57  ;;  %v1773_v57 = vpop.permute.xlu0 %1772 }
 0xa15   :  { %v1730_v32 = vadd.f32 %v1708_v23, %v1686_v24 }
 0xa17   :  { %v1735_v42 = vmax.f32 %v1730_v32, 0.0 }
 0xa1a   :  { %v1640_v63 = vpop.f32.mrf.mxu3 }
 0xa1b   :  { %v1688_v10 = vadd.f32 %v1687_v54, %v1640_v63 }
 0xa1d   :  { %v1731_v34 = vadd.f32 %v1713_v28, %v1688_v10  ;;  %v5529_v28 = vld [vmem:[%s7744_s26 + $0x4] sm:$0x7] }
 0xa1f   :  { %v1736_v27 = vmax.f32 %v1731_v34, 0.0  ;;  %v6258_v34 = vld [vmem:[%s7745_s1 + $0x30] sm:$0xff] }
 0xa21   :  { %v1746_v44 = vpack.c.bf16 %v1736_v27, %v1735_v42 }
 0xa22   :  { %v1643_v12 = vpop.f32.mrf.mxu3 }
 0xa23   :  { %v1691_v31 = vadd.f32 %v1690_v55, %v1643_v12  ;;  %v1768_v55 = vpop.permute.xlu2 %1767 }
 0xa25   :  { %v1732_v47 = vadd.f32 %v1718_v0, %v1691_v31 }
 0xa27   :  { %v1737_v50 = vmax.f32 %v1732_v47, 0.0 }
 0xa2a   :  { %v1645_v14 = vpop.f32.mrf.mxu3 }
 0xa2b   :  { %v1693_v20 = vadd.f32 %v1692_v56, %v1645_v14  ;;  %v1778_v56 = vpop.permute.xlu1 %1777  ;;  %v1763_v0 = vpop.permute.xlu2 %1762 }
 0xa2d   :  { %v1733_v18 = vadd.f32 %v1723_v62, %v1693_v20 }
 0xa2f   :  { %v1738_v36 = vmax.f32 %v1733_v18, 0.0 }
 0xa31   :  { %v1747_v37 = vpack.c.bf16 %v1738_v36, %v1737_v50  ;;  %v5536_v36 = vld [vmem:[%s7745_s1 + $0x38] sm:$0xf] }
 0xa32   :  { %v1648_v17 = vpop.f32.mrf.mxu3 }
 0xa33   :  { %v1696_v8 = vadd.f32 %v1695_v43, %v1648_v17 }
 0xa35   :  { %v1734_v9 = vadd.f32 %v1728_v2, %v1696_v8  ;;  %v1758_v8 = vpop.permute.xlu1 %1757 }
 0xa37   :  { %v1739_v21 = vmax.f32 %v1734_v9, 0.0 }
 0xa39   :  { %v1748_v29 = vpack.c.bf16 %v1739_v21, %v1739_v21 }
 0xa3a   :  { %v1650_v38 = vpop.f32.mrf.mxu3 }
 0xa3b   :  { %v1803_v41 = vsel %vm310_vm1, %v1748_v29, 0  ;;  %v6257_v29 = vld [vmem:[%s7745_s1 + $0x28] sm:$0xff]  ;;  %v1888_v38 = vunpack.c.l.b16 %v5536_v36 }
 0xa3c   :  { %1810 = vmatpush.bf16.msrb.mxu1 %v1803_v41  ;;  %v1843_v41 = vpop.permute.xlu0 %1842 }
 0xa3d   :  { %v1891_v23 = vpack.c.b16 %v1888_v38, %v1888_v38 }
 0xa40   :  { %1811 = vmatpush.bf16.msrb.mxu1 %v1747_v37  ;;  %v1864_v37 = vmul.f32 0.5, %v7099_v33 }
 0xa44   :  { %1812 = vmatpush.bf16.msrb.mxu1 %v1746_v44 }
 0xa47   :  { %5526 = vmatmul.msk.bf16.vlgmr.msrb.gmra.mxu1 %vm348_vm5, %v6255_v45 }
 0xa57   :  { %5527 = vmatmul.msk.bf16.gmra.mxu1 %vm348_vm5, %v6256_v48 }
 0xa67   :  { %5528 = vmatmul.msk.bf16.gmra.mxu1 %vm348_vm5, %v1792_v51 }
 0xac4   :  { %v1814_v52 = vpop.f32.mrf.mxu1 }
 0xac5   :  { %v1815_v62 = vadd.f32 %v1814_v52, %v1758_v8  ;;  %v6262_v8 = vld [vmem:[%s7725_s6 + $0x30] sm:$0xff] }
 0xac7   :  { %v1828_v24 = vmax.f32 %v1815_v62, 0.0  ;;  %v5567_v62 = vld [vmem:[%s7725_s6 + $0x38] sm:$0xf] }
 0xacc   :  { %v1816_v53 = vpop.f32.mrf.mxu1 }
 0xacd   :  { %v1817_v20 = vadd.f32 %v1816_v53, %v1763_v0  ;;  %v6261_v0 = vld [vmem:[%s7725_s6 + $0x28] sm:$0xff] }
 0xacf   :  { %v1829_v18 = vmax.f32 %v1817_v20, 0.0 }
 0xad1   :  { %v1835_v47 = vpack.c.bf16 %v1829_v18, %v1828_v24 }
 0xad4   :  { %v1819_v46 = vpop.f32.mrf.mxu1 }
 0xad5   :  { %v1820_v14 = vadd.f32 %v1819_v46, %v1768_v55  ;;  %v6263_v55 = vld [vmem:[%s7736_s8 + $0x28] sm:$0xff] }
 0xad7   :  { %v1830_v9 = vmax.f32 %v1820_v14, 0.0 }
 0xadc   :  { %v1821_v54 = vpop.f32.mrf.mxu1 }
 0xadd   :  { %v1822_v63 = vadd.f32 %v1821_v54, %v1773_v57 }
 0xadf   :  { %v1831_v17 = vmax.f32 %v1822_v63, 0.0 }
 0xae1   :  { %v1836_v21 = vpack.c.bf16 %v1831_v17, %v1830_v9  ;;  %v5562_v9 = vld [vmem:[%s7726_s14 + $0x38] sm:$0xf] }
 0xae2   :  { %v2033_v18 = vunpack.c.l.b16 %v5562_v9 }
 0xae4   :  { %v1824_v43 = vpop.f32.mrf.mxu1  ;;  %v2036_v24 = vpack.c.b16 %v2033_v18, %v2033_v18 }
 0xae5   :  { %v1825_v59 = vadd.f32 %v1824_v43, %v1778_v56  ;;  %v5594_v56 = vld [vmem:[%s7736_s8 + $0x38] sm:$0xf] }
 0xae6   :  { %v2087_v43 = vunpack.c.l.b16 %v5594_v56 }
 0xae7   :  { %v1832_v12 = vmax.f32 %v1825_v59, 0.0 }
 0xae8   :  { %v2090_v57 = vpack.c.b16 %v2087_v43, %v2087_v43 }
 0xae9   :  { %v1837_v2 = vpack.c.bf16 %v1832_v12, %v1832_v12 }
 0xaeb   :  { %v1849_v31 = vsel %vm310_vm1, %v1837_v2, 0  ;;  %v6259_v2 = vld [vmem:[%s7726_s14 + $0x28] sm:$0xff] }
 0xaec   :  { %v1826_v10 = vpop.f32.mrf.mxu1  ;;  %1856 = vmatpush.bf16.msra.mxu0 %v1849_v31  ;;  %v6260_v31 = vld [vmem:[%s7726_s14 + $0x30] sm:$0xff] }
 0xaed   :  { %v1985_v10 = vunpack.c.l.b16 %v5567_v62  ;;  %v2542_v62 = vld [vmem:[%s6517_s17] sm:$0x7f]  ;;  %s7751_s17 = sld [smem:[#allocation20_spill]] }
 0xaf0   :  { %1857 = vmatpush.bf16.msra.mxu0 %v1836_v21  ;;  %v1988_v21 = vpack.c.b16 %v1985_v10, %v1985_v10 }
 0xaf4   :  { %1858 = vmatpush.bf16.msra.mxu0 %v1835_v47 }
 0xaf7   :  { %5531 = vmatmul.msk.bf16.vlgmr.msra.gmra.mxu0 %vm348_vm5, %v5529_v28 }
 0xaf8   :  { %1911 = vmatpush.bf16.msrb.mxu0 %v7184_v39 }
 0xb07   :  { %5545 = vmatmul.msk.bf16.vlgmr.msrb.gmra.mxu0 %vm389_vm4, %v6257_v29 }
 0xb17   :  { %5546 = vmatmul.msk.bf16.gmra.mxu0 %vm389_vm4, %v6258_v34 }
 0xb27   :  { %5547 = vmatmul.msk.bf16.gmra.mxu0 %vm389_vm4, %v1891_v23 }
 0xb74   :  { %v1860_v32 = vpop.f32.mrf.mxu0 }
 0xb75   :  { %v1861_v50 = vadd.f32 %v1860_v32, %v1843_v41 }
 0xb77   :  { %v1865_v27 = vmax.f32 %v1861_v50, 0.0 }
 0xb79   :  { %v1866_v39 = vmul.f32 0.5, %v1865_v27 }
 0xb7b   :  { %v1867_v42 = vadd.f32 %v1866_v39, %v1864_v37 }
 0xb7c   :  { %v1862_v44 = vpop.f32.mrf.mxu0 }
 0xb7d   :  { %v1932_v45 = vpack.c.bf16 %v1867_v42, %v1867_v42 }
 0xb7f   :  { %5552 = vmatmul.msk.bf16.vlgmr.msrb.gmra.mxu3 %vm7748_vm7, %v1932_v45  ;;  %5557 = vmatmul.msk.bf16.vlgmr.msra.gmra.mxu2 %vm7750_vm10, %v1932_v45  ;;  %vm7752_vm7 = vcmask 56320  }
 0xb80   :  { %vm7754_vm10 = vmmov %vm7752_vm7 }
 0xb84   :  { %v1913_v48 = vpop.f32.mrf.mxu0 }
 0xb85   :  { %v7225_v49 = vadd.f32 %v1913_v48, %v7129_v3  ;;  %v6264_v3 = vld [vmem:[%s7736_s8 + $0x30] sm:$0xff]  ;;  %v2147_v48 = vpop.permute.xlu2 %2146 }
 0xb8c   :  { %v7227_v30 = vpop.f32.mrf.mxu0 }
 0xb8f   :  { %5603 = vmatmul.msk.bf16.vlgmr.msrb.gmra.mxu2 %vm389_vm4, %v6263_v55 }
 0xb94   :  { %v1918_v51 = vpop.f32.mrf.mxu0 }
 0xb95   :  { %v7230_v33 = vadd.f32 %v1918_v51, %v7146_v13 }
 0xb9c   :  { %v7232_v52 = vpop.f32.mrf.mxu0 }
 0xb9f   :  { %5604 = vmatmul.msk.bf16.gmra.mxu2 %vm389_vm4, %v6264_v3 }
 0xba4   :  { %v1923_v53 = vpop.f32.mrf.mxu0 }
 0xba5   :  { %v7235_v46 = vadd.f32 %v1923_v53, %v7155_v35 }
 0xbac   :  { %v1925_v54 = vpop.f32.mrf.mxu0 }
 0xbad   :  { %v2157_v54 = vpop.permute.xlu1 %2156 }
 0xbaf   :  { %5605 = vmatmul.msk.bf16.gmra.mxu2 %vm389_vm4, %v2090_v57 }
 0xbb5   :  { %v2137_v18 = vpop.permute.xlu1 %2136 }
 0xc02   :  { %v1945_v13 = vpop.f32.mrf.mxu3  ;;  %v1958_v59 = vpop.f32.mrf.mxu2 }
 0xc03   :  { %v1968_v63 = vpack.c.bf16 %v1945_v13, %v1945_v13  ;;  %v1975_v12 = vpack.c.bf16 %v1958_v59, %v1958_v59 }
 0xc05   :  { %v2047_v35 = vand.u32 %v1968_v63, %v6722_v7  ;;  %v1999_v14 = vand.u32 %v1975_v12, %v6722_v7  ;;  %v2152_v63 = vpop.permute.xlu0 %2151 }
 0xc07   :  { %2008 = vmatpush.bf16.msra.mxu1 %v1999_v14  ;;  %2056 = vmatpush.bf16.msra.mxu3 %v2047_v35 }
 0xc0a   :  { %v1947_v20 = vpop.f32.mrf.mxu3  ;;  %v1960_v17 = vpop.f32.mrf.mxu2  ;;  %5576 = vmatmul.msk.bf16.vlgmr.msra.gmra.mxu1 %vm7685_vm13, %v6261_v0  ;;  %5587 = vmatmul.msk.bf16.vlgmr.msra.gmra.mxu3 %vm7685_vm13, %v6259_v2 }
 0xc12   :  { %v2109_v47 = vpop.f32.mrf.mxu2 }
 0xc1a   :  { %5577 = vmatmul.msk.bf16.gmra.mxu1 %vm7685_vm13, %v6262_v8  ;;  %5588 = vmatmul.msk.bf16.gmra.mxu3 %vm7685_vm13, %v6260_v31  ;;  %v2111_v28 = vpop.f32.mrf.mxu2  ;;  %v2142_v8 = vpop.permute.xlu2 %2141 }
 0xc22   :  { %v2114_v29 = vpop.f32.mrf.mxu2 }
 0xc2a   :  { %5578 = vmatmul.msk.bf16.gmra.mxu1 %vm7685_vm13, %v1988_v21  ;;  %5589 = vmatmul.msk.bf16.gmra.mxu3 %vm7685_vm13, %v2036_v24  ;;  %v2116_v34 = vpop.f32.mrf.mxu2 }
 0xc32   :  { %v2119_v38 = vpop.f32.mrf.mxu2 }
 0xc3a   :  { %v2121_v32 = vpop.f32.mrf.mxu2 }
 0xc3b   :  { %v6266_v32 = vld [vmem:[%s7738_s20 + $0x30] sm:$0xff] }
 0xc87   :  { %v2010_v36 = vpop.f32.mrf.mxu1 }
 0xc8d   :  { %v2058_v23 = vpop.f32.mrf.mxu3 }
 0xc8e   :  { %v2059_v13 = vadd.f32 %v2058_v23, %v2010_v36 }
 0xc8f   :  { %v2012_v41 = vpop.f32.mrf.mxu1 }
 0xc90   :  { %v2123_v2 = vadd.f32 %v2109_v47, %v2059_v13 }
 0xc92   :  { %v2159_v24 = vadd.f32 %v2137_v18, %v2123_v2 }
 0xc94   :  { %v2164_v47 = vmax.f32 %v2159_v24, 0.0 }
 0xc95   :  { %v2060_v50 = vpop.f32.mrf.mxu3 }
 0xc96   :  { %v2061_v3 = vadd.f32 %v2060_v50, %v2012_v41  ;;  %v6265_v41 = vld [vmem:[%s7738_s20 + $0x28] sm:$0xff]  ;;  %v5615_v50 = vld [vmem:[%s7738_s20 + $0x38] sm:$0xf] }
 0xc97   :  { %v2015_v27 = vpop.f32.mrf.mxu1 }
 0xc98   :  { %v2124_v35 = vadd.f32 %v2111_v28, %v2061_v3  ;;  %v2548_v28 = vpack.c.bf16 %v2542_v62, %v2542_v62 }
 0xc9a   :  { %v2160_v9 = vadd.f32 %v2142_v8, %v2124_v35 }
 0xc9c   :  { %v2165_v36 = vmax.f32 %v2160_v9, 0.0 }
 0xc9d   :  { %v2063_v37 = vpop.f32.mrf.mxu3 }
 0xc9e   :  { %v2064_v51 = vadd.f32 %v2063_v37, %v2015_v27  ;;  %v2175_v23 = vpack.c.bf16 %v2165_v36, %v2164_v47  ;;  %v2218_v27 = vunpack.c.l.b16 %v5615_v50  ;;  %v6267_v47 = vld [vmem:[%s7745_s1 + $0x3c] sm:$0xff] }
 0xc9f   :  { %v2017_v39 = vpop.f32.mrf.mxu1 }
 0xca0   :  { %v2125_v59 = vadd.f32 %v2114_v29, %v2064_v51 }
 0xca2   :  { %v2161_v20 = vadd.f32 %v2147_v48, %v2125_v59  ;;  %v2207_v48 = vpop.permute.xlu0 %2206 }
 0xca4   :  { %v2166_v29 = vmax.f32 %v2161_v20, 0.0 }
 0xca5   :  { %v2065_v42 = vpop.f32.mrf.mxu3 }
 0xca6   :  { %v2066_v45 = vadd.f32 %v2065_v42, %v2017_v39 }
 0xca7   :  { %v2020_v44 = vpop.f32.mrf.mxu1 }
 0xca8   :  { %v2126_v56 = vadd.f32 %v2116_v34, %v2066_v45  ;;  %v2197_v45 = vpop.permute.xlu1 %2196 }
 0xcaa   :  { %v2162_v14 = vadd.f32 %v2152_v63, %v2126_v56  ;;  %v2187_v63 = vpop.permute.xlu0 %2186 }
 0xcac   :  { %v2167_v10 = vmax.f32 %v2162_v14, 0.0 }
 0xcad   :  { %v2068_v53 = vpop.f32.mrf.mxu3 }
 0xcae   :  { %v2069_v55 = vadd.f32 %v2068_v53, %v2020_v44  ;;  %v2176_v34 = vpack.c.bf16 %v2167_v10, %v2166_v29  ;;  %v2202_v53 = vpop.permute.xlu2 %2201 }
 0xcaf   :  { %v2022_v43 = vpop.f32.mrf.mxu1 }
 0xcb0   :  { %v2127_v57 = vadd.f32 %v2119_v38, %v2069_v55  ;;  %v2572_v38 = vand.u32 %v2548_v28, %v6720_v6  ;;  %v2221_v6 = vpack.c.b16 %v2218_v27, %v2218_v27  ;;  %v2192_v43 = vpop.permute.xlu1 %2191 }
 0xcb2   :  { %v2163_v12 = vadd.f32 %v2157_v54, %v2127_v57 }
 0xcb4   :  { %v2168_v0 = vmax.f32 %v2163_v12, 0.0 }
 0xcb5   :  { %v2070_v17 = vpop.f32.mrf.mxu3 }
 0xcb6   :  { %v2177_v31 = vpack.c.bf16 %v2168_v0, %v2168_v0  ;;  %v2272_v62 = vpop.permute.xlu2 %2271 }
 0xcb8   :  { %v2232_v21 = vsel %vm310_vm1, %v2177_v31, 0  ;;  %v5632_v31 = vld [vmem:[%s7739_s27 + $0x4] sm:$0x3] }
 0xcb9   :  { %2239 = vmatpush.bf16.msra.mxu0 %v2232_v21  ;;  %v2293_v21 = vmul.f32 0.5, %v7179_v40 }
 0xcbd   :  { %2240 = vmatpush.bf16.msra.mxu0 %v2176_v34 }
 0xcc1   :  { %2241 = vmatpush.bf16.msra.mxu0 %v2175_v23  ;;  %v5639_v23 = vld [vmem:[%s7745_s1 + $0x4c] sm:$0xf] }
 0xcc4   :  { %5629 = vmatmul.msk.bf16.vlgmr.msra.gmra.mxu0 %vm348_vm5, %v6265_v41  ;;  %v2313_v41 = vunpack.c.l.b16 %v5639_v23 }
 0xcc5   :  { %2581 = vmatpush.bf16.msrb.mxu0 %v2572_v38  ;;  %v6268_v38 = vld [vmem:[%s7745_s1 + $0x44] sm:$0xff] }
 0xcc9   :  { %5700 = vmatpush.bf16.msk.msra.mxu0 %vm6810_vm8, %v6490_v60 }
 0xccd   :  { %5702 = vmatpush.bf16.msk.msra.mxu0 %vm6836_vm0, %v6490_v60 }
 0xcd4   :  { %5630 = vmatmul.msk.bf16.gmra.mxu0 %vm348_vm5, %v6266_v32  ;;  %v2316_v32 = vpack.c.b16 %v2313_v41, %v2313_v41 }
 0xce4   :  { %5631 = vmatmul.msk.bf16.gmra.mxu0 %vm348_vm5, %v2221_v6 }
 0xd41   :  { %v2243_v37 = vpop.f32.mrf.mxu0 }
 0xd42   :  { %v2244_v35 = vadd.f32 %v2243_v37, %v2187_v63  ;;  %v1207_v37 = vadd.f32 %v7151_v26, %v7149_v25  ;;  %v6271_v25 = vld [vmem:[%s7751_s17] sm:$0xff] }
 0xd43   :  { %5672 = vmatmul.msk.bf16.vlgmr.msrb.gmra.mxu0 %vm7752_vm7, %v6271_v25 }
 0xd44   :  { %v2257_v17 = vmax.f32 %v2244_v35, 0.0 }
 0xd49   :  { %v2245_v39 = vpop.f32.mrf.mxu0 }
 0xd4a   :  { %v2246_v13 = vadd.f32 %v2245_v39, %v2192_v43  ;;  %v2375_v39 = vpop.permute.xlu1 %2374 }
 0xd4c   :  { %v2258_v2 = vmax.f32 %v2246_v13, 0.0 }
 0xd4e   :  { %v2264_v8 = vpack.c.bf16 %v2258_v2, %v2257_v17  ;;  %v6272_v17 = vld [vmem:[%s7751_s17 + $0x8] sm:$0xff] }
 0xd51   :  { %v2248_v42 = vpop.f32.mrf.mxu0 }
 0xd52   :  { %v2249_v56 = vadd.f32 %v2248_v42, %v2197_v45  ;;  %v1930_v42 = vadd.f32 %v7232_v52, %v1207_v37  ;;  %v1202_v45 = vadd.f32 %v7137_v5, %v7135_v22  ;;  %v2370_v22 = vpop.permute.xlu1 %2369 }
 0xd53   :  { %5673 = vmatmul.msk.bf16.gmra.mxu0 %vm7754_vm10, %v6272_v17  ;;  %v6274_v17 = vld [vmem:[%s7756_s2 + $0x8] sm:$0xff] }
 0xd54   :  { %v2259_v14 = vmax.f32 %v2249_v56, 0.0 }
 0xd59   :  { %v2250_v44 = vpop.f32.mrf.mxu0 }
 0xd5a   :  { %v2251_v55 = vadd.f32 %v2250_v44, %v2202_v53  ;;  %v2385_v44 = vpop.permute.xlu0 %2384 }
 0xd5c   :  { %v2260_v59 = vmax.f32 %v2251_v55, 0.0 }
 0xd5e   :  { %v2265_v20 = vpack.c.bf16 %v2260_v59, %v2259_v14 }
 0xd61   :  { %v2253_v51 = vpop.f32.mrf.mxu0 }
 0xd62   :  { %v2254_v54 = vadd.f32 %v2253_v51, %v2207_v48 }
 0xd64   :  { %v2261_v3 = vmax.f32 %v2254_v54, 0.0  ;;  %v1928_v54 = vadd.f32 %v7227_v30, %v1202_v45 }
 0xd66   :  { %v2266_v57 = vpack.c.bf16 %v2261_v3, %v2261_v3  ;;  %v2380_v3 = vpop.permute.xlu2 %2379 }
 0xd68   :  { %v2278_v12 = vsel %vm310_vm1, %v2266_v57, 0 }
 0xd69   :  { %v2255_v0 = vpop.f32.mrf.mxu0  ;;  %2285 = vmatpush.bf16.msrb.mxu1 %v2278_v12 }
 0xd6d   :  { %2286 = vmatpush.bf16.msrb.mxu1 %v2265_v20  ;;  %v6269_v20 = vld [vmem:[%s7753_s28] sm:$0xff] }
 0xd71   :  { %2287 = vmatpush.bf16.msrb.mxu1 %v2264_v8  ;;  %v2547_v8 = vld [vmem:[%s7751_s17 + $0x10] sm:$0xf] }
 0xd74   :  { %5634 = vmatmul.msk.bf16.vlgmr.msrb.gmra.mxu1 %vm348_vm5, %v5632_v31  ;;  %v2558_v31 = vunpack.c.l.b16 %v2547_v8  ;;  %v6276_v8 = vld [vmem:[%s7757_s10 + $0x8] sm:$0xff] }
 0xdf1   :  { %v2289_v9 = vpop.f32.mrf.mxu1 }
 0xdf2   :  { %v2290_v10 = vadd.f32 %v2289_v9, %v2272_v62  ;;  %v6270_v62 = vld [vmem:[%s7753_s28 + $0x8] sm:$0xff]  ;;  %v2561_v9 = vpack.c.b16 %v2558_v31, %v2558_v31  ;;  %v2606_v31 = vld [vmem:[%s7756_s2 + $0x10] sm:$0xf] }
 0xdf4   :  { %v2294_v18 = vmax.f32 %v2290_v10, 0.0  ;;  %v2401_v10 = vld [vmem:[%s7753_s28 + $0x10] sm:$0xf] }
 0xdf6   :  { %v2295_v24 = vmul.f32 0.5, %v2294_v18  ;;  %v2444_v18 = vunpack.c.l.b16 %v2401_v10 }
 0xdf8   :  { %v2296_v29 = vadd.f32 %v2295_v24, %v2293_v21  ;;  %v2447_v21 = vpack.c.b16 %v2444_v18, %v2444_v18  ;;  %v2583_v24 = vpop.f32.mrf.mxu0  ;;  %v2692_v18 = vld [vmem:[%s7757_s10 + $0x10] sm:$0xf] }
 0xdf9   :  { %v2291_v28 = vpop.f32.mrf.mxu1 }
 0xdfa   :  { %v2303_v34 = vpack.c.bf16 %v2296_v29, %v2296_v29 }
 0xdfc   :  { %v2327_v36 = vsel %vm7749_vm15, %v2303_v34, 0  ;;  %vm7755_vm15 = vmmov %vm7752_vm7  ;;  %vm7758_vm7 = vcmask 1041408  }
 0xdfd   :  { %2336 = vmatpush.bf16.msrb.mxu3 %v2327_v36  ;;  %5674 = vmatmul.msk.bf16.gmra.mxu0 %vm7755_vm15, %v2561_v9 }
 0xe00   :  { %5648 = vmatmul.msk.bf16.vlgmr.msrb.gmra.mxu3 %vm389_vm4, %v6267_v47  ;;  %v2585_v29 = vpop.f32.mrf.mxu0 }
 0xe08   :  { %v2588_v28 = vpop.f32.mrf.mxu0 }
 0xe10   :  { %5649 = vmatmul.msk.bf16.gmra.mxu3 %vm389_vm4, %v6268_v38  ;;  %v2590_v36 = vpop.f32.mrf.mxu0 }
 0xe20   :  { %5650 = vmatmul.msk.bf16.gmra.mxu3 %vm389_vm4, %v2316_v32 }
 0xe7a   :  { %v2593_v38 = vpop.f32.mrf.mxu0 }
 0xe82   :  { %v2595_v41 = vpop.f32.mrf.mxu0 }
 0xe83   :  { %v2338_v50 = vpop.f32.mrf.mxu3 }
 0xe84   :  { %v2352_v52 = vadd.f32 %v2338_v50, %v7225_v49 }
 0xe8b   :  { %v2340_v40 = vpop.f32.mrf.mxu3 }
 0xe8c   :  { %v2353_v43 = vadd.f32 %v2340_v40, %v1928_v54  ;;  %v2433_v40 = vpop.permute.xlu2 %2432  ;;  %v2601_v54 = vmax.f32 %v2593_v38, 0.0 }
 0xe93   :  { %v2343_v27 = vpop.f32.mrf.mxu3 }
 0xe94   :  { %v2354_v55 = vadd.f32 %v2343_v27, %v7230_v33  ;;  %v2365_v33 = vpop.permute.xlu0 %2364 }
 0xe95   :  { %v2387_v12 = vadd.f32 %v2365_v33, %v2352_v52  ;;  %v2597_v33 = vmax.f32 %v2583_v24, 0.0  ;;  %v2703_v24 = vunpack.c.l.b16 %v2692_v18 }
 0xe96   :  { %v2389_v13 = vadd.f32 %v2375_v39, %v2354_v55  ;;  %v2413_v55 = vpop.permute.xlu2 %2412 }
 0xe97   :  { %v2392_v0 = vmax.f32 %v2387_v12, 0.0 }
 0xe98   :  { %v2394_v35 = vmax.f32 %v2389_v13, 0.0 }
 0xe9b   :  { %v2345_v6 = vpop.f32.mrf.mxu3 }
 0xe9c   :  { %v2355_v48 = vadd.f32 %v2345_v6, %v1930_v42  ;;  %v2423_v50 = vpop.permute.xlu0 %2422  ;;  %v2428_v6 = vpop.permute.xlu1 %2427 }
 0xe9e   :  { %v2390_v57 = vadd.f32 %v2380_v3, %v2355_v48  ;;  %v7327_v10 = vpop.permute.xlu2 %2989 }
 0xea0   :  { %v2395_v59 = vmax.f32 %v2390_v57, 0.0 }
 0xea2   :  { %v2403_v49 = vpack.c.bf16 %v2395_v59, %v2394_v35  ;;  %v2600_v59 = vmax.f32 %v2590_v36, 0.0 }
 0xea3   :  { %v2348_v51 = vpop.f32.mrf.mxu3 }
 0xea4   :  { %v2356_v53 = vadd.f32 %v2348_v51, %v7235_v46  ;;  %v2388_v46 = vadd.f32 %v2370_v22, %v2353_v43  ;;  %v2418_v45 = vpop.permute.xlu0 %2417 }
 0xea6   :  { %v2391_v56 = vadd.f32 %v2385_v44, %v2356_v53  ;;  %v2393_v14 = vmax.f32 %v2388_v46, 0.0  ;;  %v2599_v46 = vmax.f32 %v2588_v28, 0.0 }
 0xea8   :  { %v2396_v26 = vmax.f32 %v2391_v56, 0.0  ;;  %v2402_v2 = vpack.c.bf16 %v2393_v14, %v2392_v0  ;;  %v2608_v12 = vpack.c.bf16 %v2600_v59, %v2599_v46  ;;  %v6273_v14 = vld [vmem:[%s7756_s2] sm:$0xff] }
 0xeaa   :  { %v2404_v5 = vpack.c.bf16 %v2396_v26, %v2396_v26  ;;  %v2609_v26 = vpack.c.bf16 %v2601_v54, %v2601_v54 }
 0xeab   :  { %v2350_v30 = vpop.f32.mrf.mxu3 }
 0xeac   :  { %v2458_v63 = vsel %vm310_vm1, %v2404_v5, 0  ;;  %v2633_v22 = vsel %vm310_vm1, %v2609_v26, 0  ;;  %v2488_v30 = vld [vmem:[%s6700_s25] sm:$0x1]  ;;  %s7799_s25 = sld [smem:[#allocation14_spill]] }
 0xead   :  { %2465 = vmatpush.bf16.msra.mxu2 %v2458_v63  ;;  %v2598_v63 = vmax.f32 %v2585_v29, 0.0  ;;  %v2706_v29 = vpack.c.b16 %v2703_v24, %v2703_v24 }
 0xeaf   :  { %v2607_v35 = vpack.c.bf16 %v2598_v63, %v2597_v33 }
 0xeb1   :  { %2466 = vmatpush.bf16.msra.mxu2 %v2403_v49  ;;  %v2687_v49 = vld [vmem:[%s6522_s21] sm:$0xf]  ;;  %s7759_s21 = sld [smem:[#allocation22_spill]] }
 0xeb2   :  { %v2693_v0 = vpack.c.bf16 %v2687_v49, %v2687_v49 }
 0xeb5   :  { %2467 = vmatpush.bf16.msra.mxu2 %v2402_v2  ;;  %v2717_v2 = vsel %vm7758_vm7, %v2693_v0, 0 }
 0xeb7   :  { %v2663_v33 = vld [vmem:[%s7759_s21] sm:$0x7] }
 0xeb8   :  { %5659 = vmatmul.msk.bf16.vlgmr.msra.gmra.mxu2 %vm348_vm5, %v6269_v20  ;;  %v6275_v20 = vld [vmem:[%s7757_s10] sm:$0xff] }
 0xeb9   :  { %2726 = vmatpush.bf16.msrb.mxu2 %v2717_v2 }
 0xec8   :  { %5660 = vmatmul.msk.bf16.gmra.mxu2 %vm348_vm5, %v6270_v62  ;;  %v2619_v62 = vunpack.c.l.b16 %v2606_v31 }
 0xeca   :  { %v2622_v9 = vpack.c.b16 %v2619_v62, %v2619_v62 }
 0xed8   :  { %5661 = vmatmul.msk.bf16.gmra.mxu2 %vm348_vm5, %v2447_v21  ;;  %v7330_v21 = vpop.permute.xlu2 %2984 }
 0xee0   :  { %v7333_v28 = vpop.permute.xlu2 %3044 }
 0xee8   :  { %5695 = vmatmul.msk.bf16.vlgmr.msrb.gmra.mxu2 %vm389_vm4, %v6275_v20 }
 0xef8   :  { %5696 = vmatmul.msk.bf16.gmra.mxu2 %vm389_vm4, %v6276_v8 }
 0xf08   :  { %5697 = vmatmul.msk.bf16.gmra.mxu2 %vm389_vm4, %v2706_v29 }
 0xf3b   :  { %v2469_v34 = vpop.f32.mrf.mxu2 }
 0xf3c   :  { %v2470_v56 = vadd.f32 %v2469_v34, %v2413_v55  ;;  %v2496_v34 = vpop.permute.xlu2 %2495 }
 0xf3d   :  { %v2498_v36 = vperm.slane %v2496_v34, 0 }
 0xf3e   :  { %v2483_v13 = vmax.f32 %v2470_v56, 0.0 }
 0xf43   :  { %v2471_v47 = vpop.f32.mrf.mxu2 }
 0xf44   :  { %v2472_v51 = vadd.f32 %v2471_v47, %v2418_v45 }
 0xf46   :  { %v2484_v25 = vmax.f32 %v2472_v51, 0.0 }
 0xf48   :  { %v2489_v5 = vpack.c.bf16 %v2484_v25, %v2483_v13 }
 0xf4b   :  { %v2474_v23 = vpop.f32.mrf.mxu2 }
 0xf4c   :  { %v2475_v44 = vadd.f32 %v2474_v23, %v2423_v50 }
 0xf4e   :  { %v2485_v43 = vmax.f32 %v2475_v44, 0.0 }
 0xf53   :  { %v2476_v32 = vpop.f32.mrf.mxu2 }
 0xf54   :  { %v2477_v39 = vadd.f32 %v2476_v32, %v2428_v6 }
 0xf56   :  { %v2486_v53 = vmax.f32 %v2477_v39, 0.0 }
 0xf58   :  { %v2490_v52 = vpack.c.bf16 %v2486_v53, %v2485_v43 }
 0xf5b   :  { %v2479_v27 = vpop.f32.mrf.mxu2 }
 0xf5c   :  { %v2480_v37 = vadd.f32 %v2479_v27, %v2433_v40 }
 0xf5e   :  { %v2487_v42 = vmax.f32 %v2480_v37, 0.0 }
 0xf60   :  { %v2491_v48 = vpack.c.bf16 %v2487_v42, %v2487_v42 }
 0xf62   :  { %v2503_v3 = vsel %vm310_vm1, %v2491_v48, 0 }
 0xf63   :  { %v2481_v57 = vpop.f32.mrf.mxu2  ;;  %2510 = vmatpush.bf16.msra.mxu1 %v2503_v3 }
 0xf67   :  { %2511 = vmatpush.bf16.msra.mxu1 %v2490_v52 }
 0xf6b   :  { %2512 = vmatpush.bf16.msra.mxu1 %v2489_v5  ;;  %v2728_v63 = vpop.f32.mrf.mxu2 }
 0xf6c   :  { %v2742_v31 = vmax.f32 %v2728_v63, 0.0 }
 0xf6e   :  { %5662 = vmatmul.msk.bf16.vlgmr.msra.gmra.mxu1 %vm348_vm5, %v2488_v30 }
 0xf6f   :  { %2640 = vmatpush.bf16.msrb.mxu1 %v2633_v22 }
 0xf73   :  { %2641 = vmatpush.bf16.msrb.mxu1 %v2608_v12  ;;  %v2730_v12 = vpop.f32.mrf.mxu2 }
 0xf74   :  { %v2743_v62 = vmax.f32 %v2730_v12, 0.0 }
 0xf76   :  { %v2748_v24 = vpack.c.bf16 %v2743_v62, %v2742_v31 }
 0xf77   :  { %2642 = vmatpush.bf16.msrb.mxu1 %v2607_v35 }
 0xf7b   :  { %5705 = vmatpush.bf16.msk.msra.mxu1 %vm6818_vm11, %v6490_v60  ;;  %v2733_v35 = vpop.f32.mrf.mxu2 }
 0xf7c   :  { %v2744_v2 = vmax.f32 %v2733_v35, 0.0 }
 0xf7e   :  { %5683 = vmatmul.msk.bf16.vlgmr.msrb.gmra.mxu1 %vm348_vm5, %v6273_v14 }
 0xf7f   :  { %5707 = vmatpush.bf16.msk.msra.mxu1 %vm6843_vm6, %v6490_v60 }
 0xf83   :  { %v2735_v14 = vpop.f32.mrf.mxu2 }
 0xf84   :  { %v2745_v20 = vmax.f32 %v2735_v14, 0.0 }
 0xf8b   :  { %v2738_v49 = vpop.f32.mrf.mxu2 }
 0xf8c   :  { %v2746_v0 = vmax.f32 %v2738_v49, 0.0 }
 0xf8e   :  { %5684 = vmatmul.msk.bf16.gmra.mxu1 %vm348_vm5, %v6274_v17  ;;  %v2750_v17 = vpack.c.bf16 %v2746_v0, %v2746_v0 }
 0xf90   :  { %v2755_v8 = vsel %vm310_vm1, %v2750_v17, 0 }
 0xf93   :  { %v2740_v18 = vpop.f32.mrf.mxu2 }
 0xf9e   :  { %5685 = vmatmul.msk.bf16.gmra.mxu1 %vm348_vm5, %v2622_v9  ;;  %v2749_v9 = vpack.c.bf16 %v2745_v20, %v2744_v2 }
 0xfeb   :  { %v2514_v47 = vpop.f32.mrf.mxu1 }
 0xfec   :  { %v7335_v38 = vadd.f32 %v2514_v47, %v2498_v36 }
 0xfee   :  { %v2518_v23 = vsub.f32 0.0, %v7335_v38 }
 0xff0   :  { %v2519_v41 = vmul.f32 1.442695, %v2518_v23 }
 0xff2   :  { %6385 = vpow2.f32 %v2519_v41 }
 0xff3   :  { %v2516_v32 = vpop.f32.mrf.mxu1 }
 0xff8   :  { %v6386_v50 = vpop.eup %6385 }
 0xff9   :  { %v2521_v40 = vadd.f32 1.0, %v6386_v50 }
 0xffb   :  { %6387 = vrcp.f32 %v2521_v40  ;;  %v2644_v27 = vpop.f32.mrf.mxu1  ;;  %v2533_v44 = vand.u32 2147483648, %v2521_v40  ;;  %v2531_v48 = vand.u32 2147483647, %v2521_v40  ;;  %vm2527_vm15 = vweird.f32 %v2521_v40 }
 0xffc   :  { %v2658_v59 = vmax.f32 %v2644_v27, 0.0 }
 0xffd   :  { %v2534_v53 = vor.u32 1.1754944e-38, %v2533_v44  ;;  %vm2532_vm13 = vcmp.eq.f32.partialorder %v2531_v48, 8.507059e+37 }
0x1001   :  { %v6388_v6 = vpop.eup %6387 }
0x1002   :  { %v2523_v37 = vmul.f32 %v6388_v6, %v2521_v40  ;;  %vm2528_vm10 = vweird.f32 %v6388_v6 }
0x1003   :  { %v2646_v39 = vpop.f32.mrf.mxu1  ;;  %vm2529_vm7 = vmor %vm2527_vm15, %vm2528_vm10  ;;  %vm7763_vm10 = vcmask 1041408   ;;  %vm7764_vm15 = vcmask 39936  }
0x1004   :  { %v2524_v42 = vsub.f32 1.0, %v2523_v37  ;;  %v2659_v22 = vmax.f32 %v2646_v39, 0.0  ;;  %v6282_v37 = vld [vmem:[%s7736_s8 + $0x44] sm:$0xff] }
0x1006   :  { %v2525_v45 = vmul.f32 %v6388_v6, %v2524_v42  ;;  %v2664_v30 = vpack.c.bf16 %v2659_v22, %v2658_v59 }
0x1008   :  { %v2526_v51 = vadd.f32 %v6388_v6, %v2525_v45 }
0x100a   :  { %v2530_v54 = vsel %vm2529_vm7, %v6388_v6, %v2526_v51  ;;  %v6281_v6 = vld [vmem:[%s7736_s8 + $0x3c] sm:$0xff]  ;;  %vm7765_vm7 = vmmov %vm7764_vm15 }
0x100b   :  { %v2535_v55 = vsel %vm2532_vm13, %v2534_v53, %v2530_v54  ;;  %v2649_v3 = vpop.f32.mrf.mxu1  ;;  %vm7761_vm13 = vcmask 261120   ;;  %v6279_v53 = vld [vmem:[%s7725_s6 + $0x3c] sm:$0xff] }
0x100c   :  { %2538 = vst.msk [vmem:[%s6705_s5] sm:$0x1] %vm2537_vm3, %v2535_v55  ;;  %v2660_v13 = vmax.f32 %v2649_v3, 0.0  ;;  %s7760_s5 = sld [smem:[#allocation19_spill]]  ;;  %vm7762_vm3 = vmmov %vm7761_vm13  ;;  %v6277_v54 = vld [vmem:[%s7726_s14 + $0x3c] sm:$0xff] }
0x100d   :  { %v5745_v55 = vld [vmem:[%s7736_s8 + $0x4c] sm:$0xf] }
0x100e   :  { %v2927_v3 = vunpack.c.l.b16 %v5745_v55 }
0x1012   :  { %v2747_v29 = vld [vmem:[%s7760_s5] sm:$0x3] }
0x1013   :  { %v2651_v56 = vpop.f32.mrf.mxu1 }
0x1014   :  { %v2661_v26 = vmax.f32 %v2651_v56, 0.0  ;;  %v2930_v56 = vpack.c.b16 %v2927_v3, %v2927_v3 }
0x1016   :  { %v2665_v5 = vpack.c.bf16 %v2661_v26, %v2660_v13  ;;  %v6278_v26 = vld [vmem:[%s7726_s14 + $0x44] sm:$0xff]  ;;  %v5713_v13 = vld [vmem:[%s7726_s14 + $0x4c] sm:$0xf] }
0x101b   :  { %v2654_v43 = vpop.f32.mrf.mxu1 }
0x101c   :  { %v2662_v57 = vmax.f32 %v2654_v43, 0.0 }
0x101e   :  { %v2666_v25 = vpack.c.bf16 %v2662_v57, %v2662_v57 }
0x1020   :  { %v2671_v52 = vsel %vm310_vm1, %v2666_v25, 0  ;;  %v6280_v25 = vld [vmem:[%s7725_s6 + $0x44] sm:$0xff] }
0x1021   :  { %2678 = vmatpush.bf16.msra.mxu3 %v2671_v52  ;;  %v5718_v52 = vld [vmem:[%s7725_s6 + $0x4c] sm:$0xf] }
0x1022   :  { %v2824_v22 = vunpack.c.l.b16 %v5718_v52 }
0x1023   :  { %v2656_v46 = vpop.f32.mrf.mxu1 }
0x1024   :  { %v2827_v46 = vpack.c.b16 %v2824_v22, %v2824_v22 }
0x1025   :  { %2679 = vmatpush.bf16.msra.mxu3 %v2665_v5  ;;  %v2872_v5 = vunpack.c.l.b16 %v5713_v13 }
0x1027   :  { %v2875_v59 = vpack.c.b16 %v2872_v5, %v2872_v5 }
0x1029   :  { %2680 = vmatpush.bf16.msra.mxu3 %v2664_v30 }
0x102c   :  { %5686 = vmatmul.msk.bf16.vlgmr.msra.gmra.mxu3 %vm348_vm5, %v2663_v33 }
0x102d   :  { %2762 = vmatpush.bf16.msrb.mxu3 %v2755_v8 }
0x1031   :  { %2763 = vmatpush.bf16.msrb.mxu3 %v2749_v9 }
0x1035   :  { %2764 = vmatpush.bf16.msrb.mxu3 %v2748_v24 }
0x103c   :  { %5698 = vmatmul.msk.bf16.vlgmr.msrb.gmra.mxu3 %vm348_vm5, %v2747_v29 }
0x10af   :  { %v2682_v34 = vpop.f32.mrf.mxu3 }
0x10b0   :  { %v7345_v36 = vmax.f32 %v2682_v34, 0.0  ;;  %v3000_v34 = vpop.permute.xlu1 %2999 }
0x10b2   :  { %v7349_v47 = vpack.c.bf16 %v7345_v36, %v7345_v36 }
0x10b4   :  { %5703 = vmatmul.msk.bf16.vlgmr.msra.gmra.mxu0 %vm7761_vm13, %v7349_v47  ;;  %5708 = vmatmul.msk.bf16.vlgmr.msra.gmra.mxu1 %vm7762_vm3, %v7349_v47  ;;  %vm7766_vm13 = vmmov %vm7765_vm7 }
0x10b5   :  { %vm7767_vm3 = vmmov %vm7765_vm7 }
0x10b7   :  { %v2684_v23 = vpop.f32.mrf.mxu3 }
0x10bf   :  { %v2766_v41 = vpop.f32.mrf.mxu3 }
0x10c0   :  { %v7355_v50 = vmax.f32 %v2766_v41, 0.0 }
0x10c2   :  { %v2917_v40 = vpack.c.bf16 %v7355_v50, %v7355_v50 }
0x10c4   :  { %v2941_v27 = vsel %vm7763_vm10, %v2917_v40, 0  ;;  %vm7768_vm10 = vmmov %vm7767_vm3 }
0x10c5   :  { %2950 = vmatpush.bf16.msrb.mxu1 %v2941_v27 }
0x10c7   :  { %v2768_v32 = vpop.f32.mrf.mxu3 }
0x10c8   :  { %5754 = vmatmul.msk.bf16.vlgmr.msrb.gmra.mxu1 %vm389_vm4, %v6281_v6 }
0x10d8   :  { %5755 = vmatmul.msk.bf16.gmra.mxu1 %vm389_vm4, %v6282_v37 }
0x10e8   :  { %5756 = vmatmul.msk.bf16.gmra.mxu1 %vm389_vm4, %v2930_v56 }
0x1131   :  { %v2784_v39 = vpop.f32.mrf.mxu0  ;;  %v2797_v42 = vpop.f32.mrf.mxu1 }
0x1132   :  { %v2807_v44 = vpack.c.bf16 %v2784_v39, %v2784_v39  ;;  %v2814_v45 = vpack.c.bf16 %v2797_v42, %v2797_v42  ;;  %v2995_v39 = vpop.permute.xlu0 %2994 }
0x1134   :  { %v2886_v48 = vand.u32 %v2807_v44, %v6722_v7  ;;  %v2838_v51 = vand.u32 %v2814_v45, %v6722_v7 }
0x1136   :  { %2847 = vmatpush.bf16.msra.mxu3 %v2838_v51  ;;  %2895 = vmatpush.bf16.msrb.mxu0 %v2886_v48 }
0x1139   :  { %v2786_v43 = vpop.f32.mrf.mxu0  ;;  %v2799_v57 = vpop.f32.mrf.mxu1  ;;  %5727 = vmatmul.msk.bf16.vlgmr.msra.gmra.mxu3 %vm7764_vm15, %v6279_v53  ;;  %5738 = vmatmul.msk.bf16.vlgmr.msrb.gmra.mxu0 %vm7765_vm7, %v6277_v54  ;;  %vm7769_vm15 = vmmov %vm7767_vm3 }
0x113a   :  { %5787 = vmatpush.bf16.msk.msra.mxu0 %vm6952_vm12, %v6490_v60  ;;  %v2980_v43 = vpop.permute.xlu1 %2979  ;;  %vm7770_vm7 = vmmov %vm7767_vm3 }
0x113e   :  { %5789 = vmatpush.bf16.msk.msra.mxu0 %vm6966_vm9, %v6490_v60 }
0x1142   :  { %5791 = vmatpush.bf16.msk.msra.mxu0 %vm6976_vm14, %v6490_v60 }
0x1145   :  { %v2952_v30 = vpop.f32.mrf.mxu1 }
0x1146   :  { %5793 = vmatpush.bf16.msk.msra.mxu0 %vm6984_vm2, %v6490_v60 }
0x1149   :  { %5728 = vmatmul.msk.bf16.gmra.mxu3 %vm7766_vm13, %v6280_v25  ;;  %5739 = vmatmul.msk.bf16.gmra.mxu0 %vm7767_vm3, %v6278_v26  ;;  %vm2539_vm13 = vcmp.gt.f32.partialorder %v7335_v38, 0.0  ;;  %vm7771_vm3 = vcmask 523264  }
0x114d   :  { %v2954_v33 = vpop.f32.mrf.mxu1 }
0x1155   :  { %v2957_v63 = vpop.f32.mrf.mxu1 }
0x1159   :  { %5729 = vmatmul.msk.bf16.gmra.mxu3 %vm7768_vm10, %v2827_v46  ;;  %5740 = vmatmul.msk.bf16.gmra.mxu0 %vm7769_vm15, %v2875_v59  ;;  %v6283_v46 = vld [vmem:[%s7738_s20 + $0x3c] sm:$0xff]  ;;  %vm7772_vm10 = vmmov %vm7770_vm7 }
0x115a   :  { %vm7773_vm15 = vmmov %vm7770_vm7 }
0x115d   :  { %v2959_v12 = vpop.f32.mrf.mxu1 }
0x1165   :  { %v2962_v14 = vpop.f32.mrf.mxu1 }
0x116d   :  { %v2964_v2 = vpop.f32.mrf.mxu1 }
0x11b6   :  { %v2897_v35 = vpop.f32.mrf.mxu0 }
0x11bc   :  { %v2849_v49 = vpop.f32.mrf.mxu3 }
0x11bd   :  { %v2898_v6 = vadd.f32 %v2897_v35, %v2849_v49  ;;  %v3050_v49 = vpop.permute.xlu0 %3049 }
0x11be   :  { %v2899_v0 = vpop.f32.mrf.mxu0 }
0x11bf   :  { %v2966_v51 = vadd.f32 %v2952_v30, %v2898_v6  ;;  %v3238_v6 = vand.u32 %v7349_v47, %v6722_v7 }
0x11c1   :  { %v3002_v25 = vadd.f32 %v2980_v43, %v2966_v51 }
0x11c3   :  { %v3007_v22 = vmax.f32 %v3002_v25, 0.0  ;;  %v5799_v25 = vld [vmem:[%s7740_s4 + $0x4c] sm:$0xf] }
0x11c4   :  { %v2851_v20 = vpop.f32.mrf.mxu3 }
0x11c5   :  { %v2900_v41 = vadd.f32 %v2899_v0, %v2851_v20 }
0x11c6   :  { %v2902_v17 = vpop.f32.mrf.mxu0 }
0x11c7   :  { %v2967_v44 = vadd.f32 %v2954_v33, %v2900_v41 }
0x11c9   :  { %v3003_v3 = vadd.f32 %v7330_v21, %v2967_v44  ;;  %v5766_v21 = vld [vmem:[%s7738_s20 + $0x4c] sm:$0xf] }
0x11ca   :  { %v3061_v59 = vunpack.c.l.b16 %v5766_v21  ;;  %v5804_v21 = vld [vmem:[%s7741_s23 + $0x4c] sm:$0xf] }
0x11cb   :  { %v3008_v13 = vmax.f32 %v3003_v3, 0.0 }
0x11cc   :  { %v2854_v8 = vpop.f32.mrf.mxu3  ;;  %v3064_v30 = vpack.c.b16 %v3061_v59, %v3061_v59  ;;  %v3177_v59 = vunpack.c.l.b16 %v5804_v21 }
0x11cd   :  { %v2903_v24 = vadd.f32 %v2902_v17, %v2854_v8  ;;  %v3018_v5 = vpack.c.bf16 %v3008_v13, %v3007_v22 }
0x11ce   :  { %v2904_v31 = vpop.f32.mrf.mxu0 }
0x11cf   :  { %v2968_v37 = vadd.f32 %v2957_v63, %v2903_v24  ;;  %v3030_v24 = vpop.permute.xlu0 %3029 }
0x11d1   :  { %v3004_v53 = vadd.f32 %v7327_v10, %v2968_v37  ;;  %v6284_v10 = vld [vmem:[%s7738_s20 + $0x44] sm:$0xff] }
0x11d2   :  { %v5783_v37 = vld [vmem:[%s7739_s27 + $0x6] sm:$0x3] }
0x11d3   :  { %v3009_v26 = vmax.f32 %v3004_v53, 0.0 }
0x11d4   :  { %v2856_v62 = vpop.f32.mrf.mxu3 }
0x11d5   :  { %v2905_v18 = vadd.f32 %v2904_v31, %v2856_v62 }
0x11d6   :  { %v2907_v9 = vpop.f32.mrf.mxu0 }
0x11d7   :  { %v2969_v32 = vadd.f32 %v2959_v12, %v2905_v18 }
0x11d9   :  { %v3005_v45 = vadd.f32 %v2995_v39, %v2969_v32  ;;  %v6285_v39 = vld [vmem:[%s7740_s4 + $0x3c] sm:$0xff] }
0x11db   :  { %v3010_v56 = vmax.f32 %v3005_v45, 0.0  ;;  %v3115_v45 = vpop.permute.xlu0 %3114 }
0x11dc   :  { %v2859_v29 = vpop.f32.mrf.mxu3 }
0x11dd   :  { %v2908_v23 = vadd.f32 %v2907_v9, %v2859_v29  ;;  %v3019_v52 = vpack.c.bf16 %v3010_v56, %v3009_v26  ;;  %v3225_v26 = vunpack.c.l.b16 %v5799_v25  ;;  %v6290_v25 = vld [vmem:[%s7743_s22 + $0x44] sm:$0xff] }
0x11de   :  { %v2909_v40 = vpop.f32.mrf.mxu0 }
0x11df   :  { %v2970_v27 = vadd.f32 %v2962_v14, %v2908_v23  ;;  %v3040_v14 = vpop.permute.xlu1 %3039 }
0x11e1   :  { %v3006_v42 = vadd.f32 %v3000_v34, %v2970_v27 }
0x11e3   :  { %v3011_v48 = vmax.f32 %v3006_v42, 0.0  ;;  %v6491_v42 = vmov 0.0  }
0x11e4   :  { %v2861_v54 = vpop.f32.mrf.mxu3  ;;  %v5663_v44 = vsel %vm2539_vm13, 1.0, %v6491_v42 }
0x11e5   :  { %v3020_v55 = vpack.c.bf16 %v3011_v48, %v3011_v48  ;;  %v7410_v51 = vperm.slane %v5663_v44, 0 }
0x11e7   :  { %v3075_v57 = vsel %vm310_vm1, %v3020_v55, 0  ;;  %v3035_v31 = vpop.permute.xlu1 %3034  ;;  %v3432_v55 = vmul.f32 0.5, %v7355_v50 }
0x11e8   :  { %3082 = vmatpush.bf16.msra.mxu2 %v3075_v57  ;;  %v6286_v57 = vld [vmem:[%s7740_s4 + $0x44] sm:$0xff] }
0x11ec   :  { %3083 = vmatpush.bf16.msra.mxu2 %v3019_v52  ;;  %v3228_v52 = vpack.c.b16 %v3225_v26, %v3225_v26  ;;  %v5836_v26 = vld [vmem:[%s7743_s22 + $0x4c] sm:$0xf] }
0x11f0   :  { %3084 = vmatpush.bf16.msra.mxu2 %v3018_v5  ;;  %v6287_v5 = vld [vmem:[%s7741_s23 + $0x3c] sm:$0xff] }
0x11f3   :  { %5780 = vmatmul.msk.bf16.vlgmr.msra.gmra.mxu2 %vm348_vm5, %v6283_v46 }
0x1203   :  { %5781 = vmatmul.msk.bf16.gmra.mxu2 %vm348_vm5, %v6284_v10  ;;  %v6288_v10 = vld [vmem:[%s7741_s23 + $0x44] sm:$0xff] }
0x1213   :  { %5782 = vmatmul.msk.bf16.gmra.mxu2 %vm348_vm5, %v3064_v30  ;;  %v3180_v30 = vpack.c.b16 %v3177_v59, %v3177_v59 }
0x1276   :  { %v3086_v33 = vpop.f32.mrf.mxu2 }
0x1277   :  { %v3087_v34 = vadd.f32 %v3086_v33, %v3030_v24 }
0x1279   :  { %v3100_v27 = vmax.f32 %v3087_v34, 0.0 }
0x127e   :  { %v3088_v63 = vpop.f32.mrf.mxu2 }
0x127f   :  { %v3089_v9 = vadd.f32 %v3088_v63, %v3035_v31  ;;  %v3292_v31 = vpop.permute.xlu1 %3291 }
0x1281   :  { %v3101_v32 = vmax.f32 %v3089_v9, 0.0 }
0x1286   :  { %v3091_v12 = vpop.f32.mrf.mxu2 }
0x1287   :  { %v3092_v8 = vadd.f32 %v3091_v12, %v3040_v14  ;;  %v3272_v44 = vpop.permute.xlu1 %3271 }
0x1289   :  { %v3102_v23 = vmax.f32 %v3092_v8, 0.0  ;;  %v3282_v8 = vpop.permute.xlu2 %3281 }
0x128e   :  { %v3093_v35 = vpop.f32.mrf.mxu2 }
0x128f   :  { %v3094_v20 = vadd.f32 %v3093_v35, %v7333_v28  ;;  %v3107_v28 = vpack.c.bf16 %v3101_v32, %v3100_v27 }
0x1291   :  { %v3103_v18 = vmax.f32 %v3094_v20, 0.0 }
0x1293   :  { %v3108_v40 = vpack.c.bf16 %v3103_v18, %v3102_v23 }
0x1296   :  { %v3096_v0 = vpop.f32.mrf.mxu2 }
0x1297   :  { %v3097_v2 = vadd.f32 %v3096_v0, %v3050_v49 }
0x1299   :  { %v3104_v17 = vmax.f32 %v3097_v2, 0.0 }
0x129b   :  { %v3109_v62 = vpack.c.bf16 %v3104_v17, %v3104_v17 }
0x129d   :  { %v3121_v29 = vsel %vm310_vm1, %v3109_v62, 0 }
0x129e   :  { %v3098_v41 = vpop.f32.mrf.mxu2  ;;  %3128 = vmatpush.bf16.msrb.mxu3 %v3121_v29  ;;  %v3287_v29 = vpop.permute.xlu0 %3286 }
0x12a2   :  { %3129 = vmatpush.bf16.msrb.mxu3 %v3108_v40 }
0x12a6   :  { %3130 = vmatpush.bf16.msrb.mxu3 %v3107_v28  ;;  %v3277_v28 = vpop.permute.xlu2 %3276  ;;  %v3342_v21 = vpop.permute.xlu0 %3341 }
0x12a9   :  { %5785 = vmatmul.msk.bf16.vlgmr.msrb.gmra.mxu3 %vm348_vm5, %v5783_v37 }
0x12aa   :  { %3247 = vmatpush.bf16.msra.mxu3 %v3238_v6 }
0x12b9   :  { %5824 = vmatmul.msk.bf16.vlgmr.msra.gmra.mxu3 %vm7770_vm7, %v6285_v39  ;;  %vm7774_vm7 = vcmask 1041408  }
0x12ba   :  { %vm7775_vm13 = vmmov %vm7774_vm7 }
0x12c9   :  { %5825 = vmatmul.msk.bf16.gmra.mxu3 %vm7772_vm10, %v6286_v57 }
0x12d9   :  { %5826 = vmatmul.msk.bf16.gmra.mxu3 %vm7773_vm15, %v3228_v52  ;;  %v3353_v52 = vunpack.c.l.b16 %v5836_v26  ;;  %v6292_v26 = vld [vmem:[%s7726_s14 + $0x58] sm:$0xff] }
0x132c   :  { %v3132_v48 = vpop.f32.mrf.mxu3 }
0x132d   :  { %v3133_v53 = vadd.f32 %v3132_v48, %v3115_v45 }
0x132f   :  { %v3137_v47 = vmul.f32 %v7410_v51, %v3133_v53  ;;  %v3433_v54 = vmax.f32 %v3133_v53, 0.0 }
0x1331   :  { %v3138_v3 = vpack.c.bf16 %v3137_v47, %v3137_v47  ;;  %v3434_v56 = vmul.f32 0.5, %v3433_v54 }
0x1333   :  { %v7414_v43 = vadd.f32 %v3434_v56, %v3432_v55  ;;  %5794 = vmatmul.msk.bf16.vlgmr.msra.gmra.mxu0 %vm7771_vm3, %v3138_v3  ;;  %vm7776_vm3 = vcmask 261120  }
0x1334   :  { %v3134_v38 = vpop.f32.mrf.mxu3  ;;  %vm7777_vm10 = vmmov %vm7776_vm3 }
0x1335   :  { %v3582_v3 = vpack.c.bf16 %v7414_v43, %v7414_v43  ;;  %v6289_v38 = vld [vmem:[%s7743_s22 + $0x3c] sm:$0xff] }
0x1337   :  { %v3606_v57 = vsel %vm7775_vm13, %v3582_v3, 0 }
0x133c   :  { %v3249_v33 = vpop.f32.mrf.mxu3 }
0x1344   :  { %v3251_v63 = vpop.f32.mrf.mxu3 }
0x134c   :  { %v3254_v12 = vpop.f32.mrf.mxu3 }
0x1354   :  { %v3256_v35 = vpop.f32.mrf.mxu3 }
0x135c   :  { %v3259_v14 = vpop.f32.mrf.mxu3 }
0x1364   :  { %v3261_v0 = vpop.f32.mrf.mxu3 }
0x13b0   :  { %v3151_v13 = vpop.f32.mrf.mxu0 }
0x13b1   :  { %v3167_v22 = vpack.c.bf16 %v3151_v13, %v3151_v13  ;;  %v3356_v13 = vpack.c.b16 %v3353_v52, %v3353_v52 }
0x13b3   :  { %v3191_v50 = vsel %vm7774_vm7, %v3167_v22, 0  ;;  %vm7778_vm7 = vmmov %vm7773_vm15 }
0x13b4   :  { %3200 = vmatpush.bf16.msra.mxu1 %v3191_v50  ;;  %vm7779_vm13 = vmmov %vm7778_vm7 }
0x13b7   :  { %5813 = vmatmul.msk.bf16.vlgmr.msra.gmra.mxu1 %vm389_vm4, %v6287_v5 }
0x13b8   :  { %v3153_v46 = vpop.f32.mrf.mxu0 }
0x13c7   :  { %5814 = vmatmul.msk.bf16.gmra.mxu1 %vm389_vm4, %v6288_v10  ;;  %v3332_v10 = vpop.permute.xlu1 %3331 }
0x13d7   :  { %5815 = vmatmul.msk.bf16.gmra.mxu1 %vm389_vm4, %v3180_v30  ;;  %v3337_v30 = vpop.permute.xlu2 %3336 }
0x1434   :  { %v3202_v49 = vpop.f32.mrf.mxu1 }
0x1435   :  { %v3250_v40 = vadd.f32 %v3249_v33, %v3202_v49 }
0x1437   :  { %v3294_v48 = vadd.f32 %v3272_v44, %v3250_v40  ;;  %v6296_v44 = vld [vmem:[%s7736_s8 + $0x58] sm:$0xff] }
0x1439   :  { %v3299_v55 = vmax.f32 %v3294_v48, 0.0 }
0x143c   :  { %v3204_v2 = vpop.f32.mrf.mxu1 }
0x143d   :  { %v3252_v23 = vadd.f32 %v3251_v63, %v3204_v2 }
0x143f   :  { %v3295_v37 = vadd.f32 %v3277_v28, %v3252_v23  ;;  %v3407_v23 = vpop.permute.xlu2 %3406 }
0x1441   :  { %v3300_v47 = vmax.f32 %v3295_v37, 0.0 }
0x1443   :  { %v3310_v56 = vpack.c.bf16 %v3300_v47, %v3299_v55 }
0x1444   :  { %v3207_v20 = vpop.f32.mrf.mxu1 }
0x1445   :  { %v3255_v24 = vadd.f32 %v3254_v12, %v3207_v20  ;;  %v3322_v20 = vpop.permute.xlu0 %3321 }
0x1447   :  { %v3296_v27 = vadd.f32 %v3282_v8, %v3255_v24 }
0x1449   :  { %v3301_v53 = vmax.f32 %v3296_v27, 0.0  ;;  %v3428_v27 = vmul.f32 0.5, %v7345_v36 }
0x144c   :  { %v3209_v17 = vpop.f32.mrf.mxu1 }
0x144d   :  { %v3257_v62 = vadd.f32 %v3256_v35, %v3209_v17 }
0x144f   :  { %v3297_v41 = vadd.f32 %v3287_v29, %v3257_v62 }
0x1451   :  { %v3302_v39 = vmax.f32 %v3297_v41, 0.0 }
0x1453   :  { %v3311_v54 = vpack.c.bf16 %v3302_v39, %v3301_v53  ;;  %v6291_v53 = vld [vmem:[%s7726_s14 + $0x50] sm:$0xff] }
0x1454   :  { %v3212_v9 = vpop.f32.mrf.mxu1 }
0x1455   :  { %v3260_v18 = vadd.f32 %v3259_v14, %v3212_v9  ;;  %v3327_v14 = vpop.permute.xlu1 %3326 }
0x1457   :  { %v3298_v34 = vadd.f32 %v3292_v31, %v3260_v18 }
0x1459   :  { %v3303_v32 = vmax.f32 %v3298_v34, 0.0  ;;  %v5853_v34 = vld [vmem:[%s7744_s26 + $0xc] sm:$0x7] }
0x145b   :  { %v3312_v6 = vpack.c.bf16 %v3303_v32, %v3303_v32 }
0x145c   :  { %v3214_v42 = vpop.f32.mrf.mxu1 }
0x145d   :  { %v3367_v45 = vsel %vm310_vm1, %v3312_v6, 0  ;;  %v6295_v42 = vld [vmem:[%s7736_s8 + $0x50] sm:$0xff] }
0x145e   :  { %3374 = vmatpush.bf16.msrb.mxu0 %v3367_v45 }
0x1462   :  { %3375 = vmatpush.bf16.msrb.mxu0 %v3311_v54  ;;  %v5902_v54 = vld [vmem:[%s7736_s8 + $0x60] sm:$0xf] }
0x1463   :  { %v3592_v55 = vunpack.c.l.b16 %v5902_v54 }
0x1465   :  { %v3595_v3 = vpack.c.b16 %v3592_v55, %v3592_v55 }
0x1466   :  { %3376 = vmatpush.bf16.msrb.mxu0 %v3310_v56 }
0x1469   :  { %5850 = vmatmul.msk.bf16.vlgmr.msrb.gmra.mxu0 %vm348_vm5, %v6289_v38 }
0x146a   :  { %3615 = vmatpush.bf16.msra.mxu0 %v3606_v57 }
0x1479   :  { %5851 = vmatmul.msk.bf16.gmra.mxu0 %vm348_vm5, %v6290_v25  ;;  %v6293_v25 = vld [vmem:[%s7725_s6 + $0x50] sm:$0xff] }
0x1489   :  { %5852 = vmatmul.msk.bf16.gmra.mxu0 %vm348_vm5, %v3356_v13  ;;  %v5870_v13 = vld [vmem:[%s7726_s14 + $0x60] sm:$0xf] }
0x1499   :  { %5911 = vmatmul.msk.bf16.vlgmr.msra.gmra.mxu0 %vm389_vm4, %v6295_v42  ;;  %v3660_v42 = vpop.permute.xlu2 %3659 }
0x14a9   :  { %5912 = vmatmul.msk.bf16.gmra.mxu0 %vm389_vm4, %v6296_v44 }
0x14b9   :  { %5913 = vmatmul.msk.bf16.gmra.mxu0 %vm389_vm4, %v3595_v3 }
0x14e6   :  { %v3378_v22 = vpop.f32.mrf.mxu0 }
0x14e7   :  { %v3379_v8 = vadd.f32 %v3378_v22, %v3322_v20  ;;  %v3537_v22 = vunpack.c.l.b16 %v5870_v13 }
0x14e9   :  { %v3392_v24 = vmax.f32 %v3379_v8, 0.0 }
0x14ee   :  { %v3380_v50 = vpop.f32.mrf.mxu0 }
0x14ef   :  { %v3381_v0 = vadd.f32 %v3380_v50, %v3327_v14  ;;  %v6294_v50 = vld [vmem:[%s7725_s6 + $0x58] sm:$0xff] }
0x14f1   :  { %v3393_v9 = vmax.f32 %v3381_v0, 0.0 }
0x14f3   :  { %v3399_v29 = vpack.c.bf16 %v3393_v9, %v3392_v24  ;;  %v3655_v24 = vpop.permute.xlu1 %3654 }
0x14f6   :  { %v3383_v5 = vpop.f32.mrf.mxu0 }
0x14f7   :  { %v3384_v35 = vadd.f32 %v3383_v5, %v3332_v10  ;;  %v3540_v5 = vpack.c.b16 %v3537_v22, %v3537_v22 }
0x14f9   :  { %v3394_v31 = vmax.f32 %v3384_v35, 0.0 }
0x14fb   :  { %v3650_v55 = vpop.permute.xlu1 %3649 }
0x14fe   :  { %v3385_v46 = vpop.f32.mrf.mxu0 }
0x14ff   :  { %v3386_v63 = vadd.f32 %v3385_v46, %v3337_v30  ;;  %v5875_v46 = vld [vmem:[%s7725_s6 + $0x60] sm:$0xf] }
0x1500   :  { %v3489_v10 = vunpack.c.l.b16 %v5875_v46 }
0x1501   :  { %v3395_v2 = vmax.f32 %v3386_v63, 0.0 }
0x1503   :  { %v3400_v18 = vpack.c.bf16 %v3395_v2, %v3394_v31 }
0x1506   :  { %v3388_v59 = vpop.f32.mrf.mxu0 }
0x1507   :  { %v3389_v33 = vadd.f32 %v3388_v59, %v3342_v21  ;;  %v3492_v21 = vpack.c.b16 %v3489_v10, %v3489_v10  ;;  %v6297_v10 = vld [vmem:[%s7738_s20 + $0x50] sm:$0xff] }
0x1509   :  { %v3396_v12 = vmax.f32 %v3389_v33, 0.0 }
0x150b   :  { %v3401_v49 = vpack.c.bf16 %v3396_v12, %v3396_v12 }
0x150d   :  { %v3413_v17 = vsel %vm310_vm1, %v3401_v49, 0 }
0x150e   :  { %v3390_v62 = vpop.f32.mrf.mxu0  ;;  %3420 = vmatpush.bf16.msrb.mxu2 %v3413_v17 }
0x1512   :  { %3421 = vmatpush.bf16.msrb.mxu2 %v3400_v18 }
0x1516   :  { %3422 = vmatpush.bf16.msrb.mxu2 %v3399_v29  ;;  %v3617_v59 = vpop.f32.mrf.mxu0 }
0x1519   :  { %5855 = vmatmul.msk.bf16.vlgmr.msrb.gmra.mxu2 %vm348_vm5, %v5853_v34 }
0x151a   :  { %5857 = vmatpush.bf16.msk.msra.mxu2 %vm6810_vm8, %v6490_v60 }
0x151e   :  { %5859 = vmatpush.bf16.msk.msra.mxu2 %vm6836_vm0, %v6490_v60  ;;  %v3619_v30 = vpop.f32.mrf.mxu0 }
0x1522   :  { %5862 = vmatpush.bf16.msk.msrb.mxu2 %vm6818_vm11, %v6490_v60 }
0x1526   :  { %5864 = vmatpush.bf16.msk.msrb.mxu2 %vm6843_vm6, %v6490_v60  ;;  %v3622_v33 = vpop.f32.mrf.mxu0 }
0x152e   :  { %v3624_v63 = vpop.f32.mrf.mxu0 }
0x1536   :  { %v3627_v35 = vpop.f32.mrf.mxu0 }
0x153e   :  { %v3629_v0 = vpop.f32.mrf.mxu0 }
0x153f   :  { %v3715_v0 = vpop.permute.xlu2 %3714 }
0x159c   :  { %v3424_v41 = vpop.f32.mrf.mxu2 }
0x159d   :  { %v3425_v32 = vadd.f32 %v3424_v41, %v3407_v23  ;;  %v3665_v23 = vpop.permute.xlu0 %3664 }
0x159f   :  { %v3429_v40 = vmax.f32 %v3425_v32, 0.0 }
0x15a1   :  { %v3430_v28 = vmul.f32 0.5, %v3429_v40 }
0x15a3   :  { %v7454_v6 = vadd.f32 %v3430_v28, %v3428_v27 }
0x15a4   :  { %v3426_v37 = vpop.f32.mrf.mxu2 }
0x15a5   :  { %v7458_v39 = vpack.c.bf16 %v7454_v6, %v7454_v6 }
0x15a7   :  { %5860 = vmatmul.msk.bf16.vlgmr.msra.gmra.mxu2 %vm7776_vm3, %v7458_v39  ;;  %vm7780_vm3 = vmmov %vm7778_vm7  ;;  %v3902_v46 = vand.u32 %v7458_v39, %v6722_v7 }
0x15b7   :  { %5865 = vmatmul.msk.bf16.vlgmr.msrb.gmra.mxu2 %vm7777_vm10, %v7458_v39  ;;  %vm7781_vm10 = vmmov %vm7780_vm3 }
0x162a   :  { %v3449_v36 = vpop.f32.mrf.mxu2 }
0x162b   :  { %v3472_v45 = vpack.c.bf16 %v3449_v36, %v3449_v36 }
0x162d   :  { %v3551_v48 = vand.u32 %v3472_v45, %v6722_v7 }
0x162f   :  { %3560 = vmatpush.bf16.msrb.mxu3 %v3551_v48 }
0x1632   :  { %v3451_v47 = vpop.f32.mrf.mxu2  ;;  %5895 = vmatmul.msk.bf16.vlgmr.msrb.gmra.mxu3 %vm7773_vm15, %v6291_v53  ;;  %vm7782_vm15 = vmmov %vm7780_vm3 }
0x1633   :  { %5944 = vmatpush.bf16.msk.msra.mxu3 %vm6952_vm12, %v6490_v60 }
0x1637   :  { %5946 = vmatpush.bf16.msk.msra.mxu3 %vm6966_vm9, %v6490_v60 }
0x163a   :  { %v3462_v56 = vpop.f32.mrf.mxu2 }
0x163b   :  { %5948 = vmatpush.bf16.msk.msra.mxu3 %vm6976_vm14, %v6490_v60  ;;  %v3479_v38 = vpack.c.bf16 %v3462_v56, %v3462_v56 }
0x163d   :  { %v3503_v57 = vand.u32 %v3479_v38, %v6722_v7 }
0x163f   :  { %5950 = vmatpush.bf16.msk.msra.mxu3 %vm6984_vm2, %v6490_v60  ;;  %3512 = vmatpush.bf16.msrb.mxu1 %v3503_v57  ;;  %v3645_v57 = vpop.permute.xlu0 %3644 }
0x1642   :  { %v3464_v52 = vpop.f32.mrf.mxu2  ;;  %5884 = vmatmul.msk.bf16.vlgmr.msrb.gmra.mxu1 %vm7778_vm7, %v6293_v25  ;;  %5896 = vmatmul.msk.bf16.gmra.mxu3 %vm7779_vm13, %v6292_v26  ;;  %vm7783_vm7 = vmmov %vm7780_vm3  ;;  %vm7784_vm13 = vcmask 523264  }
0x1652   :  { %5885 = vmatmul.msk.bf16.gmra.mxu1 %vm7780_vm3, %v6294_v50  ;;  %5897 = vmatmul.msk.bf16.gmra.mxu3 %vm7781_vm10, %v3540_v5  ;;  %vm7785_vm10 = vmmov %vm7780_vm3 }
0x1662   :  { %5886 = vmatmul.msk.bf16.gmra.mxu1 %vm7782_vm15, %v3492_v21  ;;  %v6298_v21 = vld [vmem:[%s7738_s20 + $0x58] sm:$0xff]  ;;  %vm7786_vm15 = vcmask 1041408  }
0x16b5   :  { %v3562_v12 = vpop.f32.mrf.mxu3 }
0x16bd   :  { %v3564_v14 = vpop.f32.mrf.mxu3 }
0x16bf   :  { %v3514_v49 = vpop.f32.mrf.mxu1 }
0x16c0   :  { %v3563_v28 = vadd.f32 %v3562_v12, %v3514_v49  ;;  %v3705_v49 = vpop.permute.xlu0 %3704 }
0x16c2   :  { %v3631_v53 = vadd.f32 %v3617_v59, %v3563_v28  ;;  %v5923_v59 = vld [vmem:[%s7738_s20 + $0x60] sm:$0xf] }
0x16c4   :  { %v3667_v26 = vadd.f32 %v3645_v57, %v3631_v53  ;;  %v6300_v57 = vld [vmem:[%s7740_s4 + $0x58] sm:$0xff] }
0x16c5   :  { %v3567_v2 = vpop.f32.mrf.mxu3 }
0x16c6   :  { %v3672_v50 = vmax.f32 %v3667_v26, 0.0 }
0x16c7   :  { %v3516_v20 = vpop.f32.mrf.mxu1 }
0x16c8   :  { %v3565_v32 = vadd.f32 %v3564_v14, %v3516_v20 }
0x16ca   :  { %v3632_v36 = vadd.f32 %v3619_v30, %v3565_v32  ;;  %v3726_v30 = vunpack.c.l.b16 %v5923_v59 }
0x16cc   :  { %v3668_v56 = vadd.f32 %v3650_v55, %v3632_v36  ;;  %v4096_v55 = vmul.f32 0.5, %v7414_v43 }
0x16cd   :  { %v3569_v17 = vpop.f32.mrf.mxu3 }
0x16ce   :  { %v3673_v22 = vmax.f32 %v3668_v56, 0.0 }
0x16cf   :  { %v3519_v8 = vpop.f32.mrf.mxu1 }
0x16d0   :  { %v3568_v29 = vadd.f32 %v3567_v2, %v3519_v8  ;;  %v3683_v5 = vpack.c.bf16 %v3673_v22, %v3672_v50  ;;  %v3710_v2 = vpop.permute.xlu1 %3709  ;;  %v6301_v50 = vld [vmem:[%s7741_s23 + $0x50] sm:$0xff] }
0x16d2   :  { %v3633_v37 = vadd.f32 %v3622_v33, %v3568_v29  ;;  %v3729_v33 = vpack.c.b16 %v3726_v30, %v3726_v30  ;;  %v3695_v29 = vpop.permute.xlu2 %3694 }
0x16d4   :  { %v3669_v47 = vadd.f32 %v3655_v24, %v3633_v37 }
0x16d5   :  { %v3572_v31 = vpop.f32.mrf.mxu3 }
0x16d6   :  { %v3674_v52 = vmax.f32 %v3669_v47, 0.0 }
0x16d7   :  { %v3521_v62 = vpop.f32.mrf.mxu1 }
0x16d8   :  { %v3570_v9 = vadd.f32 %v3569_v17, %v3521_v62  ;;  %v3700_v62 = vpop.permute.xlu0 %3699  ;;  %v3780_v36 = vpop.permute.xlu1 %3779 }
0x16da   :  { %v3634_v40 = vadd.f32 %v3624_v63, %v3570_v9 }
0x16dc   :  { %v3670_v45 = vadd.f32 %v3660_v42, %v3634_v40  ;;  %v5940_v42 = vld [vmem:[%s7739_s27 + $0x8] sm:$0x3] }
0x16dd   :  { %v3574_v18 = vpop.f32.mrf.mxu3 }
0x16de   :  { %v3675_v38 = vmax.f32 %v3670_v45, 0.0 }
0x16df   :  { %v3524_v34 = vpop.f32.mrf.mxu1 }
0x16e0   :  { %v3573_v41 = vadd.f32 %v3572_v31, %v3524_v34  ;;  %v3684_v13 = vpack.c.bf16 %v3675_v38, %v3674_v52 }
0x16e2   :  { %v3635_v27 = vadd.f32 %v3627_v35, %v3573_v41 }
0x16e4   :  { %v3671_v44 = vadd.f32 %v3665_v23, %v3635_v27 }
0x16e6   :  { %v3676_v48 = vmax.f32 %v3671_v44, 0.0  ;;  %v6299_v44 = vld [vmem:[%s7740_s4 + $0x50] sm:$0xff] }
0x16e7   :  { %v3526_v54 = vpop.f32.mrf.mxu1 }
0x16e8   :  { %v3685_v3 = vpack.c.bf16 %v3676_v48, %v3676_v48 }
0x16ea   :  { %v3740_v25 = vsel %vm310_vm1, %v3685_v3, 0 }
0x16eb   :  { %3747 = vmatpush.bf16.msra.mxu2 %v3740_v25  ;;  %v5956_v25 = vld [vmem:[%s7740_s4 + $0x60] sm:$0xf] }
0x16ec   :  { %v3889_v26 = vunpack.c.l.b16 %v5956_v25  ;;  %v6304_v25 = vld [vmem:[%s7743_s22 + $0x58] sm:$0xff] }
0x16ee   :  { %v3892_v52 = vpack.c.b16 %v3889_v26, %v3889_v26  ;;  %v5993_v26 = vld [vmem:[%s7743_s22 + $0x60] sm:$0xf] }
0x16ef   :  { %3748 = vmatpush.bf16.msra.mxu2 %v3684_v13 }
0x16f3   :  { %3749 = vmatpush.bf16.msra.mxu2 %v3683_v5 }
0x16f6   :  { %5937 = vmatmul.msk.bf16.vlgmr.msra.gmra.mxu2 %vm348_vm5, %v6297_v10  ;;  %v5961_v10 = vld [vmem:[%s7741_s23 + $0x60] sm:$0xf] }
0x16f7   :  { %3911 = vmatpush.bf16.msrb.mxu2 %v3902_v46  ;;  %v6302_v46 = vld [vmem:[%s7741_s23 + $0x58] sm:$0xff] }
0x1706   :  { %5938 = vmatmul.msk.bf16.gmra.mxu2 %vm348_vm5, %v6298_v21  ;;  %v3841_v21 = vunpack.c.l.b16 %v5961_v10 }
0x1708   :  { %v3844_v59 = vpack.c.b16 %v3841_v21, %v3841_v21 }
0x1716   :  { %5939 = vmatmul.msk.bf16.gmra.mxu2 %vm348_vm5, %v3729_v33 }
0x1726   :  { %5981 = vmatmul.msk.bf16.vlgmr.msrb.gmra.mxu2 %vm7783_vm7, %v6299_v44  ;;  %vm7787_vm7 = vmmov %vm7786_vm15 }
0x1736   :  { %5982 = vmatmul.msk.bf16.gmra.mxu2 %vm7780_vm3, %v6300_v57 }
0x1746   :  { %5983 = vmatmul.msk.bf16.gmra.mxu2 %vm7785_vm10, %v3892_v52  ;;  %v4017_v52 = vunpack.c.l.b16 %v5993_v26 }
0x1779   :  { %v3751_v63 = vpop.f32.mrf.mxu2 }
0x177a   :  { %v3752_v23 = vadd.f32 %v3751_v63, %v3695_v29 }
0x177c   :  { %v3765_v28 = vmax.f32 %v3752_v23, 0.0 }
0x1781   :  { %v3753_v12 = vpop.f32.mrf.mxu2 }
0x1782   :  { %v3754_v18 = vadd.f32 %v3753_v12, %v3700_v62 }
0x1784   :  { %v3766_v40 = vmax.f32 %v3754_v18, 0.0  ;;  %v3951_v18 = vpop.permute.xlu1 %3950 }
0x1786   :  { %v3772_v37 = vpack.c.bf16 %v3766_v40, %v3765_v28 }
0x1789   :  { %v3756_v35 = vpop.f32.mrf.mxu2 }
0x178a   :  { %v3757_v31 = vadd.f32 %v3756_v35, %v3705_v49 }
0x178c   :  { %v3767_v41 = vmax.f32 %v3757_v31, 0.0 }
0x1791   :  { %v3758_v14 = vpop.f32.mrf.mxu2 }
0x1792   :  { %v3759_v17 = vadd.f32 %v3758_v14, %v3710_v2 }
0x1794   :  { %v3768_v24 = vmax.f32 %v3759_v17, 0.0  ;;  %v3956_v17 = vpop.permute.xlu2 %3955 }
0x1796   :  { %v3773_v27 = vpack.c.bf16 %v3768_v24, %v3767_v41 }
0x1799   :  { %v3761_v39 = vpop.f32.mrf.mxu2 }
0x179a   :  { %v3762_v20 = vadd.f32 %v3761_v39, %v3715_v0 }
0x179c   :  { %v3769_v8 = vmax.f32 %v3762_v20, 0.0  ;;  %v3946_v20 = vpop.permute.xlu0 %3945  ;;  %v3936_v44 = vpop.permute.xlu2 %3935 }
0x179e   :  { %v3774_v9 = vpack.c.bf16 %v3769_v8, %v3769_v8 }
0x17a0   :  { %v3786_v34 = vsel %vm310_vm1, %v3774_v9, 0 }
0x17a1   :  { %v3763_v32 = vpop.f32.mrf.mxu2  ;;  %3793 = vmatpush.bf16.msra.mxu1 %v3786_v34 }
0x17a4   :  { %v3941_v40 = vpop.permute.xlu0 %3940 }
0x17a5   :  { %3794 = vmatpush.bf16.msra.mxu1 %v3773_v27 }
0x17a9   :  { %3795 = vmatpush.bf16.msra.mxu1 %v3772_v37  ;;  %v3913_v30 = vpop.f32.mrf.mxu2 }
0x17ac   :  { %5942 = vmatmul.msk.bf16.vlgmr.msra.gmra.mxu1 %vm348_vm5, %v5940_v42  ;;  %v4001_v21 = vpop.permute.xlu0 %4000 }
0x17b1   :  { %v3915_v33 = vpop.f32.mrf.mxu2 }
0x17b9   :  { %v3918_v63 = vpop.f32.mrf.mxu2 }
0x17c1   :  { %v3920_v12 = vpop.f32.mrf.mxu2 }
0x17c9   :  { %v3923_v35 = vpop.f32.mrf.mxu2 }
0x17d1   :  { %v3925_v49 = vpop.f32.mrf.mxu2 }
0x1829   :  { %v3797_v45 = vpop.f32.mrf.mxu1 }
0x182a   :  { %v3798_v48 = vadd.f32 %v3797_v45, %v3780_v36 }
0x182c   :  { %v3801_v53 = vmul.f32 %v3798_v48, %v7410_v51  ;;  %v4097_v47 = vmax.f32 %v3798_v48, 0.0 }
0x182e   :  { %v3802_v54 = vpack.c.bf16 %v3801_v53, %v3801_v53  ;;  %v4098_v3 = vmul.f32 0.5, %v4097_v47 }
0x1830   :  { %v7512_v56 = vadd.f32 %v4098_v3, %v4096_v55  ;;  %5951 = vmatmul.msk.bf16.vlgmr.msra.gmra.mxu3 %vm7784_vm13, %v3802_v54 }
0x1831   :  { %v3799_v38 = vpop.f32.mrf.mxu1 }
0x1832   :  { %v4246_v55 = vpack.c.bf16 %v7512_v56, %v7512_v56  ;;  %v6303_v38 = vld [vmem:[%s7743_s22 + $0x50] sm:$0xff] }
0x1834   :  { %v4270_v57 = vsel %vm7787_vm7, %v4246_v55, 0  ;;  %v4201_v55 = vunpack.c.l.b16 %v6027_v11 }
0x18b3   :  { %v3815_v13 = vpop.f32.mrf.mxu3 }
0x18b4   :  { %v3831_v22 = vpack.c.bf16 %v3815_v13, %v3815_v13  ;;  %v4020_v13 = vpack.c.b16 %v4017_v52, %v4017_v52 }
0x18b6   :  { %v3855_v43 = vsel %vm7786_vm15, %v3831_v22, 0 }
0x18b7   :  { %3864 = vmatpush.bf16.msrb.mxu0 %v3855_v43 }
0x18ba   :  { %5970 = vmatmul.msk.bf16.vlgmr.msrb.gmra.mxu0 %vm389_vm4, %v6301_v50 }
0x18bb   :  { %v3817_v5 = vpop.f32.mrf.mxu3 }
0x18bc   :  { %v3996_v5 = vpop.permute.xlu2 %3995 }
0x18ca   :  { %5971 = vmatmul.msk.bf16.gmra.mxu0 %vm389_vm4, %v6302_v46  ;;  %v4006_v46 = vpop.permute.xlu1 %4005 }
0x18da   :  { %5972 = vmatmul.msk.bf16.gmra.mxu0 %vm389_vm4, %v3844_v59 }
0x1937   :  { %v3866_v14 = vpop.f32.mrf.mxu0 }
0x1938   :  { %v3914_v41 = vadd.f32 %v3913_v30, %v3866_v14 }
0x193a   :  { %v3958_v45 = vadd.f32 %v3936_v44, %v3914_v41  ;;  %v6059_v44 = vld [vmem:[%s7736_s8 + $0x74] sm:$0xf] }
0x193c   :  { %v3963_v54 = vmax.f32 %v3958_v45, 0.0 }
0x193f   :  { %v3868_v0 = vpop.f32.mrf.mxu0 }
0x1940   :  { %v3916_v29 = vadd.f32 %v3915_v33, %v3868_v0  ;;  %v3986_v0 = vpop.permute.xlu1 %3985 }
0x1942   :  { %v3959_v28 = vadd.f32 %v3941_v40, %v3916_v29  ;;  %v6310_v40 = vld [vmem:[%s7736_s8 + $0x6c] sm:$0xff] }
0x1944   :  { %v3964_v53 = vmax.f32 %v3959_v28, 0.0 }
0x1946   :  { %v3974_v3 = vpack.c.bf16 %v3964_v53, %v3963_v54 }
0x1947   :  { %v3871_v39 = vpop.f32.mrf.mxu0 }
0x1948   :  { %v3919_v9 = vadd.f32 %v3918_v63, %v3871_v39 }
0x194a   :  { %v3960_v32 = vadd.f32 %v3946_v20, %v3919_v9 }
0x194c   :  { %v3965_v48 = vmax.f32 %v3960_v32, 0.0 }
0x194f   :  { %v3873_v2 = vpop.f32.mrf.mxu0 }
0x1950   :  { %v3921_v8 = vadd.f32 %v3920_v12, %v3873_v2  ;;  %v3991_v12 = vpop.permute.xlu2 %3990 }
0x1952   :  { %v3961_v34 = vadd.f32 %v3951_v18, %v3921_v8  ;;  %v6010_v18 = vld [vmem:[%s7744_s26 + $0x10] sm:$0x7] }
0x1954   :  { %v3966_v37 = vmax.f32 %v3961_v34, 0.0 }
0x1956   :  { %v3975_v47 = vpack.c.bf16 %v3966_v37, %v3965_v48  ;;  %v6305_v37 = vld [vmem:[%s7726_s14 + $0x64] sm:$0xff] }
0x1957   :  { %v3876_v31 = vpop.f32.mrf.mxu0 }
0x1958   :  { %v3924_v62 = vadd.f32 %v3923_v35, %v3876_v31 }
0x195a   :  { %v3962_v24 = vadd.f32 %v3956_v17, %v3924_v62 }
0x195c   :  { %v3967_v23 = vmax.f32 %v3962_v24, 0.0  ;;  %v4071_v24 = vpop.permute.xlu0 %4070 }
0x195e   :  { %v3976_v27 = vpack.c.bf16 %v3967_v23, %v3967_v23  ;;  %v4092_v23 = vmul.f32 0.5, %v7454_v6 }
0x195f   :  { %v3878_v42 = vpop.f32.mrf.mxu0 }
0x1960   :  { %v4031_v36 = vsel %vm310_vm1, %v3976_v27, 0 }
0x1961   :  { %4038 = vmatpush.bf16.msrb.mxu1 %v4031_v36  ;;  %v4256_v36 = vunpack.c.l.b16 %v6059_v44 }
0x1963   :  { %v4259_v45 = vpack.c.b16 %v4256_v36, %v4256_v36 }
0x1965   :  { %4039 = vmatpush.bf16.msrb.mxu1 %v3975_v47  ;;  %v6306_v47 = vld [vmem:[%s7726_s14 + $0x6c] sm:$0xff] }
0x1969   :  { %4040 = vmatpush.bf16.msrb.mxu1 %v3974_v3  ;;  %v6308_v3 = vld [vmem:[%s7725_s6 + $0x6c] sm:$0xff] }
0x196c   :  { %6007 = vmatmul.msk.bf16.vlgmr.msrb.gmra.mxu1 %vm348_vm5, %v6303_v38  ;;  %v4204_v38 = vpack.c.b16 %v4201_v55, %v4201_v55 }
0x196d   :  { %4279 = vmatpush.bf16.msra.mxu1 %v4270_v57 }
0x197c   :  { %6008 = vmatmul.msk.bf16.gmra.mxu1 %vm348_vm5, %v6304_v25 }
0x198c   :  { %6009 = vmatmul.msk.bf16.gmra.mxu1 %vm348_vm5, %v4020_v13 }
0x199c   :  { %6068 = vmatmul.msk.bf16.vlgmr.msra.gmra.mxu1 %vm389_vm4, %v6309_v16 }
0x19ac   :  { %6069 = vmatmul.msk.bf16.gmra.mxu1 %vm389_vm4, %v6310_v40 }
0x19bc   :  { %6070 = vmatmul.msk.bf16.gmra.mxu1 %vm389_vm4, %v4259_v45 }
0x19e9   :  { %v4042_v22 = vpop.f32.mrf.mxu1 }
0x19ea   :  { %v4043_v2 = vadd.f32 %v4042_v22, %v3986_v0 }
0x19ec   :  { %v4056_v62 = vmax.f32 %v4043_v2, 0.0 }
0x19f1   :  { %v4044_v43 = vpop.f32.mrf.mxu1 }
0x19f2   :  { %v4045_v14 = vadd.f32 %v4044_v43, %v3991_v12 }
0x19f4   :  { %v4057_v8 = vmax.f32 %v4045_v14, 0.0 }
0x19f6   :  { %v4063_v9 = vpack.c.bf16 %v4057_v8, %v4056_v62 }
0x19f9   :  { %v4047_v50 = vpop.f32.mrf.mxu1 }
0x19fa   :  { %v4048_v63 = vadd.f32 %v4047_v50, %v3996_v5 }
0x19fc   :  { %v4058_v20 = vmax.f32 %v4048_v63, 0.0 }
0x1a01   :  { %v4049_v56 = vpop.f32.mrf.mxu1 }
0x1a02   :  { %v4050_v30 = vadd.f32 %v4049_v56, %v4001_v21  ;;  %v4329_v56 = vpop.permute.xlu1 %4328 }
0x1a04   :  { %v4059_v49 = vmax.f32 %v4050_v30, 0.0 }
0x1a06   :  { %v4064_v31 = vpack.c.bf16 %v4059_v49, %v4058_v20 }
0x1a09   :  { %v4052_v10 = vpop.f32.mrf.mxu1 }
0x1a0a   :  { %v4053_v59 = vadd.f32 %v4052_v10, %v4006_v46  ;;  %v4319_v46 = vpop.permute.xlu2 %4318  ;;  %v4309_v12 = vpop.permute.xlu1 %4308 }
0x1a0c   :  { %v4060_v33 = vmax.f32 %v4053_v59, 0.0 }
0x1a0e   :  { %v4065_v35 = vpack.c.bf16 %v4060_v33, %v4060_v33 }
0x1a10   :  { %v4077_v39 = vsel %vm310_vm1, %v4065_v35, 0 }
0x1a11   :  { %v4054_v17 = vpop.f32.mrf.mxu1  ;;  %4084 = vmatpush.bf16.msrb.mxu3 %v4077_v39 }
0x1a12   :  { %v4314_v49 = vpop.permute.xlu2 %4313 }
0x1a15   :  { %4085 = vmatpush.bf16.msrb.mxu3 %v4064_v31 }
0x1a19   :  { %4086 = vmatpush.bf16.msrb.mxu3 %v4063_v9  ;;  %v4281_v25 = vpop.f32.mrf.mxu1 }
0x1a1c   :  { %6012 = vmatmul.msk.bf16.vlgmr.msrb.gmra.mxu3 %vm348_vm5, %v6010_v18 }
0x1a1d   :  { %6014 = vmatpush.bf16.msk.msra.mxu3 %vm6810_vm8, %v6490_v60  ;;  %vm7788_vm8 = vcmask 261120  }
0x1a21   :  { %6016 = vmatpush.bf16.msk.msra.mxu3 %vm6836_vm0, %v6490_v60  ;;  %vm7790_vm0 = vmmov %vm7780_vm3  ;;  %v4283_v26 = vpop.f32.mrf.mxu1 }
0x1a22   :  { %vm7796_vm3 = vmmov %vm7790_vm0 }
0x1a23   :  { %vm7797_vm10 = vmmov %vm7790_vm0 }
0x1a24   :  { %vm7798_vm15 = vmmov %vm7790_vm0 }
0x1a25   :  { %6019 = vmatpush.bf16.msk.msrb.mxu3 %vm6818_vm11, %v6490_v60  ;;  %vm7789_vm11 = vmmov %vm7788_vm8 }
0x1a29   :  { %6021 = vmatpush.bf16.msk.msrb.mxu3 %vm6843_vm6, %v6490_v60  ;;  %vm7791_vm6 = vmmov %vm7790_vm0  ;;  %v4286_v52 = vpop.f32.mrf.mxu1 }
0x1a31   :  { %v4288_v13 = vpop.f32.mrf.mxu1 }
0x1a39   :  { %v4291_v43 = vpop.f32.mrf.mxu1 }
0x1a41   :  { %v4293_v21 = vpop.f32.mrf.mxu1 }
0x1a9f   :  { %v4088_v29 = vpop.f32.mrf.mxu3 }
0x1aa0   :  { %v4089_v58 = vadd.f32 %v4088_v29, %v4071_v24 }
0x1aa2   :  { %v4093_v34 = vmax.f32 %v4089_v58, 0.0 }
0x1aa4   :  { %v4094_v41 = vmul.f32 0.5, %v4093_v34 }
0x1aa6   :  { %v7552_v32 = vadd.f32 %v4094_v41, %v4092_v23 }
0x1aa7   :  { %v4090_v15 = vpop.f32.mrf.mxu3 }
0x1aa8   :  { %v7556_v1 = vpack.c.bf16 %v7552_v32, %v7552_v32  ;;  %v4324_v15 = vpop.permute.xlu0 %4323 }
0x1aaa   :  { %6017 = vmatmul.msk.bf16.vlgmr.msra.gmra.mxu3 %vm7788_vm8, %v7556_v1  ;;  %vm7803_vm8 = vmmov %vm7790_vm0 }
0x1aba   :  { %6022 = vmatmul.msk.bf16.vlgmr.msrb.gmra.mxu3 %vm7789_vm11, %v7556_v1  ;;  %vm7804_vm11 = vmmov %vm7790_vm0 }
0x1b2d   :  { %v4113_v6 = vpop.f32.mrf.mxu3 }
0x1b2e   :  { %v4136_v27 = vpack.c.bf16 %v4113_v6, %v4113_v6 }
0x1b30   :  { %v4215_v28 = vand.u32 %v4136_v27, %v6722_v7 }
0x1b32   :  { %4224 = vmatpush.bf16.msra.mxu2 %v4215_v28 }
0x1b35   :  { %v4115_v42 = vpop.f32.mrf.mxu3  ;;  %6052 = vmatmul.msk.bf16.vlgmr.msra.gmra.mxu2 %vm7790_vm0, %v6305_v37 }
0x1b36   :  { %6101 = vmatpush.bf16.msk.msrb.mxu2 %vm6952_vm12, %v6490_v60  ;;  %vm7792_vm12 = vmmov %vm7790_vm0 }
0x1b3a   :  { %6103 = vmatpush.bf16.msk.msrb.mxu2 %vm6966_vm9, %v6490_v60  ;;  %vm7793_vm9 = vmmov %vm7790_vm0 }
0x1b3d   :  { %v4126_v48 = vpop.f32.mrf.mxu3 }
0x1b3e   :  { %6105 = vmatpush.bf16.msk.msrb.mxu2 %vm6976_vm14, %v6490_v60  ;;  %v4143_v53 = vpack.c.bf16 %v4126_v48, %v4126_v48  ;;  %vm7794_vm14 = vmmov %vm7790_vm0  ;;  %v4566_v48 = vand.u32 %v7556_v1, %v6722_v7 }
0x1b40   :  { %v4167_v61 = vand.u32 %v4143_v53, %v6722_v7  ;;  %v6311_v53 = vld [vmem:[%s7738_s20 + $0x64] sm:$0xff] }
0x1b42   :  { %6107 = vmatpush.bf16.msk.msrb.mxu2 %vm6984_vm2, %v6490_v60  ;;  %4176 = vmatpush.bf16.msra.mxu0 %v4167_v61  ;;  %v6032_v60 = vld [vmem:[%s7725_s6 + $0x74] sm:$0xf]  ;;  %vm7795_vm2 = vmmov %vm7790_vm0  ;;  %v6312_v61 = vld [vmem:[%s7738_s20 + $0x6c] sm:$0xff] }
0x1b43   :  { %v4153_v19 = vunpack.c.l.b16 %v6032_v60  ;;  %v4369_v60 = vpop.permute.xlu1 %4368 }
0x1b45   :  { %v4128_v54 = vpop.f32.mrf.mxu3  ;;  %6041 = vmatmul.msk.bf16.vlgmr.msra.gmra.mxu0 %vm7791_vm6, %v6307_v4  ;;  %6053 = vmatmul.msk.bf16.gmra.mxu2 %vm7792_vm12, %v6306_v47  ;;  %v4156_v57 = vpack.c.b16 %v4153_v19, %v4153_v19  ;;  %v6080_v4 = vld [vmem:[%s7738_s20 + $0x74] sm:$0xf]  ;;  %v4379_v19 = vpop.permute.xlu0 %4378  ;;  %vm5129_vm6 = vcmask 256001  }
0x1b46   :  { %v4390_v47 = vunpack.c.l.b16 %v6080_v4 }
0x1b48   :  { %v4393_v54 = vpack.c.b16 %v4390_v47, %v4390_v47 }
0x1b55   :  { %6042 = vmatmul.msk.bf16.gmra.mxu0 %vm7793_vm9, %v6308_v3  ;;  %6054 = vmatmul.msk.bf16.gmra.mxu2 %vm7794_vm14, %v4204_v38 }
0x1b65   :  { %6043 = vmatmul.msk.bf16.gmra.mxu0 %vm7795_vm2, %v4156_v57  ;;  %v4374_v57 = vpop.permute.xlu2 %4373 }
0x1bb8   :  { %v4226_v22 = vpop.f32.mrf.mxu2 }
0x1bc0   :  { %v4228_v50 = vpop.f32.mrf.mxu2 }
0x1bc2   :  { %v4178_v5 = vpop.f32.mrf.mxu0 }
0x1bc3   :  { %v4227_v10 = vadd.f32 %v4226_v22, %v4178_v5  ;;  %v4364_v22 = vpop.permute.xlu1 %4363  ;;  %v4359_v5 = vpop.permute.xlu0 %4358 }
0x1bc5   :  { %v4295_v30 = vadd.f32 %v4281_v25, %v4227_v10 }
0x1bc7   :  { %v4331_v35 = vadd.f32 %v4309_v12, %v4295_v30 }
0x1bc8   :  { %v4231_v59 = vpop.f32.mrf.mxu2 }
0x1bc9   :  { %v4336_v2 = vmax.f32 %v4331_v35, 0.0  ;;  %v6097_v35 = vld [vmem:[%s7739_s27 + $0xa] sm:$0x3] }
0x1bca   :  { %v4180_v33 = vpop.f32.mrf.mxu0 }
0x1bcb   :  { %v4229_v63 = vadd.f32 %v4228_v50, %v4180_v33 }
0x1bcd   :  { %v4296_v14 = vadd.f32 %v4283_v26, %v4229_v63 }
0x1bcf   :  { %v4332_v0 = vadd.f32 %v4314_v49, %v4296_v14  ;;  %v4444_v14 = vpop.permute.xlu2 %4443 }
0x1bd0   :  { %v4233_v39 = vpop.f32.mrf.mxu2 }
0x1bd1   :  { %v4337_v20 = vmax.f32 %v4332_v0, 0.0 }
0x1bd2   :  { %v4183_v17 = vpop.f32.mrf.mxu0 }
0x1bd3   :  { %v4347_v8 = vpack.c.bf16 %v4337_v20, %v4336_v2  ;;  %v4232_v24 = vadd.f32 %v4231_v59, %v4183_v17  ;;  %v6313_v17 = vld [vmem:[%s7740_s4 + $0x64] sm:$0xff] }
0x1bd5   :  { %v4297_v41 = vadd.f32 %v4286_v52, %v4232_v24 }
0x1bd7   :  { %v4333_v27 = vadd.f32 %v4319_v46, %v4297_v41 }
0x1bd8   :  { %v4236_v31 = vpop.f32.mrf.mxu2 }
0x1bd9   :  { %v4338_v36 = vmax.f32 %v4333_v27, 0.0 }
0x1bda   :  { %v4185_v62 = vpop.f32.mrf.mxu0 }
0x1bdb   :  { %v4234_v9 = vadd.f32 %v4233_v39, %v4185_v62 }
0x1bdd   :  { %v4298_v34 = vadd.f32 %v4288_v13, %v4234_v9 }
0x1bdf   :  { %v4334_v40 = vadd.f32 %v4324_v15, %v4298_v34  ;;  %v6316_v34 = vld [vmem:[%s7741_s23 + $0x6c] sm:$0xff] }
0x1be0   :  { %v4238_v18 = vpop.f32.mrf.mxu2 }
0x1be1   :  { %v4339_v42 = vmax.f32 %v4334_v40, 0.0 }
0x1be2   :  { %v4188_v29 = vpop.f32.mrf.mxu0 }
0x1be3   :  { %v4237_v58 = vadd.f32 %v4236_v31, %v4188_v29  ;;  %v4348_v45 = vpack.c.bf16 %v4339_v42, %v4338_v36  ;;  %v6113_v31 = vld [vmem:[%s7740_s4 + $0x74] sm:$0xf]  ;;  %v6315_v29 = vld [vmem:[%s7741_s23 + $0x64] sm:$0xff]  ;;  %v4610_v42 = vpop.permute.xlu1 %4609 }
0x1be4   :  { %v4553_v62 = vunpack.c.l.b16 %v6113_v31 }
0x1be5   :  { %v4299_v23 = vadd.f32 %v4291_v43, %v4237_v58 }
0x1be6   :  { %v4556_v9 = vpack.c.b16 %v4553_v62, %v4553_v62 }
0x1be7   :  { %v4335_v16 = vadd.f32 %v4329_v56, %v4299_v23  ;;  %v6118_v23 = vld [vmem:[%s7741_s23 + $0x74] sm:$0xf] }
0x1be8   :  { %v4505_v41 = vunpack.c.l.b16 %v6118_v23 }
0x1be9   :  { %v4340_v6 = vmax.f32 %v4335_v16, 0.0 }
0x1bea   :  { %v4190_v28 = vpop.f32.mrf.mxu0  ;;  %v4508_v15 = vpack.c.b16 %v4505_v41, %v4505_v41 }
0x1beb   :  { %v4349_v37 = vpack.c.bf16 %v4340_v6, %v4340_v6  ;;  %v4605_v47 = vpop.permute.xlu1 %4604 }
0x1bed   :  { %v4404_v44 = vsel %vm310_vm1, %v4349_v37, 0  ;;  %v4620_v37 = vpop.permute.xlu0 %4619 }
0x1bee   :  { %4411 = vmatpush.bf16.msra.mxu3 %v4404_v44 }
0x1bf2   :  { %4412 = vmatpush.bf16.msra.mxu3 %v4348_v45 }
0x1bf6   :  { %4413 = vmatpush.bf16.msra.mxu3 %v4347_v8  ;;  %v6314_v8 = vld [vmem:[%s7740_s4 + $0x6c] sm:$0xff] }
0x1bf9   :  { %6094 = vmatmul.msk.bf16.vlgmr.msra.gmra.mxu3 %vm348_vm5, %v6311_v53 }
0x1bfa   :  { %4575 = vmatpush.bf16.msrb.mxu3 %v4566_v48  ;;  %v4600_v48 = vpop.permute.xlu0 %4599 }
0x1c09   :  { %6095 = vmatmul.msk.bf16.gmra.mxu3 %vm348_vm5, %v6312_v61 }
0x1c19   :  { %6096 = vmatmul.msk.bf16.gmra.mxu3 %vm348_vm5, %v4393_v54 }
0x1c29   :  { %6138 = vmatmul.msk.bf16.vlgmr.msrb.gmra.mxu3 %vm7796_vm3, %v6313_v17  ;;  %v4665_v17 = vpop.permute.xlu1 %4664 }
0x1c39   :  { %6139 = vmatmul.msk.bf16.gmra.mxu3 %vm7797_vm10, %v6314_v8 }
0x1c49   :  { %6140 = vmatmul.msk.bf16.gmra.mxu3 %vm7798_vm15, %v4556_v9 }
0x1c7c   :  { %v4415_v11 = vpop.f32.mrf.mxu3 }
0x1c7d   :  { %v4416_v10 = vadd.f32 %v4415_v11, %v4359_v5 }
0x1c7f   :  { %v4429_v63 = vmax.f32 %v4416_v10, 0.0 }
0x1c84   :  { %v4417_v55 = vpop.f32.mrf.mxu3 }
0x1c85   :  { %v4418_v50 = vadd.f32 %v4417_v55, %v4364_v22 }
0x1c87   :  { %v4430_v30 = vmax.f32 %v4418_v50, 0.0 }
0x1c89   :  { %v4436_v12 = vpack.c.bf16 %v4430_v30, %v4429_v63  ;;  %v6318_v30 = vld [vmem:[%s7743_s22 + $0x6c] sm:$0xff] }
0x1c8c   :  { %v4420_v3 = vpop.f32.mrf.mxu3 }
0x1c8d   :  { %v4421_v13 = vadd.f32 %v4420_v3, %v4369_v60 }
0x1c8f   :  { %v4431_v21 = vmax.f32 %v4421_v13, 0.0 }
0x1c94   :  { %v4422_v38 = vpop.f32.mrf.mxu3 }
0x1c95   :  { %v4423_v26 = vadd.f32 %v4422_v38, %v4374_v57 }
0x1c97   :  { %v4432_v56 = vmax.f32 %v4423_v26, 0.0  ;;  %v4615_v26 = vpop.permute.xlu2 %4614 }
0x1c99   :  { %v4437_v33 = vpack.c.bf16 %v4432_v56, %v4431_v21 }
0x1c9c   :  { %v4425_v1 = vpop.f32.mrf.mxu3 }
0x1c9d   :  { %v4426_v25 = vadd.f32 %v4425_v1, %v4379_v19 }
0x1c9f   :  { %v4433_v52 = vmax.f32 %v4426_v25, 0.0 }
0x1ca1   :  { %v4438_v43 = vpack.c.bf16 %v4433_v52, %v4433_v52 }
0x1ca3   :  { %v4450_v46 = vsel %vm310_vm1, %v4438_v43, 0 }
0x1ca4   :  { %v4427_v59 = vpop.f32.mrf.mxu3  ;;  %4457 = vmatpush.bf16.msrb.mxu0 %v4450_v46 }
0x1ca5   :  { %v6317_v59 = vld [vmem:[%s7743_s22 + $0x64] sm:$0xff] }
0x1ca8   :  { %4458 = vmatpush.bf16.msrb.mxu0 %v4437_v33  ;;  %v6150_v33 = vld [vmem:[%s7743_s22 + $0x74] sm:$0xf] }
0x1ca9   :  { %v4681_v63 = vunpack.c.l.b16 %v6150_v33 }
0x1cac   :  { %4459 = vmatpush.bf16.msrb.mxu0 %v4436_v12  ;;  %v4577_v16 = vpop.f32.mrf.mxu3  ;;  %v4684_v12 = vpack.c.b16 %v4681_v63, %v4681_v63 }
0x1caf   :  { %6099 = vmatmul.msk.bf16.vlgmr.msrb.gmra.mxu0 %vm348_vm5, %v6097_v35 }
0x1cb4   :  { %v4579_v40 = vpop.f32.mrf.mxu3 }
0x1cbc   :  { %v4582_v6 = vpop.f32.mrf.mxu3 }
0x1cc4   :  { %v4584_v27 = vpop.f32.mrf.mxu3 }
0x1ccc   :  { %v4587_v28 = vpop.f32.mrf.mxu3 }
0x1cd4   :  { %v4589_v36 = vpop.f32.mrf.mxu3 }
0x1d2c   :  { %v4461_v49 = vpop.f32.mrf.mxu0 }
0x1d2d   :  { %v4462_v0 = vadd.f32 %v4461_v49, %v4444_v14 }
0x1d2f   :  { %v4465_v39 = vmul.f32 %v4462_v0, %v7410_v51 }
0x1d31   :  { %v4466_v2 = vpack.c.bf16 %v4465_v39, %v4465_v39  ;;  %v4660_v39 = vpop.permute.xlu0 %4659 }
0x1d33   :  { %6108 = vmatmul.msk.bf16.vlgmr.msrb.gmra.mxu2 %vm7784_vm13, %v4466_v2  ;;  %v4670_v2 = vpop.permute.xlu2 %4669 }
0x1d34   :  { %v4463_v20 = vpop.f32.mrf.mxu0 }
0x1db6   :  { %v4479_v18 = vpop.f32.mrf.mxu2 }
0x1db7   :  { %v4495_v24 = vpack.c.bf16 %v4479_v18, %v4479_v18  ;;  %v4655_v18 = vpop.permute.xlu0 %4654 }
0x1db9   :  { %v4519_v51 = vsel %vm7787_vm7, %v4495_v24, 0 }
0x1dba   :  { %4528 = vmatpush.bf16.msrb.mxu1 %v4519_v51 }
0x1dbd   :  { %6127 = vmatmul.msk.bf16.vlgmr.msrb.gmra.mxu1 %vm389_vm4, %v6315_v29 }
0x1dbe   :  { %v4481_v58 = vpop.f32.mrf.mxu2 }
0x1dbf   :  { %v4650_v58 = vpop.permute.xlu2 %4649  ;;  %v4829_v33 = vpop.permute.xlu0 %4828 }
0x1dcd   :  { %6128 = vmatmul.msk.bf16.gmra.mxu1 %vm389_vm4, %v6316_v34 }
0x1ddd   :  { %6129 = vmatmul.msk.bf16.gmra.mxu1 %vm389_vm4, %v4508_v15  ;;  %vm7801_vm4 = vmmov %vm7790_vm0 }
0x1e3a   :  { %v4530_v44 = vpop.f32.mrf.mxu1 }
0x1e3b   :  { %v4578_v45 = vadd.f32 %v4577_v16, %v4530_v44 }
0x1e3d   :  { %v4622_v61 = vadd.f32 %v4600_v48, %v4578_v45  ;;  %v4756_v45 = vmul.f32 0.5, %v7552_v32  ;;  %v6323_v32 = vld [vmem:[%s7799_s25 + $0x20] sm:$0xff] }
0x1e3f   :  { %v4627_v11 = vmax.f32 %v4622_v61, 0.0 }
0x1e42   :  { %v4532_v53 = vpop.f32.mrf.mxu1 }
0x1e43   :  { %v4580_v4 = vadd.f32 %v4579_v40, %v4532_v53 }
0x1e45   :  { %v4623_v54 = vadd.f32 %v4605_v47, %v4580_v4 }
0x1e47   :  { %v4628_v55 = vmax.f32 %v4623_v54, 0.0  ;;  %v6319_v54 = vld [vmem:[%s7799_s25] sm:$0xff] }
0x1e49   :  { %v4638_v3 = vpack.c.bf16 %v4628_v55, %v4627_v11  ;;  %v6320_v11 = vld [vmem:[%s7799_s25 + $0x8] sm:$0xff]  ;;  %v6321_v55 = vld [vmem:[%s7799_s25 + $0x10] sm:$0xff] }
0x1e4a   :  { %v4535_v38 = vpop.f32.mrf.mxu1 }
0x1e4b   :  { %v4583_v25 = vadd.f32 %v4582_v6, %v4535_v38  ;;  %v4824_v38 = vpop.permute.xlu2 %4823 }
0x1e4d   :  { %v4624_v43 = vadd.f32 %v4610_v42, %v4583_v25 }
0x1e4f   :  { %v4629_v10 = vmax.f32 %v4624_v43, 0.0 }
0x1e52   :  { %v4537_v60 = vpop.f32.mrf.mxu1 }
0x1e53   :  { %v4585_v19 = vadd.f32 %v4584_v27, %v4537_v60 }
0x1e55   :  { %v4625_v13 = vadd.f32 %v4615_v26, %v4585_v19  ;;  %v4819_v19 = vpop.permute.xlu2 %4818 }
0x1e57   :  { %v4630_v56 = vmax.f32 %v4625_v13, 0.0 }
0x1e59   :  { %v4639_v21 = vpack.c.bf16 %v4630_v56, %v4629_v10 }
0x1e5a   :  { %v4540_v1 = vpop.f32.mrf.mxu1 }
0x1e5b   :  { %v4588_v57 = vadd.f32 %v4587_v28, %v4540_v1  ;;  %v6167_v28 = vld [vmem:[%s7744_s26 + $0x14] sm:$0x7] }
0x1e5d   :  { %v4626_v52 = vadd.f32 %v4620_v37, %v4588_v57  ;;  %v4735_v37 = vpop.permute.xlu1 %4734  ;;  %v4794_v1 = vpop.permute.xlu2 %4793 }
0x1e5f   :  { %v4631_v22 = vmax.f32 %v4626_v52, 0.0 }
0x1e61   :  { %v4640_v50 = vpack.c.bf16 %v4631_v22, %v4631_v22 }
0x1e62   :  { %v4542_v5 = vpop.f32.mrf.mxu1 }
0x1e63   :  { %v4695_v46 = vsel %vm310_vm1, %v4640_v50, 0 }
0x1e64   :  { %4702 = vmatpush.bf16.msra.mxu0 %v4695_v46 }
0x1e65   :  { %v4814_v60 = vpop.permute.xlu1 %4813  ;;  %v4789_v52 = vpop.permute.xlu2 %4788 }
0x1e68   :  { %4703 = vmatpush.bf16.msra.mxu0 %v4639_v21 }
0x1e6c   :  { %4704 = vmatpush.bf16.msra.mxu0 %v4638_v3  ;;  %v6322_v3 = vld [vmem:[%s7799_s25 + $0x18] sm:$0xff] }
0x1e6f   :  { %6164 = vmatmul.msk.bf16.vlgmr.msra.gmra.mxu0 %vm348_vm5, %v6317_v59 }
0x1e7f   :  { %6165 = vmatmul.msk.bf16.gmra.mxu0 %vm348_vm5, %v6318_v30 }
0x1e8f   :  { %6166 = vmatmul.msk.bf16.gmra.mxu0 %vm348_vm5, %v4684_v12  ;;  %v4804_v12 = vpop.permute.xlu0 %4803 }
0x1eec   :  { %v4706_v35 = vpop.f32.mrf.mxu0 }
0x1eed   :  { %v4707_v23 = vadd.f32 %v4706_v35, %v4650_v58 }
0x1eef   :  { %v4720_v6 = vmax.f32 %v4707_v23, 0.0 }
0x1ef4   :  { %v4708_v14 = vpop.f32.mrf.mxu0 }
0x1ef5   :  { %v4709_v51 = vadd.f32 %v4708_v14, %v4655_v18  ;;  %v4799_v18 = vpop.permute.xlu0 %4798 }
0x1ef7   :  { %v4721_v16 = vmax.f32 %v4709_v51, 0.0 }
0x1ef9   :  { %v4727_v27 = vpack.c.bf16 %v4721_v16, %v4720_v6  ;;  %v6325_v6 = vld [vmem:[%s7805_s7 + $0x8] sm:$0xff] }
0x1efc   :  { %v4711_v49 = vpop.f32.mrf.mxu0 }
0x1efd   :  { %v4712_v9 = vadd.f32 %v4711_v49, %v4660_v39 }
0x1eff   :  { %v4722_v41 = vmax.f32 %v4712_v9, 0.0 }
0x1f04   :  { %v4713_v0 = vpop.f32.mrf.mxu0 }
0x1f05   :  { %v4714_v31 = vadd.f32 %v4713_v0, %v4665_v17 }
0x1f07   :  { %v4723_v29 = vmax.f32 %v4714_v31, 0.0 }
0x1f09   :  { %v4728_v40 = vpack.c.bf16 %v4723_v29, %v4722_v41 }
0x1f0c   :  { %v4716_v20 = vpop.f32.mrf.mxu0 }
0x1f0d   :  { %v4717_v8 = vadd.f32 %v4716_v20, %v4670_v2 }
0x1f0f   :  { %v4724_v62 = vmax.f32 %v4717_v8, 0.0 }
0x1f11   :  { %v4729_v24 = vpack.c.bf16 %v4724_v62, %v4724_v62 }
0x1f13   :  { %v4741_v34 = vsel %vm310_vm1, %v4729_v24, 0  ;;  %vm7800_vm1 = vmmov %vm7790_vm0 }
0x1f14   :  { %4748 = vmatpush.bf16.msra.mxu2 %v4741_v34  ;;  %v4718_v15 = vpop.f32.mrf.mxu0 }
0x1f18   :  { %4749 = vmatpush.bf16.msra.mxu2 %v4728_v40  ;;  %v6324_v40 = vld [vmem:[%s7805_s7] sm:$0xff] }
0x1f1c   :  { %4750 = vmatpush.bf16.msra.mxu2 %v4727_v27  ;;  %v6326_v27 = vld [vmem:[%s7805_s7 + $0x10] sm:$0xff] }
0x1f1f   :  { %6169 = vmatmul.msk.bf16.vlgmr.msra.gmra.mxu2 %vm348_vm5, %v6167_v28  ;;  %vm7802_vm5 = vmmov %vm7790_vm0  ;;  %vm5018_vm0 = vcmask 654336   ;;  %v6327_v28 = vld [vmem:[%s7805_s7 + $0x18] sm:$0xff] }
0x1fa2   :  { %v4752_v42 = vpop.f32.mrf.mxu2 }
0x1fa3   :  { %v4753_v44 = vadd.f32 %v4752_v42, %v4735_v37  ;;  %v6328_v37 = vld [vmem:[%s7805_s7 + $0x20] sm:$0xff]  ;;  %v4986_v42 = vpop.permute.xlu0 %4985 }
0x1fa5   :  { %v4757_v36 = vmax.f32 %v4753_v44, 0.0  ;;  %v4976_v44 = vpop.permute.xlu2 %4975 }
0x1fa7   :  { %v4758_v48 = vmul.f32 0.5, %v4757_v36 }
0x1fa9   :  { %v4759_v53 = vadd.f32 %v4758_v48, %v4756_v45 }
0x1faa   :  { %v4754_v61 = vpop.f32.mrf.mxu2 }
0x1fab   :  { %v4770_v4 = vpack.c.bf16 %v4759_v53, %v4759_v53  ;;  %v4981_v36 = vpop.permute.xlu0 %4980 }
0x1fad   :  { %v4872_v47 = vand.u32 %v4770_v4, %v6722_v7  ;;  %v4809_v7 = vpop.permute.xlu1 %4808  ;;  %v4971_v45 = vpop.permute.xlu2 %4970 }
0x1faf   :  { %4881 = vmatpush.bf16.msrb.mxu2 %v4872_v47 }
0x1fb2   :  { %6190 = vmatmul.msk.bf16.vlgmr.msrb.gmra.mxu2 %vm7800_vm1, %v6319_v54 }
0x1fb3   :  { %v4956_v48 = vpop.permute.xlu0 %4955 }
0x1fb5   :  { %v4784_v25 = vpop.permute.xlu1 %4783  ;;  %v4946_v61 = vpop.permute.xlu2 %4945 }
0x1fbb   :  { %v4951_v47 = vpop.permute.xlu0 %4950 }
0x1fc2   :  { %6191 = vmatmul.msk.bf16.gmra.mxu2 %vm7801_vm4, %v6320_v11 }
0x1fd2   :  { %6192 = vmatmul.msk.bf16.gmra.mxu2 %vm7802_vm5, %v6321_v55 }
0x1fe2   :  { %6193 = vmatmul.msk.bf16.gmra.mxu2 %vm7803_vm8, %v6322_v3 }
0x1ff2   :  { %6194 = vmatmul.msk.bf16.gmra.mxu2 %vm7804_vm11, %v6323_v32 }
0x2035   :  { %v4883_v57 = vpop.f32.mrf.mxu2 }
0x2036   :  { %v4884_v26 = vadd.f32 %v4883_v57, %v4784_v25  ;;  %v4991_v25 = vpop.permute.xlu1 %4990 }
0x2038   :  { %v4908_v43 = vmax.f32 %v4884_v26, 0.0 }
0x203d   :  { %v4885_v13 = vpop.f32.mrf.mxu2 }
0x203e   :  { %v4886_v22 = vadd.f32 %v4885_v13, %v4789_v52  ;;  %v4966_v52 = vpop.permute.xlu1 %4965 }
0x2040   :  { %v4909_v50 = vmax.f32 %v4886_v22, 0.0 }
0x2042   :  { %v4928_v56 = vpack.c.bf16 %v4909_v50, %v4908_v43 }
0x2045   :  { %v4888_v5 = vpop.f32.mrf.mxu2 }
0x2046   :  { %v4889_v58 = vadd.f32 %v4888_v5, %v4794_v1 }
0x2048   :  { %v4910_v15 = vmax.f32 %v4889_v58, 0.0 }
0x204d   :  { %v4890_v46 = vpop.f32.mrf.mxu2 }
0x204e   :  { %v4891_v24 = vadd.f32 %v4890_v46, %v4799_v18 }
0x2050   :  { %v4911_v23 = vmax.f32 %v4891_v24, 0.0 }
0x2052   :  { %v4929_v16 = vpack.c.bf16 %v4911_v23, %v4910_v15 }
0x2055   :  { %v4893_v10 = vpop.f32.mrf.mxu2 }
0x2056   :  { %v4894_v62 = vadd.f32 %v4893_v10, %v4804_v12 }
0x2058   :  { %v4912_v34 = vmax.f32 %v4894_v62, 0.0 }
0x205d   :  { %v4895_v21 = vpop.f32.mrf.mxu2 }
0x205e   :  { %v4896_v17 = vadd.f32 %v4895_v21, %v4809_v7 }
0x2060   :  { %v4913_v51 = vmax.f32 %v4896_v17, 0.0 }
0x2062   :  { %v4930_v41 = vpack.c.bf16 %v4913_v51, %v4912_v34 }
0x2065   :  { %v4898_v59 = vpop.f32.mrf.mxu2 }
0x2066   :  { %v4899_v39 = vadd.f32 %v4898_v59, %v4814_v60 }
0x2068   :  { %v4914_v9 = vmax.f32 %v4899_v39, 0.0 }
0x206d   :  { %v4900_v30 = vpop.f32.mrf.mxu2 }
0x206e   :  { %v4901_v49 = vadd.f32 %v4900_v30, %v4819_v19 }
0x2070   :  { %v4915_v8 = vmax.f32 %v4901_v49, 0.0 }
0x2072   :  { %v4931_v29 = vpack.c.bf16 %v4915_v8, %v4914_v9  ;;  %v5078_v8 = vld [vmem:[%s7806_s11] sm:$0x3] }
0x2075   :  { %v4903_v63 = vpop.f32.mrf.mxu2 }
0x2076   :  { %v4904_v35 = vadd.f32 %v4903_v63, %v4824_v38  ;;  %v4961_v63 = vpop.permute.xlu1 %4960 }
0x2078   :  { %v4916_v2 = vmax.f32 %v4904_v35, 0.0 }
0x207d   :  { %v4905_v14 = vpop.f32.mrf.mxu2 }
0x207e   :  { %v4906_v0 = vadd.f32 %v4905_v14, %v4829_v33 }
0x2080   :  { %v4917_v20 = vmax.f32 %v4906_v0, 0.0 }
0x2082   :  { %v4932_v31 = vpack.c.bf16 %v4917_v20, %v4916_v2 }
0x2084   :  { %5037 = vmatpush.bf16.msra.mxu1 %v4932_v31  ;;  %v5088_v31 = vpop.permute.xlu1 %5087 }
0x2088   :  { %5038 = vmatpush.bf16.msra.mxu1 %v4931_v29 }
0x208c   :  { %5039 = vmatpush.bf16.msra.mxu1 %v4930_v41 }
0x2090   :  { %5040 = vmatpush.bf16.msra.mxu1 %v4929_v16 }
0x2094   :  { %5041 = vmatpush.bf16.msra.mxu1 %v4928_v56 }
0x2097   :  { %6215 = vmatmul.msk.bf16.vlgmr.msra.gmra.mxu1 %vm5018_vm0, %v6324_v40 }
0x20a7   :  { %6216 = vmatmul.msk.bf16.gmra.mxu1 %vm5018_vm0, %v6325_v6 }
0x20b7   :  { %6217 = vmatmul.msk.bf16.gmra.mxu1 %vm5018_vm0, %v6326_v27 }
0x20c7   :  { %6218 = vmatmul.msk.bf16.gmra.mxu1 %vm5018_vm0, %v6327_v28 }
0x20d7   :  { %6219 = vmatmul.msk.bf16.gmra.mxu1 %vm5018_vm0, %v6328_v37 }
0x2114   :  { %v5043_v53 = vpop.f32.mrf.mxu1 }
0x2115   :  { %v5044_v4 = vadd.f32 %v5043_v53, %v4946_v61 }
0x2117   :  { %v5068_v55 = vmax.f32 %v5044_v4, 0.0 }
0x211c   :  { %v5045_v54 = vpop.f32.mrf.mxu1 }
0x211d   :  { %v5046_v11 = vadd.f32 %v5045_v54, %v4951_v47 }
0x211f   :  { %v5069_v3 = vmax.f32 %v5046_v11, 0.0 }
0x2121   :  { %v5079_v32 = vpack.c.bf16 %v5069_v3, %v5068_v55 }
0x2124   :  { %v5048_v38 = vpop.f32.mrf.mxu1 }
0x2125   :  { %v5049_v49 = vadd.f32 %v5048_v38, %v4956_v48 }
0x2127   :  { %v5070_v20 = vmax.f32 %v5049_v49, 0.0 }
0x212c   :  { %v5050_v60 = vpop.f32.mrf.mxu1 }
0x212d   :  { %v5051_v12 = vadd.f32 %v5050_v60, %v4961_v63 }
0x212f   :  { %v5071_v39 = vmax.f32 %v5051_v12, 0.0 }
0x2131   :  { %v5080_v17 = vpack.c.bf16 %v5071_v39, %v5070_v20 }
0x2134   :  { %v5053_v19 = vpop.f32.mrf.mxu1 }
0x2135   :  { %v5054_v30 = vadd.f32 %v5053_v19, %v4966_v52 }
0x2137   :  { %v5072_v0 = vmax.f32 %v5054_v30, 0.0 }
0x213c   :  { %v5055_v7 = vpop.f32.mrf.mxu1 }
0x213d   :  { %v5056_v10 = vadd.f32 %v5055_v7, %v4971_v45 }
0x213f   :  { %v5073_v35 = vmax.f32 %v5056_v10, 0.0 }
0x2141   :  { %v5081_v2 = vpack.c.bf16 %v5073_v35, %v5072_v0 }
0x2144   :  { %v5058_v1 = vpop.f32.mrf.mxu1 }
0x2145   :  { %v5059_v56 = vadd.f32 %v5058_v1, %v4976_v44 }
0x2147   :  { %v5074_v33 = vmax.f32 %v5059_v56, 0.0 }
0x214c   :  { %v5060_v57 = vpop.f32.mrf.mxu1 }
0x214d   :  { %v5061_v43 = vadd.f32 %v5060_v57, %v4981_v36 }
0x214f   :  { %v5075_v21 = vmax.f32 %v5061_v43, 0.0 }
0x2151   :  { %v5082_v14 = vpack.c.bf16 %v5075_v21, %v5074_v33 }
0x2154   :  { %v5063_v26 = vpop.f32.mrf.mxu1 }
0x2155   :  { %v5064_v13 = vadd.f32 %v5063_v26, %v4986_v42 }
0x2157   :  { %v5076_v5 = vmax.f32 %v5064_v13, 0.0 }
0x215c   :  { %v5065_v22 = vpop.f32.mrf.mxu1 }
0x215d   :  { %v5066_v50 = vadd.f32 %v5065_v22, %v4991_v25 }
0x215f   :  { %v5077_v46 = vmax.f32 %v5066_v50, 0.0 }
0x2161   :  { %v5083_v59 = vpack.c.bf16 %v5077_v46, %v5076_v5 }
0x2163   :  { %5096 = vmatpush.bf16.msra.mxu3 %v5083_v59 }
0x2167   :  { %5097 = vmatpush.bf16.msra.mxu3 %v5082_v14 }
0x216b   :  { %5098 = vmatpush.bf16.msra.mxu3 %v5081_v2 }
0x216f   :  { %5099 = vmatpush.bf16.msra.mxu3 %v5080_v17 }
0x2173   :  { %5100 = vmatpush.bf16.msra.mxu3 %v5079_v32 }
0x2176   :  { %6220 = vmatmul.msk.bf16.vlgmr.msra.gmra.mxu3 %vm5018_vm0, %v5078_v8 }
0x21f9   :  { %v5102_v62 = vpop.f32.mrf.mxu3 }
0x21fa   :  { %v5103_v9 = vadd.f32 %v5102_v62, %v5088_v31 }
0x21fc   :  { %v5106_v18 = vsub.f32 0.0, %v5103_v9  ;;  %5130 = vst.msk [vmem:[#allocation5 - $0x1] sm:$0x6] %vm5129_vm6, %v5103_v9 }
0x21fd   :  { %6416 = shalt.err (!%p6413_p4)
}
0x21fe   :  { %5154 = dma.vmem_to_hbm [thread:$0]  %s5150_s15, 32, %s5152_s18, [#allocation6]   ;;  %v5107_v24 = vmul.f32 1.442695, %v5106_v18  ;;  %vm5127_vm13 = vcmask 253952  }
0x21ff   :  { %s6493_s9 = smov [#allocation3]   ;;  %s5140_s29 = sshll.u32 %s6710_s3, 4  ;;  %s5141_s29 = int_to_ptr.hbm [resolvable:$true] %s5140_s29 }
0x2200   :  { %6389 = vpow2.f32 %v5107_v24  ;;  %s5138_s30 = sshll.u32 %s6493_s9, 4  ;;  %s6429_s6 = sshra.s32 %s5141_s29, 4  ;;  %s5139_s30 = int_to_ptr.vmem [resolvable:$true] %s5138_s30  ;;  %s6430_s6 = int_to_ptr.hbm [resolvable:$true] %s6429_s6 }
0x2201   :  { %v5104_v51 = vpop.f32.mrf.mxu3  ;;  %s6431_s14 = scalar_lea.hbm %s6430_s6, 1  ;;  %s6433_s19 = scalar_lea.hbm %s6710_s3, 1 }
0x2202   :  { %p6432_p5 = scmp.ne.s32.totalorder %s6430_s6, %s6431_s14  ;;  %p6434_p6 = scmp.lt.s32.totalorder %s6430_s6, %s6710_s3 }
0x2203   :  { %p6435_p7 = scmp.lt.s32.totalorder %s6433_s19, %s6431_s14 }
0x2205   :  { %p6436_p8 = por %p6435_p7, %p6434_p6 }
0x2206   :  { %v6390_v29 = vpop.eup %6389 }
0x2207   :  { %v5109_v58 = vadd.f32 1.0, %v6390_v29  ;;  %p6437_p9 = pnand %p6436_p8, %p6432_p5 }
0x2209   :  { %6391 = vrcp.f32 %v5109_v58  ;;  %v5121_v15 = vand.u32 2147483648, %v5109_v58  ;;  %v5119_v40 = vand.u32 2147483647, %v5109_v58  ;;  %vm5115_vm9 = vweird.f32 %v5109_v58 }
0x220b   :  { %v5122_v27 = vor.u32 1.1754944e-38, %v5121_v15  ;;  %vm5120_vm2 = vcmp.eq.f32.partialorder %v5119_v40, 8.507059e+37 }
0x220f   :  { %v6392_v34 = vpop.eup %6391 }
0x2210   :  { %v5111_v23 = vmul.f32 %v6392_v34, %v5109_v58  ;;  %vm5116_vm12 = vweird.f32 %v6392_v34 }
0x2211   :  { %vm5117_vm14 = vmor %vm5115_vm9, %vm5116_vm12 }
0x2212   :  { %v5112_v41 = vsub.f32 1.0, %v5111_v23 }
0x2214   :  { %v5113_v16 = vmul.f32 %v6392_v34, %v5112_v41 }
0x2216   :  { %v5114_v6 = vadd.f32 %v6392_v34, %v5113_v16 }
0x2218   :  { %v5118_v28 = vsel %vm5117_vm14, %v6392_v34, %v5114_v6 }
0x2219   :  { %v5123_v37 = vsel %vm5120_vm2, %v5122_v27, %v5118_v28 }
0x221a   :  { %v5125_v42 = vmul.f32 0.999998, %v5123_v37 }
0x221c   :  { %v5126_v44 = vadd.f32 1e-06, %v5125_v42 }
0x221e   :  { %5128 = vst.msk [vmem:[#allocation3] sm:$0x1] %vm5127_vm13, %v5126_v44 }
0x221f   :  { %6440 = shalt.err (!%p6437_p9)
}
0x2220   :  { %5143 = dma.vmem_to_hbm [thread:$0]  %s5139_s30, 16, %s5141_s29, [#allocation4]  }
0x2221   :  { %6441 = dma.done.wait [#allocation4], 16  }
0x2222   :  { %6442 = vsyncadd [#allocation4], 4294967280 }
0x2223   :  { %6443 = dma.done.wait [#allocation6], 32  }
0x2224   :  { %6444 = vsyncadd [#allocation6], 4294967264 }
0x2225   :  { %5165 = vsyncpa [#allocation4], 1 }
0x2226   :  { %5166 = vsyncpa [#allocation6], 1 }

</bundles_post_ra>
